<compile_context>
chip_gen: v6e
topology: v6e:2x2x1
jax: 0.10.0
libtpu: 0.0.40
codegen_flags: <defaults>
</compile_context>

<pallas_src>
import functools

import numpy as np
import jax
import jax.numpy as jnp
from jax import lax
from jax.experimental import pallas as pl
from jax.experimental.pallas import tpu as pltpu

C = 32  # channel width fixed by the module


# --------------------------------------- fused kernel -------------------------------------------
def _fused_kernel(x_ref, w1b_ref, b1t_ref, g_ref, beff_ref, hmask_ref,
                  o_ref, p_ref, *, d, h, w, c, pad):
    R = d * h          # rows  = (d, h) voxels
    L = w * c          # lanes = (w, channel)

    # conv1 (1x1x1) + bias as one row-space matmul (weight pre-blocked to (L, L)).
    y1 = (jnp.dot(x_ref[0], w1b_ref[...], preferred_element_type=jnp.float32)
          + b1t_ref[...])                                            # (R, L)

    # Zero the halo rows of the scratch, drop y1 into the interior (zero pad along d/h).
    zeros_pad = jnp.zeros((pad, L), jnp.float32)
    p_ref[0:pad, :] = zeros_pad
    p_ref[pad + R:2 * pad + R, :] = zeros_pad
    p_ref[pad:pad + R, :] = y1

    # 9 (kd, kh) taps: shifted window read + one (R, L) x (L, L) matmul each.
    acc = jnp.zeros((R, L), jnp.float32)
    for kd in range(3):
        for kh in range(3):
            g = kd * 3 + kh
            start = pad + (kd - 1) * h + (kh - 1)
            win = p_ref[start:start + R, :]                          # (R, L)
            contrib = jnp.dot(win, g_ref[g], preferred_element_type=jnp.float32)
            # h-boundary validity (d-boundary is handled by the zero halo,
            # w-boundary is handled inside the banded G matrices).
            if kh == 0:
                contrib = contrib * hmask_ref[0]                     # (R, 1) column mask
            elif kh == 2:
                contrib = contrib * hmask_ref[1]
            acc = acc + contrib

    o_ref[0] = (acc + beff_ref[...]).astype(o_ref.dtype)


# ----------------------------------- offline weight folding -------------------------------------
def prepare_folded_params(params, d, h, w):
    c = C
    L = w * c
    R = d * h
    w1 = np.asarray(params["w1"], np.float32)
    b1 = np.asarray(params["b1"], np.float32)
    w3 = np.asarray(params["w3"], np.float32)          # (cout, cin, kd, kh, kw)
    b3 = np.asarray(params["b3"], np.float32)
    wl = np.asarray(params["wl"], np.float32)           # (out, in)
    bl = np.asarray(params["bl"], np.float32)

    # conv1 acting on (d*h, w*C) rows: block-diagonal (w copies of w1^T).
    w1b = np.kron(np.eye(w, dtype=np.float32), w1.T)                 # (L, L)
    b1t = np.tile(b1, w)[None, :]                                    # (1, L)

    # Fold the Linear into the conv3 taps, then fold the kw taps (shift + zero pad
    # along w) into nine banded (L, L) matrices, one per (kd, kh).
    weff = np.einsum("oc,ciabe->abeoi", wl, w3)                      # (3,3,3, lin_out, cin)
    G = np.zeros((9, L, L), np.float32)
    for kd in range(3):
        for kh in range(3):
            gi = kd * 3 + kh
            for kw in range(3):
                blk = weff[kd, kh, kw].T                             # (cin, lin_out)
                for wo in range(w):
                    ws = wo + (kw - 1)
                    if 0 <= ws < w:
                        G[gi, ws * c:(ws + 1) * c, wo * c:(wo + 1) * c] = blk

    beff = wl @ b3 + bl
    befft = np.tile(beff, w)[None, :]                                # (1, L)

    hi = np.arange(R) % h
    hmask = np.stack([(hi >= 1), (hi <= h - 2)]).astype(np.float32)[:, :, None]  # (2, R, 1)

    return dict(w1b=jnp.asarray(w1b), b1t=jnp.asarray(b1t), G=jnp.asarray(G),
                befft=jnp.asarray(befft), hmask=jnp.asarray(hmask))


# ------------------------------------------ wrapper ---------------------------------------------
def model_forward(x, prep):
    b, c, d, h, w = x.shape
    assert c == C
    n = d * h * w
    R = d * h
    L = w * c
    pad = ((h + 1 + 7) // 8) * 8                 # halo rows (>= h + 1)

    # NCDHW -> (B, d*h, w*C) channels-last row layout (one small XLA transpose).
    x_rl = jnp.transpose(x, (0, 2, 3, 4, 1)).reshape(b, R, L)

    kern = functools.partial(_fused_kernel, d=d, h=h, w=w, c=c, pad=pad)
    out = pl.pallas_call(
        kern,
        out_shape=jax.ShapeDtypeStruct((b, R, L), x.dtype),
        grid_spec=pltpu.PrefetchScalarGridSpec(
            num_scalar_prefetch=0,
            grid=(b,),
            in_specs=[
                pl.BlockSpec((1, R, L), lambda i: (i, 0, 0)),     # activations
                pl.BlockSpec((L, L), lambda i: (0, 0)),           # conv1 block weight
                pl.BlockSpec((1, L), lambda i: (0, 0)),           # conv1 bias (tiled)
                pl.BlockSpec((9, L, L), lambda i: (0, 0, 0)),     # folded conv3(+linear) taps
                pl.BlockSpec((1, L), lambda i: (0, 0)),           # folded bias (tiled)
                pl.BlockSpec((2, R, 1), lambda i: (0, 0, 0)),     # h-boundary masks
            ],
            out_specs=pl.BlockSpec((1, R, L), lambda i: (i, 0, 0)),
            scratch_shapes=[pltpu.VMEM((R + 2 * pad, L), jnp.float32)],
        ),
        compiler_params=pltpu.CompilerParams(
            dimension_semantics=("parallel",)),
    )(x_rl, prep["w1b"], prep["b1t"], prep["G"], prep["befft"], prep["hmask"])

    # Free, row-major reshape: (B, d*h, w*C) -> (B, d*h*w, C) == flatten(2).permute(0,2,1).
    return out.reshape(b, n, c)


# ----------------------------- deterministic parameter init -------------------------------------
def init_params(key):
    ks = jax.random.split(key, 6)
    bnd1 = 1.0 / (C ** 0.5)            # fan_in = 32 (conv1 / linear)
    bnd3 = 1.0 / ((C * 27) ** 0.5)     # fan_in = 32*27 (conv3)
    w1 = jax.random.uniform(ks[0], (C, C), jnp.float32, -bnd1, bnd1)            # (Cout, Cin)
    b1 = jax.random.uniform(ks[1], (C,), jnp.float32, -bnd1, bnd1)
    w3 = jax.random.uniform(ks[2], (C, C, 3, 3, 3), jnp.float32, -bnd3, bnd3)   # (Cout, Cin, kd, kh, kw)
    b3 = jax.random.uniform(ks[3], (C,), jnp.float32, -bnd3, bnd3)
    wl = jax.random.uniform(ks[4], (C, C), jnp.float32, -bnd1, bnd1)            # (out, in)
    bl = jax.random.uniform(ks[5], (C,), jnp.float32, -bnd1, bnd1)
    return dict(w1=w1, b1=b1, w3=w3, b3=b3, wl=wl, bl=bl)


# --------------------------------- pure-JAX reference check -------------------------------------
def reference_forward(x, p):
    dn = ("NCDHW", "OIDHW", "NCDHW")
    y = lax.conv_general_dilated(x, p["w1"].reshape(C, C, 1, 1, 1),
                                 (1, 1, 1), "VALID", dimension_numbers=dn)
    y = y + p["b1"].reshape(1, C, 1, 1, 1)
    y = lax.conv_general_dilated(y, p["w3"], (1, 1, 1),
                                 [(1, 1)] * 3, dimension_numbers=dn)
    y = y + p["b3"].reshape(1, C, 1, 1, 1)
    b = y.shape[0]
    y = y.reshape(b, C, -1).transpose(0, 2, 1)            # flatten(2).permute(0,2,1)
    return y @ p["wl"].T + p["bl"]


if __name__ == "__main__":
    key = jax.random.PRNGKey(0)
    kp, kx = jax.random.split(key)
    params = init_params(kp)
    d = h = w = 8
    x = jax.random.normal(kx, (2, C, d, h, w), jnp.float32)   # (B, 32, D, H, W)

    prep = prepare_folded_params(params, d, h, w)
    fwd = jax.jit(model_forward)
    out = jax.block_until_ready(fwd(x, prep))
    assert out.shape == (2, d * h * w, C)

    ref = reference_forward(x, params)
    err = float(jnp.max(jnp.abs(out - ref)))
    assert jnp.allclose(out, ref, rtol=2e-3, atol=2e-3), err

    print("KERNEL_OK")
</pallas_src>

<mosaic_0001>
module attributes {stable_mosaic.version = 11 : i64} {
  func.func @_fused_kernel(%arg0: i32, %arg1: memref<1x64x256xf32, #tpu.memory_space<vmem>>, %arg2: memref<256x256xf32, #tpu.memory_space<vmem>>, %arg3: memref<1x256xf32, #tpu.memory_space<vmem>>, %arg4: memref<9x256x256xf32, #tpu.memory_space<vmem>>, %arg5: memref<1x256xf32, #tpu.memory_space<vmem>>, %arg6: memref<2x64x1xf32, #tpu.memory_space<vmem>>, %arg7: memref<1x64x256xf32, #tpu.memory_space<vmem>>, %arg8: memref<96x256xf32, #tpu.memory_space<vmem>>) attributes {dimension_semantics = [#tpu.dimension_semantics<parallel>], iteration_bounds = array<i64: 2>, scalar_prefetch = 0 : i64, scratch_operands = 1 : i64, tpu.core_type = #tpu.core_type<tc>, window_params = [{transform_indices = @transform_0, window_bounds = array<i64: 1, 64, 256>}, {pipeline_mode = #tpu.pipeline_mode<synchronous>, transform_indices = @transform_1, window_bounds = array<i64: 256, 256>}, {pipeline_mode = #tpu.pipeline_mode<synchronous>, transform_indices = @transform_2, window_bounds = array<i64: 1, 256>}, {pipeline_mode = #tpu.pipeline_mode<synchronous>, transform_indices = @transform_3, window_bounds = array<i64: 9, 256, 256>}, {pipeline_mode = #tpu.pipeline_mode<synchronous>, transform_indices = @transform_4, window_bounds = array<i64: 1, 256>}, {pipeline_mode = #tpu.pipeline_mode<synchronous>, transform_indices = @transform_5, window_bounds = array<i64: 2, 64, 1>}, {transform_indices = @transform_6, window_bounds = array<i64: 1, 64, 256>}]} {
    %c0 = arith.constant 0 : index
    %c0_0 = arith.constant 0 : index
    %c0_1 = arith.constant 0 : index
    %0 = vector.load %arg1[%c0, %c0_0, %c0_1] : memref<1x64x256xf32, #tpu.memory_space<vmem>>, vector<1x64x256xf32>
    %1 = vector.shape_cast %0 : vector<1x64x256xf32> to vector<64x256xf32>
    %c0_2 = arith.constant 0 : index
    %c0_3 = arith.constant 0 : index
    %2 = vector.load %arg2[%c0_2, %c0_3] : memref<256x256xf32, #tpu.memory_space<vmem>>, vector<256x256xf32>
    %cst = arith.constant dense<0.000000e+00> : vector<64x256xf32>
    %3 = tpu.matmul %1, %2, %cst {dimension_numbers = #tpu.dot_dimension_numbers<[1], [0], [0], [1], [0, 0, 1, 1], [], []>} : vector<64x256xf32>, vector<256x256xf32>, vector<64x256xf32> -> vector<64x256xf32>
    %c0_4 = arith.constant 0 : index
    %c0_5 = arith.constant 0 : index
    %4 = vector.load %arg3[%c0_4, %c0_5] : memref<1x256xf32, #tpu.memory_space<vmem>>, vector<1x256xf32>
    %5 = vector.broadcast %4 : vector<1x256xf32> to vector<64x256xf32>
    %6 = arith.addf %3, %5 : vector<64x256xf32>
    %cst_6 = arith.constant 0.000000e+00 : f32
    %7 = vector.broadcast %cst_6 : f32 to vector<16x256xf32>
    %c0_7 = arith.constant 0 : index
    %c0_8 = arith.constant 0 : index
    %8 = vector.load %arg8[%c0_7, %c0_8] : memref<96x256xf32, #tpu.memory_space<vmem>>, vector<16x256xf32>
    tpu.vector_store %arg8[%c0_7, %c0_8], %7 {strides = array<i32>} : memref<96x256xf32, #tpu.memory_space<vmem>>, vector<16x256xf32>,
    %c80 = arith.constant 80 : index
    %c0_9 = arith.constant 0 : index
    %9 = vector.load %arg8[%c80, %c0_9] : memref<96x256xf32, #tpu.memory_space<vmem>>, vector<16x256xf32>
    tpu.vector_store %arg8[%c80, %c0_9], %7 {strides = array<i32>} : memref<96x256xf32, #tpu.memory_space<vmem>>, vector<16x256xf32>,
    %c16 = arith.constant 16 : index
    %c0_10 = arith.constant 0 : index
    %10 = vector.load %arg8[%c16, %c0_10] : memref<96x256xf32, #tpu.memory_space<vmem>>, vector<64x256xf32>
    tpu.vector_store %arg8[%c16, %c0_10], %6 {strides = array<i32>} : memref<96x256xf32, #tpu.memory_space<vmem>>, vector<64x256xf32>,
    %cst_11 = arith.constant 0.000000e+00 : f32
    %11 = vector.broadcast %cst_11 : f32 to vector<64x256xf32>
    %c7 = arith.constant 7 : index
    %c0_12 = arith.constant 0 : index
    %12 = vector.load %arg8[%c7, %c0_12] : memref<96x256xf32, #tpu.memory_space<vmem>>, vector<64x256xf32>
    %c0_13 = arith.constant 0 : index
    %c0_14 = arith.constant 0 : index
    %c0_15 = arith.constant 0 : index
    %13 = vector.load %arg4[%c0_13, %c0_14, %c0_15] : memref<9x256x256xf32, #tpu.memory_space<vmem>>, vector<1x256x256xf32>
    %14 = vector.shape_cast %13 : vector<1x256x256xf32> to vector<256x256xf32>
    %cst_16 = arith.constant dense<0.000000e+00> : vector<64x256xf32>
    %15 = tpu.matmul %12, %14, %cst_16 {dimension_numbers = #tpu.dot_dimension_numbers<[1], [0], [0], [1], [0, 0, 1, 1], [], []>} : vector<64x256xf32>, vector<256x256xf32>, vector<64x256xf32> -> vector<64x256xf32>
    %c0_17 = arith.constant 0 : index
    %c0_18 = arith.constant 0 : index
    %c0_19 = arith.constant 0 : index
    %16 = vector.load %arg6[%c0_17, %c0_18, %c0_19] : memref<2x64x1xf32, #tpu.memory_space<vmem>>, vector<1x64x1xf32>
    %17 = vector.shape_cast %16 : vector<1x64x1xf32> to vector<64x1xf32>
    %18 = vector.broadcast %17 : vector<64x1xf32> to vector<64x256xf32>
    %19 = arith.mulf %15, %18 : vector<64x256xf32>
    %20 = arith.addf %11, %19 : vector<64x256xf32>
    %c8 = arith.constant 8 : index
    %c0_20 = arith.constant 0 : index
    %21 = vector.load %arg8[%c8, %c0_20] : memref<96x256xf32, #tpu.memory_space<vmem>>, vector<64x256xf32>
    %c1 = arith.constant 1 : index
    %c0_21 = arith.constant 0 : index
    %c0_22 = arith.constant 0 : index
    %22 = vector.load %arg4[%c1, %c0_21, %c0_22] : memref<9x256x256xf32, #tpu.memory_space<vmem>>, vector<1x256x256xf32>
    %23 = vector.shape_cast %22 : vector<1x256x256xf32> to vector<256x256xf32>
    %cst_23 = arith.constant dense<0.000000e+00> : vector<64x256xf32>
    %24 = tpu.matmul %21, %23, %cst_23 {dimension_numbers = #tpu.dot_dimension_numbers<[1], [0], [0], [1], [0, 0, 1, 1], [], []>} : vector<64x256xf32>, vector<256x256xf32>, vector<64x256xf32> -> vector<64x256xf32>
    %25 = arith.addf %20, %24 : vector<64x256xf32>
    %c9 = arith.constant 9 : index
    %c0_24 = arith.constant 0 : index
    %26 = vector.load %arg8[%c9, %c0_24] : memref<96x256xf32, #tpu.memory_space<vmem>>, vector<64x256xf32>
    %c2 = arith.constant 2 : index
    %c0_25 = arith.constant 0 : index
    %c0_26 = arith.constant 0 : index
    %27 = vector.load %arg4[%c2, %c0_25, %c0_26] : memref<9x256x256xf32, #tpu.memory_space<vmem>>, vector<1x256x256xf32>
    %28 = vector.shape_cast %27 : vector<1x256x256xf32> to vector<256x256xf32>
    %cst_27 = arith.constant dense<0.000000e+00> : vector<64x256xf32>
    %29 = tpu.matmul %26, %28, %cst_27 {dimension_numbers = #tpu.dot_dimension_numbers<[1], [0], [0], [1], [0, 0, 1, 1], [], []>} : vector<64x256xf32>, vector<256x256xf32>, vector<64x256xf32> -> vector<64x256xf32>
    %c1_28 = arith.constant 1 : index
    %c0_29 = arith.constant 0 : index
    %c0_30 = arith.constant 0 : index
    %30 = vector.load %arg6[%c1_28, %c0_29, %c0_30] : memref<2x64x1xf32, #tpu.memory_space<vmem>>, vector<1x64x1xf32>
    %31 = vector.shape_cast %30 : vector<1x64x1xf32> to vector<64x1xf32>
    %32 = vector.broadcast %31 : vector<64x1xf32> to vector<64x256xf32>
    %33 = arith.mulf %29, %32 : vector<64x256xf32>
    %34 = arith.addf %25, %33 : vector<64x256xf32>
    %c15 = arith.constant 15 : index
    %c0_31 = arith.constant 0 : index
    %35 = vector.load %arg8[%c15, %c0_31] : memref<96x256xf32, #tpu.memory_space<vmem>>, vector<64x256xf32>
    %c3 = arith.constant 3 : index
    %c0_32 = arith.constant 0 : index
    %c0_33 = arith.constant 0 : index
    %36 = vector.load %arg4[%c3, %c0_32, %c0_33] : memref<9x256x256xf32, #tpu.memory_space<vmem>>, vector<1x256x256xf32>
    %37 = vector.shape_cast %36 : vector<1x256x256xf32> to vector<256x256xf32>
    %cst_34 = arith.constant dense<0.000000e+00> : vector<64x256xf32>
    %38 = tpu.matmul %35, %37, %cst_34 {dimension_numbers = #tpu.dot_dimension_numbers<[1], [0], [0], [1], [0, 0, 1, 1], [], []>} : vector<64x256xf32>, vector<256x256xf32>, vector<64x256xf32> -> vector<64x256xf32>
    %c0_35 = arith.constant 0 : index
    %c0_36 = arith.constant 0 : index
    %c0_37 = arith.constant 0 : index
    %39 = vector.load %arg6[%c0_35, %c0_36, %c0_37] : memref<2x64x1xf32, #tpu.memory_space<vmem>>, vector<1x64x1xf32>
    %40 = vector.shape_cast %39 : vector<1x64x1xf32> to vector<64x1xf32>
    %41 = vector.broadcast %40 : vector<64x1xf32> to vector<64x256xf32>
    %42 = arith.mulf %38, %41 : vector<64x256xf32>
    %43 = arith.addf %34, %42 : vector<64x256xf32>
    %c16_38 = arith.constant 16 : index
    %c0_39 = arith.constant 0 : index
    %44 = vector.load %arg8[%c16_38, %c0_39] : memref<96x256xf32, #tpu.memory_space<vmem>>, vector<64x256xf32>
    %c4 = arith.constant 4 : index
    %c0_40 = arith.constant 0 : index
    %c0_41 = arith.constant 0 : index
    %45 = vector.load %arg4[%c4, %c0_40, %c0_41] : memref<9x256x256xf32, #tpu.memory_space<vmem>>, vector<1x256x256xf32>
    %46 = vector.shape_cast %45 : vector<1x256x256xf32> to vector<256x256xf32>
    %cst_42 = arith.constant dense<0.000000e+00> : vector<64x256xf32>
    %47 = tpu.matmul %44, %46, %cst_42 {dimension_numbers = #tpu.dot_dimension_numbers<[1], [0], [0], [1], [0, 0, 1, 1], [], []>} : vector<64x256xf32>, vector<256x256xf32>, vector<64x256xf32> -> vector<64x256xf32>
    %48 = arith.addf %43, %47 : vector<64x256xf32>
    %c17 = arith.constant 17 : index
    %c0_43 = arith.constant 0 : index
    %49 = vector.load %arg8[%c17, %c0_43] : memref<96x256xf32, #tpu.memory_space<vmem>>, vector<64x256xf32>
    %c5 = arith.constant 5 : index
    %c0_44 = arith.constant 0 : index
    %c0_45 = arith.constant 0 : index
    %50 = vector.load %arg4[%c5, %c0_44, %c0_45] : memref<9x256x256xf32, #tpu.memory_space<vmem>>, vector<1x256x256xf32>
    %51 = vector.shape_cast %50 : vector<1x256x256xf32> to vector<256x256xf32>
    %cst_46 = arith.constant dense<0.000000e+00> : vector<64x256xf32>
    %52 = tpu.matmul %49, %51, %cst_46 {dimension_numbers = #tpu.dot_dimension_numbers<[1], [0], [0], [1], [0, 0, 1, 1], [], []>} : vector<64x256xf32>, vector<256x256xf32>, vector<64x256xf32> -> vector<64x256xf32>
    %c1_47 = arith.constant 1 : index
    %c0_48 = arith.constant 0 : index
    %c0_49 = arith.constant 0 : index
    %53 = vector.load %arg6[%c1_47, %c0_48, %c0_49] : memref<2x64x1xf32, #tpu.memory_space<vmem>>, vector<1x64x1xf32>
    %54 = vector.shape_cast %53 : vector<1x64x1xf32> to vector<64x1xf32>
    %55 = vector.broadcast %54 : vector<64x1xf32> to vector<64x256xf32>
    %56 = arith.mulf %52, %55 : vector<64x256xf32>
    %57 = arith.addf %48, %56 : vector<64x256xf32>
    %c23 = arith.constant 23 : index
    %c0_50 = arith.constant 0 : index
    %58 = vector.load %arg8[%c23, %c0_50] : memref<96x256xf32, #tpu.memory_space<vmem>>, vector<64x256xf32>
    %c6 = arith.constant 6 : index
    %c0_51 = arith.constant 0 : index
    %c0_52 = arith.constant 0 : index
    %59 = vector.load %arg4[%c6, %c0_51, %c0_52] : memref<9x256x256xf32, #tpu.memory_space<vmem>>, vector<1x256x256xf32>
    %60 = vector.shape_cast %59 : vector<1x256x256xf32> to vector<256x256xf32>
    %cst_53 = arith.constant dense<0.000000e+00> : vector<64x256xf32>
    %61 = tpu.matmul %58, %60, %cst_53 {dimension_numbers = #tpu.dot_dimension_numbers<[1], [0], [0], [1], [0, 0, 1, 1], [], []>} : vector<64x256xf32>, vector<256x256xf32>, vector<64x256xf32> -> vector<64x256xf32>
    %c0_54 = arith.constant 0 : index
    %c0_55 = arith.constant 0 : index
    %c0_56 = arith.constant 0 : index
    %62 = vector.load %arg6[%c0_54, %c0_55, %c0_56] : memref<2x64x1xf32, #tpu.memory_space<vmem>>, vector<1x64x1xf32>
    %63 = vector.shape_cast %62 : vector<1x64x1xf32> to vector<64x1xf32>
    %64 = vector.broadcast %63 : vector<64x1xf32> to vector<64x256xf32>
    %65 = arith.mulf %61, %64 : vector<64x256xf32>
    %66 = arith.addf %57, %65 : vector<64x256xf32>
    %c24 = arith.constant 24 : index
    %c0_57 = arith.constant 0 : index
    %67 = vector.load %arg8[%c24, %c0_57] : memref<96x256xf32, #tpu.memory_space<vmem>>, vector<64x256xf32>
    %c7_58 = arith.constant 7 : index
    %c0_59 = arith.constant 0 : index
    %c0_60 = arith.constant 0 : index
    %68 = vector.load %arg4[%c7_58, %c0_59, %c0_60] : memref<9x256x256xf32, #tpu.memory_space<vmem>>, vector<1x256x256xf32>
    %69 = vector.shape_cast %68 : vector<1x256x256xf32> to vector<256x256xf32>
    %cst_61 = arith.constant dense<0.000000e+00> : vector<64x256xf32>
    %70 = tpu.matmul %67, %69, %cst_61 {dimension_numbers = #tpu.dot_dimension_numbers<[1], [0], [0], [1], [0, 0, 1, 1], [], []>} : vector<64x256xf32>, vector<256x256xf32>, vector<64x256xf32> -> vector<64x256xf32>
    %71 = arith.addf %66, %70 : vector<64x256xf32>
    %c25 = arith.constant 25 : index
    %c0_62 = arith.constant 0 : index
    %72 = vector.load %arg8[%c25, %c0_62] : memref<96x256xf32, #tpu.memory_space<vmem>>, vector<64x256xf32>
    %c8_63 = arith.constant 8 : index
    %c0_64 = arith.constant 0 : index
    %c0_65 = arith.constant 0 : index
    %73 = vector.load %arg4[%c8_63, %c0_64, %c0_65] : memref<9x256x256xf32, #tpu.memory_space<vmem>>, vector<1x256x256xf32>
    %74 = vector.shape_cast %73 : vector<1x256x256xf32> to vector<256x256xf32>
    %cst_66 = arith.constant dense<0.000000e+00> : vector<64x256xf32>
    %75 = tpu.matmul %72, %74, %cst_66 {dimension_numbers = #tpu.dot_dimension_numbers<[1], [0], [0], [1], [0, 0, 1, 1], [], []>} : vector<64x256xf32>, vector<256x256xf32>, vector<64x256xf32> -> vector<64x256xf32>
    %c1_67 = arith.constant 1 : index
    %c0_68 = arith.constant 0 : index
    %c0_69 = arith.constant 0 : index
    %76 = vector.load %arg6[%c1_67, %c0_68, %c0_69] : memref<2x64x1xf32, #tpu.memory_space<vmem>>, vector<1x64x1xf32>
    %77 = vector.shape_cast %76 : vector<1x64x1xf32> to vector<64x1xf32>
    %78 = vector.broadcast %77 : vector<64x1xf32> to vector<64x256xf32>
    %79 = arith.mulf %75, %78 : vector<64x256xf32>
    %80 = arith.addf %71, %79 : vector<64x256xf32>
    %c0_70 = arith.constant 0 : index
    %c0_71 = arith.constant 0 : index
    %81 = vector.load %arg5[%c0_70, %c0_71] : memref<1x256xf32, #tpu.memory_space<vmem>>, vector<1x256xf32>
    %82 = vector.broadcast %81 : vector<1x256xf32> to vector<64x256xf32>
    %83 = arith.addf %80, %82 : vector<64x256xf32>
    %c0_72 = arith.constant 0 : index
    %c0_73 = arith.constant 0 : index
    %c0_74 = arith.constant 0 : index
    %84 = vector.load %arg7[%c0_72, %c0_73, %c0_74] : memref<1x64x256xf32, #tpu.memory_space<vmem>>, vector<1x64x256xf32>
    %85 = vector.shape_cast %84 : vector<1x64x256xf32> to vector<64x256xf32>
    %86 = vector.shape_cast %83 : vector<64x256xf32> to vector<1x64x256xf32>
    tpu.vector_store %arg7[%c0_72, %c0_73, %c0_74], %86 {strides = array<i32>} : memref<1x64x256xf32, #tpu.memory_space<vmem>>, vector<1x64x256xf32>,
    return
  }
  func.func @transform_0(%arg0: i32) -> (i32, i32, i32) {
    %c0_i32 = arith.constant 0 : i32
    %c0_i32_0 = arith.constant 0 : i32
    %c0_i32_1 = arith.constant 0 : i32
    return %arg0, %c0_i32, %c0_i32_0 : i32, i32, i32
  }
  func.func @transform_1(%arg0: i32) -> (i32, i32) {
    %c0_i32 = arith.constant 0 : i32
    %c0_i32_0 = arith.constant 0 : i32
    %c0_i32_1 = arith.constant 0 : i32
    return %c0_i32, %c0_i32_0 : i32, i32
  }
  func.func @transform_2(%arg0: i32) -> (i32, i32) {
    %c0_i32 = arith.constant 0 : i32
    %c0_i32_0 = arith.constant 0 : i32
    %c0_i32_1 = arith.constant 0 : i32
    return %c0_i32, %c0_i32_0 : i32, i32
  }
  func.func @transform_3(%arg0: i32) -> (i32, i32, i32) {
    %c0_i32 = arith.constant 0 : i32
    %c0_i32_0 = arith.constant 0 : i32
    %c0_i32_1 = arith.constant 0 : i32
    %c0_i32_2 = arith.constant 0 : i32
    return %c0_i32, %c0_i32_0, %c0_i32_1 : i32, i32, i32
  }
  func.func @transform_4(%arg0: i32) -> (i32, i32) {
    %c0_i32 = arith.constant 0 : i32
    %c0_i32_0 = arith.constant 0 : i32
    %c0_i32_1 = arith.constant 0 : i32
    return %c0_i32, %c0_i32_0 : i32, i32
  }
  func.func @transform_5(%arg0: i32) -> (i32, i32, i32) {
    %c0_i32 = arith.constant 0 : i32
    %c0_i32_0 = arith.constant 0 : i32
    %c0_i32_1 = arith.constant 0 : i32
    %c0_i32_2 = arith.constant 0 : i32
    return %c0_i32, %c0_i32_0, %c0_i32_1 : i32, i32, i32
  }
  func.func @transform_6(%arg0: i32) -> (i32, i32, i32) {
    %c0_i32 = arith.constant 0 : i32
    %c0_i32_0 = arith.constant 0 : i32
    %c0_i32_1 = arith.constant 0 : i32
    return %arg0, %c0_i32, %c0_i32_0 : i32, i32, i32
  }
}

</mosaic_0001>

<bundles_post_ra>
// kernel: model_forward.1
= control target key start
LH: loop header
LB: loop body
LE: loop exit
PB: predicated region body
PF: predicated region fallthrough
CT: control target
= control target key end

     0   :  { %11 = vsyncpa [#allocation4], 0  ;;  %s4400_s0 = inlined_call_operand.vmem [shape: f32[2,64,256], index: 0, kind: input, shape index: {}]   ;;  %s4401_s1 = inlined_call_operand.hbm [shape: f32[256,256], index: 1, kind: input, shape index: {}]   ;;  %s4402_s2 = inlined_call_operand.hbm [shape: f32[1,256], index: 2, kind: input, shape index: {}]   ;;  %s4403_s3 = inlined_call_operand.hbm [shape: f32[9,256,256], index: 3, kind: input, shape index: {}]   ;;  %s4404_s4 = inlined_call_operand.hbm [shape: f32[1,256], index: 4, kind: input, shape index: {}]   ;;  %s4405_s5 = inlined_call_operand.vmem [shape: f32[2,64,1], index: 5, kind: input, shape index: {}]   ;;  %s4406_s6 = inlined_call_operand.vmem [shape: f32[2,64,256], index: 6, kind: output, shape index: {}]  }
   0x1   :  { %12 = vsyncpa [#allocation6], 0 }
   0x2   :  { %13 = vsyncpa [#allocation9], 0  ;;  %s3342_s21 = smov 0  }
   0x3 LB: > { %s3299_s22 = smov [#allocation5]   ;;  %s3348_s24 = sadd.s32 4294967295, %s3297_s21   ;;  %s3297_s21 = sphi %s3342_s21, %s19_s21  }
   0x4   : > { %s207_s23 = sshll.u32 %s3299_s22, 4  ;;  %p3084_p0 = scmp.ge.s32.totalorder %s3297_s21, 1  ;;  %s208_s23 = int_to_ptr.vmem [resolvable:$true] %s207_s23 }
   0x5   : > { %p181_p1 = scmp.lt.s32.totalorder %s3297_s21, 3  ;;  %p3140_p2 = scmp.eq.s32.totalorder %s3348_s24, 0 }
   0x6   : > { %s3300_s26 = smov [#allocation3]   ;;  %s3301_s29 = smov [#allocation7]  }
   0x7   : > { %p3353_p3 = pnand %p3084_p0, %p181_p1  ;;  %s193_s27 = sshll.u32 %s3300_s26, 4  ;;  %s3359_s27 = int_to_ptr.vmem [resolvable:$true] %s193_s27 }
   0x8   : > { %s217_s30 = sshll.u32 %s3301_s29, 4  ;;  %s3302_s7 = smov [#allocation8]   ;;  %s3367_s30 = int_to_ptr.vmem [resolvable:$true] %s217_s30 }
   0x9   : > { %p3127_p4 = pneg %p3353_p3  ;;  %s3369_s8 = sshll.u32 %s3302_s7, 4  ;;  %s232_s8 = int_to_ptr.vmem [resolvable:$true] %s3369_s8 }
   0xa   : > { %s3186_s9 = scalar_lea.vmem %s208_s23, 32  ;;  %p3194_p10 = scmp.lt.s32.totalorder %s208_s23, %s208_s23 }
   0xb   : > { %p3363_p5 = pnand %p3140_p2, %p3127_p4  ;;  %p3187_p7 = scmp.ne.s32.totalorder %s208_s23, %s3186_s9 }
   0xc   : > { %p3195_p11 = scmp.lt.s32.totalorder %s3186_s9, %s3186_s9 }
   0xd   : > { %p3177_p6 = pneg %p3363_p5 }
   0xe   : > { %p3196_p12 = por %p3195_p11, %p3194_p10 }
   0xf   : > { %p3189_p8 = pnand %p3187_p7, %p3177_p6 }
  0x11   : > { %p3190_p9 = pneg %p3189_p8 }
  0x13   : > { %p3197_p13 = pnand %p3196_p12, %p3190_p9 }
  0x15   : > { %3200 = shalt.err (!%p3197_p13)
}
  0x16   : > { %3133 = dma.hbm_to_vmem [thread:$0]  (!%p3363_p5), %s4402_s2, 32, %s208_s23, [#allocation6]  }
  0x17   : > { %s3212_s12 = scalar_lea.vmem %s3359_s27, 8192  ;;  %p3220_p7 = scmp.lt.s32.totalorder %s3359_s27, %s3359_s27 }
  0x18   : > { %p3213_p0 = scmp.ne.s32.totalorder %s3359_s27, %s3212_s12  ;;  %p3221_p8 = scmp.lt.s32.totalorder %s3212_s12, %s3212_s12 }
  0x1a   : > { %p3215_p1 = pnand %p3213_p0, %p3177_p6  ;;  %p3222_p9 = por %p3221_p8, %p3220_p7 }
  0x1c   : > { %p3216_p4 = pneg %p3215_p1 }
  0x1e   : > { %p3223_p10 = pnand %p3222_p9, %p3216_p4 }
  0x20   : > { %3226 = shalt.err (!%p3223_p10)
}
  0x21   : > { %s3303_s13 = smov 256   ;;  %s3304_s14 = smov 16  }
  0x22   : > { %3130 = dma.hbm_to_vmem [thread:$0]  (!%p3363_p5), %s4401_s1, 8192, %s3359_s27, [#allocation4], %s3303_s13, %s3303_s13, %s3304_s14  }
  0x23   : > { %s3238_s17 = scalar_lea.vmem %s3367_s30, 73728  ;;  %p3246_p0 = scmp.lt.s32.totalorder %s3367_s30, %s3367_s30 }
  0x24   : > { %p3239_p11 = scmp.ne.s32.totalorder %s3367_s30, %s3238_s17  ;;  %p3247_p1 = scmp.lt.s32.totalorder %s3238_s17, %s3238_s17 }
  0x26   : > { %p3241_p12 = pnand %p3239_p11, %p3177_p6  ;;  %p3248_p4 = por %p3247_p1, %p3246_p0 }
  0x28   : > { %p3242_p13 = pneg %p3241_p12 }
  0x2a   : > { %p3249_p7 = pnand %p3248_p4, %p3242_p13 }
  0x2c   : > { %3252 = shalt.err (!%p3249_p7)
}
  0x2d   : > { %3136 = dma.hbm_to_vmem [thread:$0]  (!%p3363_p5), %s4403_s3, 73728, %s3367_s30, [#allocation6], %s3303_s13, %s3303_s13, %s3304_s14  }
  0x2e   : > { %s3264_s20 = scalar_lea.vmem %s232_s8, 32  ;;  %p3272_p11 = scmp.lt.s32.totalorder %s232_s8, %s232_s8 }
  0x2f   : > { %p3265_p8 = scmp.ne.s32.totalorder %s232_s8, %s3264_s20  ;;  %p3273_p12 = scmp.lt.s32.totalorder %s3264_s20, %s3264_s20 }
  0x31   : > { %p3267_p9 = pnand %p3265_p8, %p3177_p6  ;;  %p3274_p13 = por %p3273_p12, %p3272_p11 }
  0x33   : > { %p3268_p10 = pneg %p3267_p9 }
  0x35   : > { %p3275_p0 = pnand %p3274_p13, %p3268_p10 }
  0x37   : > { %3278 = shalt.err (!%p3275_p0)
}
  0x38   : > { %3139 = dma.hbm_to_vmem [thread:$0]  (!%p3363_p5), %s4404_s4, 32, %s232_s8, [#allocation9]  }
  0x39   : > { %255 = sbr.rel (%p3353_p3) target bundleno = 822 (0x336), region = 44 }
  0x3e   : > { %3284 = dma.done.wait (%p3140_p2), [#allocation4], 8192  }
  0x3f   : > { %3286 = vsyncadd (%p3140_p2), [#allocation4], 4294959104 }
  0x40   : > { %3288 = dma.done.wait (%p3140_p2), [#allocation6], 73760  }
  0x41   : > { %3290 = vsyncadd (%p3140_p2), [#allocation6], 4294893536 }
  0x42   : > { %3292 = dma.done.wait (%p3140_p2), [#allocation9], 32  }
  0x43   : > { %3294 = vsyncadd (%p3140_p2), [#allocation9], 4294967264  ;;  %v354_v0 = vld [vmem:[#allocation3 + $0xf8] sm:$0xff]  ;;  %v353_v1 = vld [vmem:[#allocation3 + $0xf0] sm:$0xff]  ;;  %v3305_v4 = vmov 0.0   ;;  %p297_p2 = scmp.lt.s32.totalorder %s3348_s24, 1 }
  0x44   : > { %v352_v2 = vld [vmem:[#allocation3 + $0xe8] sm:$0xff]  ;;  %399 = vmatprep.subr.mxu0 %v354_v0  ;;  %v351_v3 = vld [vmem:[#allocation3 + $0xe0] sm:$0xff]  ;;  %515 = vst [vmem:[#allocation2 + $0x28] sm:$0xff] %v3305_v4  ;;  %512 = vst [vmem:[#allocation2 + $0x90] sm:$0xff] %v3305_v4  ;;  %vm636_vm0 = vcmask 1040384   ;;  %vm1177_vm1 = vcmask 1046528  }
  0x45   : > { %513 = vst [vmem:[#allocation2] sm:$0xff] %v3305_v4  ;;  %514 = vst [vmem:[#allocation2 + $0x10] sm:$0xff] %v3305_v4  ;;  %400 = vmatpush1.msra.mxu0 %v353_v1  ;;  %v350_v5 = vld [vmem:[#allocation3 + $0xd8] sm:$0xff]  ;;  %v349_v6 = vld [vmem:[#allocation3 + $0xd0] sm:$0xff]  ;;  %s4514_s24 = smov (!%p297_p2, %s3348_s24), 1 }
  0x46   : > { %516 = vst [vmem:[#allocation2 + $0x40] sm:$0xff] %v3305_v4  ;;  %517 = vst [vmem:[#allocation2 + $0xa8] sm:$0xff] %v3305_v4  ;;  %401 = vmatprep.subr.mxu0 %v352_v2  ;;  %v348_v7 = vld [vmem:[#allocation3 + $0xc8] sm:$0xff]  ;;  %v347_v8 = vld [vmem:[#allocation3 + $0xc0] sm:$0xff]  ;;  %s3109_s25 = sshll.u32 %s4514_s24, 7 }
  0x47   : > { %518 = vst [vmem:[#allocation2 + $0x20] sm:$0xff] %v3305_v4  ;;  %519 = vst [vmem:[#allocation2 + $0x58] sm:$0xff] %v3305_v4  ;;  %402 = vmatpush1.msra.mxu0 %v351_v3  ;;  %v346_v9 = vld [vmem:[#allocation3 + $0xb8] sm:$0xff]  ;;  %v345_v10 = vld [vmem:[#allocation3 + $0xb0] sm:$0xff]  ;;  %s3448_s28 = scalar_lea.vmem %s4400_s0, %s3109_s25  ;;  %s4293_s18 = scalar_lea.vmem %s4406_s6, %s3109_s25 }
  0x48   : > { %403 = vmatprep.subr.mxu0 %v350_v5  ;;  %v344_v11 = vld [vmem:[#allocation3 + $0xa8] sm:$0xff]  ;;  %v343_v12 = vld [vmem:[#allocation3 + $0xa0] sm:$0xff]  ;;  %v342_v13 = vld [vmem:[#allocation3 + $0x98] sm:$0xff] }
  0x49   : > { %404 = vmatpush1.msra.mxu0 %v349_v6  ;;  %v341_v14 = vld [vmem:[#allocation3 + $0x90] sm:$0xff]  ;;  %v340_v15 = vld [vmem:[#allocation3 + $0x88] sm:$0xff]  ;;  %v339_v16 = vld [vmem:[#allocation3 + $0x80] sm:$0xff] }
  0x4a   : > { %405 = vmatprep.subr.mxu0 %v348_v7  ;;  %v338_v17 = vld [vmem:[#allocation3 + $0x78] sm:$0xff]  ;;  %v337_v18 = vld [vmem:[#allocation3 + $0x70] sm:$0xff]  ;;  %v336_v19 = vld [vmem:[#allocation3 + $0x68] sm:$0xff] }
  0x4b   : > { %406 = vmatpush1.msra.mxu0 %v347_v8  ;;  %v335_v20 = vld [vmem:[#allocation3 + $0x60] sm:$0xff]  ;;  %v334_v21 = vld [vmem:[#allocation3 + $0x58] sm:$0xff]  ;;  %v333_v22 = vld [vmem:[#allocation3 + $0x50] sm:$0xff] }
  0x4c   : > { %407 = vmatprep.subr.mxu0 %v346_v9  ;;  %v332_v23 = vld [vmem:[#allocation3 + $0x48] sm:$0xff]  ;;  %v331_v24 = vld [vmem:[#allocation3 + $0x40] sm:$0xff]  ;;  %v330_v26 = vld [vmem:[#allocation3 + $0x38] sm:$0xff] }
  0x4d   : > { %408 = vmatpush1.msra.mxu0 %v345_v10  ;;  %v308_v25 = vld [vmem:[%s3448_s28 + $0x8] sm:$0xff]  ;;  %v329_v27 = vld [vmem:[#allocation3 + $0x30] sm:$0xff]  ;;  %v327_v29 = vld [vmem:[#allocation3 + $0x20] sm:$0xff] }
  0x4e   : > { %409 = vmatprep.subr.mxu0 %v344_v11  ;;  %463 = vmatprep.mubr.f32.mxu0 %v308_v25  ;;  %v328_v28 = vld [vmem:[#allocation3 + $0x28] sm:$0xff]  ;;  %v326_v30 = vld [vmem:[#allocation3 + $0x18] sm:$0xff]  ;;  %v325_v31 = vld [vmem:[#allocation3 + $0x10] sm:$0xff] }
  0x4f   : > { %410 = vmatpush1.msra.mxu0 %v343_v12  ;;  %v585_v32 = vld [vmem:[#allocation7 + $0xf8] sm:$0xff]  ;;  %v324_v33 = vld [vmem:[#allocation3 + $0x8] sm:$0xff]  ;;  %v584_v34 = vld [vmem:[#allocation7 + $0xf0] sm:$0xff] }
  0x50   : > { %411 = vmatprep.subr.mxu0 %v342_v13  ;;  %687 = vmatprep.subr.mxu1 %v585_v32  ;;  %v583_v35 = vld [vmem:[#allocation7 + $0xe8] sm:$0xff]  ;;  %v323_v36 = vld [vmem:[#allocation3] sm:$0xff]  ;;  %v386_v38 = vld [vmem:[#allocation3 + $0x1f8] sm:$0xff] }
  0x51   : > { %412 = vmatpush1.msra.mxu0 %v341_v14  ;;  %688 = vmatpush1.msra.mxu1 %v584_v34  ;;  %v582_v37 = vld [vmem:[#allocation7 + $0xe0] sm:$0xff]  ;;  %v581_v39 = vld [vmem:[#allocation7 + $0xd8] sm:$0xff]  ;;  %v580_v40 = vld [vmem:[#allocation7 + $0xd0] sm:$0xff] }
  0x52   : > { %413 = vmatprep.subr.mxu0 %v340_v15  ;;  %689 = vmatprep.subr.mxu1 %v583_v35  ;;  %v385_v41 = vld [vmem:[#allocation3 + $0x1f0] sm:$0xff]  ;;  %v384_v43 = vld [vmem:[#allocation3 + $0x1e8] sm:$0xff]  ;;  %v383_v45 = vld [vmem:[#allocation3 + $0x1e0] sm:$0xff] }
  0x53   : > { %414 = vmatpush1.msra.mxu0 %v339_v16  ;;  %690 = vmatpush1.msra.mxu1 %v582_v37  ;;  %v579_v42 = vld [vmem:[#allocation7 + $0xc8] sm:$0xff]  ;;  %v578_v44 = vld [vmem:[#allocation7 + $0xc0] sm:$0xff]  ;;  %v577_v46 = vld [vmem:[#allocation7 + $0xb8] sm:$0xff] }
  0x54   : > { %415 = vmatprep.subr.mxu0 %v338_v17  ;;  %691 = vmatprep.subr.mxu1 %v581_v39  ;;  %v382_v47 = vld [vmem:[#allocation3 + $0x1d8] sm:$0xff]  ;;  %v381_v49 = vld [vmem:[#allocation3 + $0x1d0] sm:$0xff]  ;;  %v380_v51 = vld [vmem:[#allocation3 + $0x1c8] sm:$0xff] }
  0x55   : > { %416 = vmatpush1.msra.mxu0 %v337_v18  ;;  %692 = vmatpush1.msra.mxu1 %v580_v40  ;;  %v576_v48 = vld [vmem:[#allocation7 + $0xb0] sm:$0xff]  ;;  %v575_v50 = vld [vmem:[#allocation7 + $0xa8] sm:$0xff]  ;;  %v574_v52 = vld [vmem:[#allocation7 + $0xa0] sm:$0xff] }
  0x56   : > { %417 = vmatprep.subr.mxu0 %v336_v19  ;;  %693 = vmatprep.subr.mxu1 %v579_v42  ;;  %v379_v53 = vld [vmem:[#allocation3 + $0x1c0] sm:$0xff]  ;;  %v378_v55 = vld [vmem:[#allocation3 + $0x1b8] sm:$0xff]  ;;  %v377_v57 = vld [vmem:[#allocation3 + $0x1b0] sm:$0xff] }
  0x57   : > { %418 = vmatpush1.msra.mxu0 %v335_v20  ;;  %694 = vmatpush1.msra.mxu1 %v578_v44  ;;  %v573_v54 = vld [vmem:[#allocation7 + $0x98] sm:$0xff]  ;;  %v572_v56 = vld [vmem:[#allocation7 + $0x90] sm:$0xff]  ;;  %v571_v58 = vld [vmem:[#allocation7 + $0x88] sm:$0xff] }
  0x58   : > { %419 = vmatprep.subr.mxu0 %v334_v21  ;;  %695 = vmatprep.subr.mxu1 %v577_v46  ;;  %v376_v59 = vld [vmem:[#allocation3 + $0x1a8] sm:$0xff]  ;;  %v375_v61 = vld [vmem:[#allocation3 + $0x1a0] sm:$0xff]  ;;  %v374_v63 = vld [vmem:[#allocation3 + $0x198] sm:$0xff] }
  0x59   : > { %420 = vmatpush1.msra.mxu0 %v333_v22  ;;  %696 = vmatpush1.msra.mxu1 %v576_v48  ;;  %v570_v60 = vld [vmem:[#allocation7 + $0x80] sm:$0xff]  ;;  %v569_v62 = vld [vmem:[#allocation7 + $0x78] sm:$0xff]  ;;  %v568_v0 = vld [vmem:[#allocation7 + $0x70] sm:$0xff] }
  0x5a   : > { %421 = vmatprep.subr.mxu0 %v332_v23  ;;  %697 = vmatprep.subr.mxu1 %v575_v50  ;;  %v373_v1 = vld [vmem:[#allocation3 + $0x190] sm:$0xff]  ;;  %v372_v3 = vld [vmem:[#allocation3 + $0x188] sm:$0xff]  ;;  %v371_v6 = vld [vmem:[#allocation3 + $0x180] sm:$0xff] }
  0x5b   : > { %422 = vmatpush1.msra.mxu0 %v331_v24  ;;  %698 = vmatpush1.msra.mxu1 %v574_v52  ;;  %v567_v2 = vld [vmem:[#allocation7 + $0x68] sm:$0xff]  ;;  %v566_v5 = vld [vmem:[#allocation7 + $0x60] sm:$0xff]  ;;  %v565_v7 = vld [vmem:[#allocation7 + $0x58] sm:$0xff] }
  0x5c   : > { %423 = vmatprep.subr.mxu0 %v330_v26  ;;  %699 = vmatprep.subr.mxu1 %v573_v54  ;;  %v370_v8 = vld [vmem:[#allocation3 + $0x178] sm:$0xff]  ;;  %v369_v10 = vld [vmem:[#allocation3 + $0x170] sm:$0xff]  ;;  %v368_v12 = vld [vmem:[#allocation3 + $0x168] sm:$0xff] }
  0x5d   : > { %424 = vmatpush1.msra.mxu0 %v329_v27  ;;  %700 = vmatpush1.msra.mxu1 %v572_v56  ;;  %v564_v9 = vld [vmem:[#allocation7 + $0x50] sm:$0xff]  ;;  %v563_v11 = vld [vmem:[#allocation7 + $0x48] sm:$0xff]  ;;  %v562_v13 = vld [vmem:[#allocation7 + $0x40] sm:$0xff] }
  0x5e   : > { %425 = vmatprep.subr.mxu0 %v328_v28  ;;  %701 = vmatprep.subr.mxu1 %v571_v58  ;;  %v367_v14 = vld [vmem:[#allocation3 + $0x160] sm:$0xff]  ;;  %v366_v16 = vld [vmem:[#allocation3 + $0x158] sm:$0xff]  ;;  %v365_v18 = vld [vmem:[#allocation3 + $0x150] sm:$0xff] }
  0x5f   : > { %426 = vmatpush1.msra.mxu0 %v327_v29  ;;  %702 = vmatpush1.msra.mxu1 %v570_v60  ;;  %v561_v15 = vld [vmem:[#allocation7 + $0x38] sm:$0xff]  ;;  %v560_v17 = vld [vmem:[#allocation7 + $0x30] sm:$0xff]  ;;  %v559_v19 = vld [vmem:[#allocation7 + $0x28] sm:$0xff] }
  0x60   : > { %427 = vmatprep.subr.mxu0 %v326_v30  ;;  %703 = vmatprep.subr.mxu1 %v569_v62  ;;  %v364_v20 = vld [vmem:[#allocation3 + $0x148] sm:$0xff]  ;;  %v363_v22 = vld [vmem:[#allocation3 + $0x140] sm:$0xff]  ;;  %v362_v24 = vld [vmem:[#allocation3 + $0x138] sm:$0xff] }
  0x61   : > { %428 = vmatpush1.msra.mxu0 %v325_v31  ;;  %704 = vmatpush1.msra.mxu1 %v568_v0  ;;  %v558_v21 = vld [vmem:[#allocation7 + $0x20] sm:$0xff]  ;;  %v557_v23 = vld [vmem:[#allocation7 + $0x18] sm:$0xff]  ;;  %v556_v25 = vld [vmem:[#allocation7 + $0x10] sm:$0xff] }
  0x62   : > { %429 = vmatprep.subr.mxu0 %v324_v33  ;;  %705 = vmatprep.subr.mxu1 %v567_v2  ;;  %v361_v26 = vld [vmem:[#allocation3 + $0x130] sm:$0xff]  ;;  %v360_v28 = vld [vmem:[#allocation3 + $0x128] sm:$0xff]  ;;  %v359_v30 = vld [vmem:[#allocation3 + $0x120] sm:$0xff] }
  0x63   : > { %430 = vmatpush1.msra.mxu0 %v323_v36  ;;  %706 = vmatpush1.msra.mxu1 %v566_v5  ;;  %v555_v27 = vld [vmem:[#allocation7 + $0x8] sm:$0xff]  ;;  %v554_v29 = vld [vmem:[#allocation7] sm:$0xff]  ;;  %v617_v31 = vld [vmem:[#allocation7 + $0x1f8] sm:$0xff] }
  0x64   : > { %431 = vmatprep.subr.mxu0 %v386_v38  ;;  %707 = vmatprep.subr.mxu1 %v565_v7  ;;  %v358_v32 = vld [vmem:[#allocation3 + $0x118] sm:$0xff]  ;;  %v357_v34 = vld [vmem:[#allocation3 + $0x110] sm:$0xff]  ;;  %v356_v36 = vld [vmem:[#allocation3 + $0x108] sm:$0xff] }
  0x65   : > { %432 = vmatpush2.msra.mxu0 %v385_v41  ;;  %708 = vmatpush1.msra.mxu1 %v564_v9  ;;  %v616_v33 = vld [vmem:[#allocation7 + $0x1f0] sm:$0xff]  ;;  %v615_v35 = vld [vmem:[#allocation7 + $0x1e8] sm:$0xff]  ;;  %v614_v37 = vld [vmem:[#allocation7 + $0x1e0] sm:$0xff] }
  0x66   : > { %433 = vmatprep.subr.mxu0 %v384_v43  ;;  %709 = vmatprep.subr.mxu1 %v563_v11  ;;  %v355_v38 = vld [vmem:[#allocation3 + $0x100] sm:$0xff]  ;;  %v310_v42 = vld [vmem:[%s3448_s28 + $0x18] sm:$0xff]  ;;  %v912_v44 = vld [vmem:[#allocation7 + $0x2e8] sm:$0xff] }
  0x67   : > { %434 = vmatpush2.msra.mxu0 %v383_v45  ;;  %710 = vmatpush1.msra.mxu1 %v562_v13  ;;  %v613_v39 = vld [vmem:[#allocation7 + $0x1d8] sm:$0xff]  ;;  %v913_v43 = vld [vmem:[#allocation7 + $0x2f0] sm:$0xff]  ;;  %v911_v46 = vld [vmem:[#allocation7 + $0x2e0] sm:$0xff] }
  0x68   : > { %435 = vmatprep.subr.mxu0 %v382_v47  ;;  %711 = vmatprep.subr.mxu1 %v561_v15  ;;  %v307_v40 = vld [vmem:[%s3448_s28] sm:$0xff]  ;;  %v612_v45 = vld [vmem:[#allocation7 + $0x1d0] sm:$0xff]  ;;  %v611_v47 = vld [vmem:[#allocation7 + $0x1c8] sm:$0xff] }
  0x69   : > { %436 = vmatpush2.msra.mxu0 %v381_v49  ;;  %712 = vmatpush1.msra.mxu1 %v560_v17  ;;  %v914_v41 = vld [vmem:[#allocation7 + $0x2f8] sm:$0xff]  ;;  %v309_v48 = vld [vmem:[%s3448_s28 + $0x10] sm:$0xff]  ;;  %v312_v50 = vld [vmem:[%s3448_s28 + $0x28] sm:$0xff] }
  0x6a   : > { %437 = vmatprep.subr.mxu0 %v380_v51  ;;  %713 = vmatprep.subr.mxu1 %v559_v19  ;;  %v910_v49 = vld [vmem:[#allocation7 + $0x2d8] sm:$0xff]  ;;  %v909_v51 = vld [vmem:[#allocation7 + $0x2d0] sm:$0xff]  ;;  %v908_v52 = vld [vmem:[#allocation7 + $0x2c8] sm:$0xff] }
  0x6b   : > { %438 = vmatpush2.msra.mxu0 %v379_v53  ;;  %714 = vmatpush1.msra.mxu1 %v558_v21  ;;  %v610_v53 = vld [vmem:[#allocation7 + $0x1c0] sm:$0xff]  ;;  %v314_v58 = vld [vmem:[%s3448_s28 + $0x38] sm:$0xff]  ;;  %v904_v60 = vld [vmem:[#allocation7 + $0x2a8] sm:$0xff] }
  0x6c   : > { %439 = vmatprep.subr.mxu0 %v378_v55  ;;  %715 = vmatprep.subr.mxu1 %v557_v23  ;;  %v907_v54 = vld [vmem:[#allocation7 + $0x2c0] sm:$0xff]  ;;  %v609_v55 = vld [vmem:[#allocation7 + $0x1b8] sm:$0xff]  ;;  %v313_v0 = vld [vmem:[%s3448_s28 + $0x30] sm:$0xff] }
  0x6d   : > { %440 = vmatpush2.msra.mxu0 %v377_v57  ;;  %716 = vmatpush1.msra.mxu1 %v556_v25  ;;  %v311_v56 = vld [vmem:[%s3448_s28 + $0x20] sm:$0xff]  ;;  %v316_v2 = vld [vmem:[%s3448_s28 + $0x48] sm:$0xff]  ;;  %v318_v11 = vld [vmem:[%s3448_s28 + $0x58] sm:$0xff] }
  0x6e   : > { %441 = vmatprep.subr.mxu0 %v376_v59  ;;  %717 = vmatprep.subr.mxu1 %v555_v27  ;;  %v906_v57 = vld [vmem:[#allocation7 + $0x2b8] sm:$0xff]  ;;  %v905_v59 = vld [vmem:[#allocation7 + $0x2b0] sm:$0xff]  ;;  %v903_v62 = vld [vmem:[#allocation7 + $0x2a0] sm:$0xff] }
  0x6f   : > { %442 = vmatpush2.msra.mxu0 %v375_v61  ;;  %718 = vmatpush1.msra.mxu1 %v554_v29  ;;  %v608_v61 = vld [vmem:[#allocation7 + $0x1b0] sm:$0xff]  ;;  %v900_v5 = vld [vmem:[#allocation7 + $0x288] sm:$0xff]  ;;  %v899_v7 = vld [vmem:[#allocation7 + $0x280] sm:$0xff] }
  0x70   : > { %443 = vmatprep.subr.mxu0 %v374_v63  ;;  %719 = vmatprep.subr.mxu1 %v617_v31  ;;  %v607_v63 = vld [vmem:[#allocation7 + $0x1a8] sm:$0xff]  ;;  %v315_v9 = vld [vmem:[%s3448_s28 + $0x40] sm:$0xff]  ;;  %v322_v27 = vld [vmem:[%s3448_s28 + $0x78] sm:$0xff] }
  0x71   : > { %444 = vmatpush2.msra.mxu0 %v373_v1  ;;  %720 = vmatpush2.msra.mxu1 %v616_v33  ;;  %v902_v1 = vld [vmem:[#allocation7 + $0x298] sm:$0xff]  ;;  %v896_v13 = vld [vmem:[#allocation7 + $0x268] sm:$0xff]  ;;  %v895_v15 = vld [vmem:[#allocation7 + $0x260] sm:$0xff] }
  0x72   : > { %445 = vmatprep.subr.mxu0 %v372_v3  ;;  %721 = vmatprep.subr.mxu1 %v615_v35  ;;  %v901_v3 = vld [vmem:[#allocation7 + $0x290] sm:$0xff]  ;;  %v320_v19 = vld [vmem:[%s3448_s28 + $0x68] sm:$0xff]  ;;  %v319_v25 = vld [vmem:[%s3448_s28 + $0x60] sm:$0xff] }
  0x73   : > { %446 = vmatpush2.msra.mxu0 %v371_v6  ;;  %722 = vmatpush2.msra.mxu1 %v614_v37  ;;  %v606_v6 = vld [vmem:[#allocation7 + $0x1a0] sm:$0xff]  ;;  %v317_v17 = vld [vmem:[%s3448_s28 + $0x50] sm:$0xff] }
  0x74   : > { %447 = vmatprep.subr.mxu0 %v370_v8  ;;  %723 = vmatprep.subr.mxu1 %v613_v39  ;;  %v605_v8 = vld [vmem:[#allocation7 + $0x198] sm:$0xff]  ;;  %v892_v21 = vld [vmem:[#allocation7 + $0x248] sm:$0xff]  ;;  %v891_v23 = vld [vmem:[#allocation7 + $0x240] sm:$0xff] }
  0x75   : > { %448 = vmatpush2.msra.mxu0 %v369_v10  ;;  %724 = vmatpush2.msra.mxu1 %v612_v45  ;;  %v898_v10 = vld [vmem:[#allocation7 + $0x278] sm:$0xff]  ;;  %v888_v29 = vld [vmem:[#allocation7 + $0x228] sm:$0xff]  ;;  %v887_v31 = vld [vmem:[#allocation7 + $0x220] sm:$0xff] }
  0x76   : > { %449 = vmatprep.subr.mxu0 %v368_v12  ;;  %725 = vmatprep.subr.mxu1 %v611_v47  ;;  %v897_v12 = vld [vmem:[#allocation7 + $0x270] sm:$0xff]  ;;  %v884_v37 = vld [vmem:[#allocation7 + $0x208] sm:$0xff]  ;;  %v883_v39 = vld [vmem:[#allocation7 + $0x200] sm:$0xff] }
  0x77   : > { %450 = vmatpush2.msra.mxu0 %v367_v14  ;;  %726 = vmatpush2.msra.mxu1 %v610_v53  ;;  %v604_v14 = vld [vmem:[#allocation7 + $0x190] sm:$0xff]  ;;  %v944_v45 = vld [vmem:[#allocation7 + $0x3e8] sm:$0xff]  ;;  %v943_v47 = vld [vmem:[#allocation7 + $0x3e0] sm:$0xff] }
  0x78   : > { %451 = vmatprep.subr.mxu0 %v366_v16  ;;  %727 = vmatprep.subr.mxu1 %v609_v55  ;;  %v603_v16 = vld [vmem:[#allocation7 + $0x188] sm:$0xff]  ;;  %v885_v35 = vld [vmem:[#allocation7 + $0x210] sm:$0xff]  ;;  %v590_v53 = vld [vmem:[#allocation7 + $0x120] sm:$0xff] }
  0x79   : > { %452 = vmatpush2.msra.mxu0 %v365_v18  ;;  %728 = vmatpush2.msra.mxu1 %v608_v61  ;;  %v894_v18 = vld [vmem:[#allocation7 + $0x258] sm:$0xff]  ;;  %v321_v33 = vld [vmem:[%s3448_s28 + $0x70] sm:$0xff] }
  0x7a   : > { %453 = vmatprep.subr.mxu0 %v364_v20  ;;  %729 = vmatprep.subr.mxu1 %v607_v63  ;;  %v893_v20 = vld [vmem:[#allocation7 + $0x250] sm:$0xff]  ;;  %v940_v55 = vld [vmem:[#allocation7 + $0x3c8] sm:$0xff]  ;;  %v938_v61 = vld [vmem:[#allocation7 + $0x3b8] sm:$0xff] }
  0x7b   : > { %454 = vmatpush2.msra.mxu0 %v363_v22  ;;  %730 = vmatpush2.msra.mxu1 %v606_v6  ;;  %v602_v22 = vld [vmem:[#allocation7 + $0x180] sm:$0xff]  ;;  %v934_v6 = vld [vmem:[#allocation7 + $0x398] sm:$0xff] }
  0x7c   : > { %455 = vmatprep.subr.mxu0 %v362_v24  ;;  %731 = vmatprep.subr.mxu1 %v605_v8  ;;  %v601_v24 = vld [vmem:[#allocation7 + $0x178] sm:$0xff]  ;;  %v933_v8 = vld [vmem:[#allocation7 + $0x390] sm:$0xff] }
  0x7d   : > { %456 = vmatpush2.msra.mxu0 %v361_v26  ;;  %732 = vmatpush2.msra.mxu1 %v604_v14  ;;  %v890_v26 = vld [vmem:[#allocation7 + $0x238] sm:$0xff] }
  0x7e   : > { %457 = vmatprep.subr.mxu0 %v360_v28  ;;  %733 = vmatprep.subr.mxu1 %v603_v16  ;;  %v889_v28 = vld [vmem:[#allocation7 + $0x230] sm:$0xff]  ;;  %v930_v14 = vld [vmem:[#allocation7 + $0x378] sm:$0xff] }
  0x7f   : > { %458 = vmatpush2.msra.mxu0 %v359_v30  ;;  %734 = vmatpush2.msra.mxu1 %v602_v22  ;;  %v600_v30 = vld [vmem:[#allocation7 + $0x170] sm:$0xff]  ;;  %v926_v22 = vld [vmem:[#allocation7 + $0x358] sm:$0xff] }
  0x80   : > { %459 = vmatprep.subr.mxu0 %v358_v32  ;;  %735 = vmatprep.subr.mxu1 %v601_v24  ;;  %v599_v32 = vld [vmem:[#allocation7 + $0x168] sm:$0xff]  ;;  %v929_v16 = vld [vmem:[#allocation7 + $0x370] sm:$0xff] }
  0x81   : > { %460 = vmatpush2.msra.mxu0 %v357_v34  ;;  %v886_v34 = vld [vmem:[#allocation7 + $0x218] sm:$0xff]  ;;  %736 = vmatpush2.msra.mxu1 %v600_v30  ;;  %v925_v24 = vld [vmem:[#allocation7 + $0x350] sm:$0xff] }
  0x82   : > { %461 = vmatprep.subr.mxu0 %v356_v36  ;;  %v598_v36 = vld [vmem:[#allocation7 + $0x160] sm:$0xff]  ;;  %737 = vmatprep.subr.mxu1 %v599_v32  ;;  %v922_v30 = vld [vmem:[#allocation7 + $0x338] sm:$0xff]  ;;  %v921_v32 = vld [vmem:[#allocation7 + $0x330] sm:$0xff] }
  0x83   : > { %462 = vmatpush2.msra.mxu0 %v355_v38  ;;  %v597_v38 = vld [vmem:[#allocation7 + $0x158] sm:$0xff]  ;;  %738 = vmatpush2.msra.mxu1 %v598_v36  ;;  %v919_v36 = vld [vmem:[#allocation7 + $0x320] sm:$0xff] }
  0x84   : > { %464 = vmatmul.mubr.f32.vlgmr.msra.gmra.mxu0 %v307_v40  ;;  %947 = vmatprep.subr.mxu0 %v914_v41  ;;  %v596_v40 = vld [vmem:[#allocation7 + $0x150] sm:$0xff]  ;;  %v946_v41 = vld [vmem:[#allocation7 + $0x3f8] sm:$0xff] }
  0x85   : > { %469 = vmatprep.mubr.f32.mxu0 %v310_v42  ;;  %948 = vmatpush1.msra.mxu0 %v913_v43  ;;  %v595_v42 = vld [vmem:[#allocation7 + $0x148] sm:$0xff]  ;;  %v945_v43 = vld [vmem:[#allocation7 + $0x3f0] sm:$0xff] }
  0x86   : > { %949 = vmatprep.subr.mxu0 %v912_v44  ;;  %739 = vmatprep.subr.mxu1 %v597_v38  ;;  %v594_v44 = vld [vmem:[#allocation7 + $0x140] sm:$0xff]  ;;  %v918_v38 = vld [vmem:[#allocation7 + $0x318] sm:$0xff] }
  0x87   : > { %950 = vmatpush1.msra.mxu0 %v911_v46  ;;  %740 = vmatpush2.msra.mxu1 %v596_v40  ;;  %v593_v46 = vld [vmem:[#allocation7 + $0x138] sm:$0xff]  ;;  %v917_v40 = vld [vmem:[#allocation7 + $0x310] sm:$0xff] }
  0x88   : > { %470 = vmatmul.mubr.f32.gmra.mxu0 %v309_v48  ;;  %951 = vmatprep.subr.mxu0 %v910_v49  ;;  %v592_v48 = vld [vmem:[#allocation7 + $0x130] sm:$0xff]  ;;  %v942_v49 = vld [vmem:[#allocation7 + $0x3d8] sm:$0xff] }
  0x89   : > { %475 = vmatprep.mubr.f32.mxu0 %v312_v50  ;;  %952 = vmatpush1.msra.mxu0 %v909_v51  ;;  %v591_v50 = vld [vmem:[#allocation7 + $0x128] sm:$0xff]  ;;  %v537_v51 = vld [vmem:[#allocation2] sm:$0x80] }
  0x8a   : > { %953 = vmatprep.subr.mxu0 %v908_v52  ;;  %741 = vmatprep.subr.mxu1 %v595_v42  ;;  %v941_v52 = vld [vmem:[#allocation7 + $0x3d0] sm:$0xff]  ;;  %v916_v42 = vld [vmem:[#allocation7 + $0x308] sm:$0xff] }
  0x8b   : > { %954 = vmatpush1.msra.mxu0 %v907_v54  ;;  %742 = vmatpush2.msra.mxu1 %v594_v44  ;;  %v536_v54 = vld [vmem:[#allocation2 + $0x90] sm:$0x80]  ;;  %v915_v44 = vld [vmem:[#allocation7 + $0x300] sm:$0xff] }
  0x8c   : > { %476 = vmatmul.mubr.f32.gmra.mxu0 %v311_v56  ;;  %955 = vmatprep.subr.mxu0 %v906_v57  ;;  %v589_v56 = vld [vmem:[#allocation7 + $0x118] sm:$0xff]  ;;  %v939_v57 = vld [vmem:[#allocation7 + $0x3c0] sm:$0xff]  ;;  %v637_v63 = vrot.slane %v536_v54, 7  ;;  %v1104_v54 = vld [vmem:[#allocation7 + $0x448] sm:$0xff] }
  0x8d   : > { %481 = vmatprep.mubr.f32.mxu0 %v314_v58  ;;  %956 = vmatpush1.msra.mxu0 %v905_v59  ;;  %v588_v58 = vld [vmem:[#allocation7 + $0x110] sm:$0xff]  ;;  %v3467_v59 = vrot.slane %v3305_v4, 7 }
  0x8e   : > { %957 = vmatprep.subr.mxu0 %v904_v60  ;;  %743 = vmatprep.subr.mxu1 %v593_v46  ;;  %v640_v60 = vrot.slane %v537_v51, 7  ;;  %v1458_v46 = vld [vmem:[#allocation7 + $0x6f8] sm:$0xff]  ;;  %v1455_v51 = vld [vmem:[#allocation7 + $0x6e0] sm:$0xff] }
  0x8f   : > { %958 = vmatpush1.msra.mxu0 %v903_v62  ;;  %744 = vmatpush2.msra.mxu1 %v592_v48  ;;  %v587_v62 = vld [vmem:[#allocation7 + $0x108] sm:$0xff]  ;;  %v1107_v48 = vld [vmem:[#allocation7 + $0x460] sm:$0xff] }
  0x90   : > { %482 = vmatmul.mubr.f32.gmra.mxu0 %v313_v0  ;;  %959 = vmatprep.subr.mxu0 %v902_v1  ;;  %v937_v0 = vld [vmem:[#allocation7 + $0x3b0] sm:$0xff]  ;;  %v936_v1 = vld [vmem:[#allocation7 + $0x3a8] sm:$0xff] }
  0x91   : > { %487 = vmatprep.mubr.f32.mxu0 %v316_v2  ;;  %960 = vmatpush1.msra.mxu0 %v901_v3  ;;  %v586_v2 = vld [vmem:[#allocation7 + $0x100] sm:$0xff] }
  0x92   : > { %961 = vmatprep.subr.mxu0 %v900_v5  ;;  %745 = vmatprep.subr.mxu1 %v591_v50  ;;  %v935_v3 = vld [vmem:[#allocation7 + $0x3a0] sm:$0xff]  ;;  %v642_v5 = vsel %vm636_vm0, %v640_v60, %v3467_v59  ;;  %v1106_v50 = vld [vmem:[#allocation7 + $0x458] sm:$0xff] }
  0x93   : > { %962 = vmatpush1.msra.mxu0 %v899_v7  ;;  %746 = vmatpush2.msra.mxu1 %v590_v53  ;;  %v639_v7 = vsel %vm636_vm0, %v637_v63, %v3467_v59  ;;  %v1454_v53 = vld [vmem:[#allocation7 + $0x6d8] sm:$0xff]  ;;  %v1451_v60 = vld [vmem:[#allocation7 + $0x6c0] sm:$0xff]  ;;  %v1449_v63 = vld [vmem:[#allocation7 + $0x6b0] sm:$0xff] }
  0x94   : > { %488 = vmatmul.mubr.f32.gmra.mxu0 %v315_v9  ;;  %963 = vmatprep.subr.mxu0 %v898_v10  ;;  %v1126_v9 = vld [vmem:[#allocation7 + $0x4f8] sm:$0xff]  ;;  %v932_v10 = vld [vmem:[#allocation7 + $0x388] sm:$0xff] }
  0x95   : > { %493 = vmatprep.mubr.f32.mxu0 %v318_v11  ;;  %964 = vmatpush1.msra.mxu0 %v897_v12  ;;  %v1125_v11 = vld [vmem:[#allocation7 + $0x4f0] sm:$0xff]  ;;  %v931_v12 = vld [vmem:[#allocation7 + $0x380] sm:$0xff] }
  0x96   : > { %965 = vmatprep.subr.mxu0 %v896_v13  ;;  %747 = vmatprep.subr.mxu1 %v589_v56  ;;  %v1124_v13 = vld [vmem:[#allocation7 + $0x4e8] sm:$0xff]  ;;  %v1103_v56 = vld [vmem:[#allocation7 + $0x440] sm:$0xff] }
  0x97   : > { %966 = vmatpush1.msra.mxu0 %v895_v15  ;;  %748 = vmatpush2.msra.mxu1 %v588_v58  ;;  %v1123_v15 = vld [vmem:[#allocation7 + $0x4e0] sm:$0xff]  ;;  %v1102_v58 = vld [vmem:[#allocation7 + $0x438] sm:$0xff] }
  0x98   : > { %494 = vmatmul.mubr.f32.gmra.mxu0 %v317_v17  ;;  %967 = vmatprep.subr.mxu0 %v894_v18  ;;  %v1122_v17 = vld [vmem:[#allocation7 + $0x4d8] sm:$0xff]  ;;  %v928_v18 = vld [vmem:[#allocation7 + $0x368] sm:$0xff] }
  0x99   : > { %499 = vmatprep.mubr.f32.mxu0 %v320_v19  ;;  %968 = vmatpush1.msra.mxu0 %v893_v20  ;;  %v1121_v19 = vld [vmem:[#allocation7 + $0x4d0] sm:$0xff]  ;;  %v927_v20 = vld [vmem:[#allocation7 + $0x360] sm:$0xff] }
  0x9a   : > { %969 = vmatprep.subr.mxu0 %v892_v21  ;;  %749 = vmatprep.subr.mxu1 %v587_v62  ;;  %v1120_v21 = vld [vmem:[#allocation7 + $0x4c8] sm:$0xff] }
  0x9b   : > { %970 = vmatpush1.msra.mxu0 %v891_v23  ;;  %750 = vmatpush2.msra.mxu1 %v586_v2  ;;  %v1119_v23 = vld [vmem:[#allocation7 + $0x4c0] sm:$0xff]  ;;  %v1100_v62 = vld [vmem:[#allocation7 + $0x428] sm:$0xff]  ;;  %v1098_v2 = vld [vmem:[#allocation7 + $0x418] sm:$0xff] }
  0x9c   : > { %500 = vmatmul.mubr.f32.gmra.mxu0 %v319_v25  ;;  %971 = vmatprep.subr.mxu0 %v890_v26  ;;  %v1118_v25 = vld [vmem:[#allocation7 + $0x4b8] sm:$0xff]  ;;  %v924_v26 = vld [vmem:[#allocation7 + $0x348] sm:$0xff] }
  0x9d   : > { %505 = vmatprep.mubr.f32.mxu0 %v322_v27  ;;  %972 = vmatpush1.msra.mxu0 %v889_v28  ;;  %v1117_v27 = vld [vmem:[#allocation7 + $0x4b0] sm:$0xff]  ;;  %v923_v28 = vld [vmem:[#allocation7 + $0x340] sm:$0xff] }
  0x9e   : > { %973 = vmatprep.subr.mxu0 %v888_v29  ;;  %751 = vmatprep.mubr.f32.mxu1 %v642_v5  ;;  %v1116_v29 = vld [vmem:[#allocation7 + $0x4a8] sm:$0xff]  ;;  %v1097_v5 = vld [vmem:[#allocation7 + $0x410] sm:$0xff] }
  0x9f   : > { %974 = vmatpush1.msra.mxu0 %v887_v31  ;;  %752 = vmatmul.mubr.f32.vlgmr.msra.gmra.mxu1 %v639_v7  ;;  %v1115_v31 = vld [vmem:[#allocation7 + $0x4a0] sm:$0xff]  ;;  %v1096_v7 = vld [vmem:[#allocation7 + $0x408] sm:$0xff] }
  0xa0   : > { %506 = vmatmul.mubr.f32.gmra.mxu0 %v321_v33  ;;  %975 = vmatprep.subr.mxu0 %v886_v34  ;;  %v1114_v33 = vld [vmem:[#allocation7 + $0x498] sm:$0xff]  ;;  %v920_v34 = vld [vmem:[#allocation7 + $0x328] sm:$0xff] }
  0xa1   : > { %976 = vmatpush1.msra.mxu0 %v885_v35  ;;  %1011 = vmatprep.mubr.f32.mxu0 %v3305_v4  ;;  %v1113_v35 = vld [vmem:[#allocation7 + $0x490] sm:$0xff] }
  0xa2   : > { %977 = vmatprep.subr.mxu0 %v884_v37  ;;  %1228 = vmatprep.subr.mxu1 %v1126_v9  ;;  %v1112_v37 = vld [vmem:[#allocation7 + $0x488] sm:$0xff]  ;;  %v1095_v9 = vld [vmem:[#allocation7 + $0x400] sm:$0xff] }
  0xa3   : > { %978 = vmatpush1.msra.mxu0 %v883_v39  ;;  %1229 = vmatpush1.msra.mxu1 %v1125_v11  ;;  %v1111_v39 = vld [vmem:[#allocation7 + $0x480] sm:$0xff]  ;;  %v1158_v11 = vld [vmem:[#allocation7 + $0x5f8] sm:$0xff] }
  0xa4   : > { %979 = vmatprep.subr.mxu0 %v946_v41  ;;  %1230 = vmatprep.subr.mxu1 %v1124_v13  ;;  %v1110_v41 = vld [vmem:[#allocation7 + $0x478] sm:$0xff]  ;;  %v1157_v13 = vld [vmem:[#allocation7 + $0x5f0] sm:$0xff] }
  0xa5   : > { %980 = vmatpush2.msra.mxu0 %v945_v43  ;;  %1231 = vmatpush1.msra.mxu1 %v1123_v15  ;;  %v1109_v43 = vld [vmem:[#allocation7 + $0x470] sm:$0xff]  ;;  %v1156_v15 = vld [vmem:[#allocation7 + $0x5e8] sm:$0xff] }
  0xa6   : > { %981 = vmatprep.subr.mxu0 %v944_v45  ;;  %1232 = vmatprep.subr.mxu1 %v1122_v17  ;;  %v1108_v45 = vld [vmem:[#allocation7 + $0x468] sm:$0xff]  ;;  %v1155_v17 = vld [vmem:[#allocation7 + $0x5e0] sm:$0xff] }
  0xa7   : > { %982 = vmatpush2.msra.mxu0 %v943_v47  ;;  %1233 = vmatpush1.msra.mxu1 %v1121_v19  ;;  %v1457_v47 = vld [vmem:[#allocation7 + $0x6f0] sm:$0xff]  ;;  %v1154_v19 = vld [vmem:[#allocation7 + $0x5d8] sm:$0xff] }
  0xa8   : > { %983 = vmatprep.subr.mxu0 %v942_v49  ;;  %1234 = vmatprep.subr.mxu1 %v1120_v21  ;;  %v1456_v49 = vld [vmem:[#allocation7 + $0x6e8] sm:$0xff]  ;;  %v1153_v21 = vld [vmem:[#allocation7 + $0x5d0] sm:$0xff] }
  0xa9   : > { %984 = vmatpush2.msra.mxu0 %v941_v52  ;;  %1235 = vmatpush1.msra.mxu1 %v1119_v23  ;;  %v1105_v52 = vld [vmem:[#allocation7 + $0x450] sm:$0xff]  ;;  %v1152_v23 = vld [vmem:[#allocation7 + $0x5c8] sm:$0xff] }
  0xaa   : > { %985 = vmatprep.subr.mxu0 %v940_v55  ;;  %1236 = vmatprep.subr.mxu1 %v1118_v25  ;;  %v1453_v55 = vld [vmem:[#allocation7 + $0x6d0] sm:$0xff]  ;;  %v1151_v25 = vld [vmem:[#allocation7 + $0x5c0] sm:$0xff] }
  0xab   : > { %986 = vmatpush2.msra.mxu0 %v939_v57  ;;  %1237 = vmatpush1.msra.mxu1 %v1117_v27  ;;  %v1452_v57 = vld [vmem:[#allocation7 + $0x6c8] sm:$0xff]  ;;  %v1150_v27 = vld [vmem:[#allocation7 + $0x5b8] sm:$0xff] }
  0xac   : > { %987 = vmatprep.subr.mxu0 %v938_v61  ;;  %1238 = vmatprep.subr.mxu1 %v1116_v29  ;;  %v1101_v61 = vld [vmem:[#allocation7 + $0x430] sm:$0xff] }
  0xad   : > { %988 = vmatpush2.msra.mxu0 %v937_v0  ;;  %1239 = vmatpush1.msra.mxu1 %v1115_v31  ;;  %v1099_v0 = vld [vmem:[#allocation7 + $0x420] sm:$0xff]  ;;  %v1149_v29 = vld [vmem:[#allocation7 + $0x5b0] sm:$0xff]  ;;  %v1148_v31 = vld [vmem:[#allocation7 + $0x5a8] sm:$0xff] }
  0xae   : > { %989 = vmatprep.subr.mxu0 %v936_v1  ;;  %1240 = vmatprep.subr.mxu1 %v1114_v33  ;;  %v1448_v1 = vld [vmem:[#allocation7 + $0x6a8] sm:$0xff]  ;;  %v1147_v33 = vld [vmem:[#allocation7 + $0x5a0] sm:$0xff] }
  0xaf   : > { %990 = vmatpush2.msra.mxu0 %v935_v3  ;;  %1241 = vmatpush1.msra.mxu1 %v1113_v35  ;;  %v1447_v3 = vld [vmem:[#allocation7 + $0x6a0] sm:$0xff]  ;;  %v1146_v35 = vld [vmem:[#allocation7 + $0x598] sm:$0xff] }
  0xb0   : > { %991 = vmatprep.subr.mxu0 %v934_v6  ;;  %1242 = vmatprep.subr.mxu1 %v1112_v37  ;;  %v1446_v6 = vld [vmem:[#allocation7 + $0x698] sm:$0xff]  ;;  %v1145_v37 = vld [vmem:[#allocation7 + $0x590] sm:$0xff] }
  0xb1   : > { %992 = vmatpush2.msra.mxu0 %v933_v8  ;;  %1243 = vmatpush1.msra.mxu1 %v1111_v39  ;;  %v1445_v8 = vld [vmem:[#allocation7 + $0x690] sm:$0xff]  ;;  %v1144_v39 = vld [vmem:[#allocation7 + $0x588] sm:$0xff] }
  0xb2   : > { %993 = vmatprep.subr.mxu0 %v932_v10  ;;  %1244 = vmatprep.subr.mxu1 %v1110_v41  ;;  %v1444_v10 = vld [vmem:[#allocation7 + $0x688] sm:$0xff]  ;;  %v1143_v41 = vld [vmem:[#allocation7 + $0x580] sm:$0xff] }
  0xb3   : > { %994 = vmatpush2.msra.mxu0 %v931_v12  ;;  %1245 = vmatpush1.msra.mxu1 %v1109_v43  ;;  %v1443_v12 = vld [vmem:[#allocation7 + $0x680] sm:$0xff]  ;;  %v1142_v43 = vld [vmem:[#allocation7 + $0x578] sm:$0xff] }
  0xb4   : > { %995 = vmatprep.subr.mxu0 %v930_v14  ;;  %1246 = vmatprep.subr.mxu1 %v1108_v45  ;;  %v1442_v14 = vld [vmem:[#allocation7 + $0x678] sm:$0xff]  ;;  %v1141_v45 = vld [vmem:[#allocation7 + $0x570] sm:$0xff] }
  0xb5   : > { %996 = vmatpush2.msra.mxu0 %v929_v16  ;;  %1247 = vmatpush1.msra.mxu1 %v1107_v48  ;;  %v1441_v16 = vld [vmem:[#allocation7 + $0x670] sm:$0xff] }
  0xb6   : > { %997 = vmatprep.subr.mxu0 %v928_v18  ;;  %1248 = vmatprep.subr.mxu1 %v1106_v50  ;;  %v1440_v18 = vld [vmem:[#allocation7 + $0x668] sm:$0xff]  ;;  %v1489_v48 = vld [vmem:[#allocation7 + $0x7f0] sm:$0xff] }
  0xb7   : > { %998 = vmatpush2.msra.mxu0 %v927_v20  ;;  %1249 = vmatpush1.msra.mxu1 %v1105_v52  ;;  %v1439_v20 = vld [vmem:[#allocation7 + $0x660] sm:$0xff]  ;;  %v1488_v50 = vld [vmem:[#allocation7 + $0x7e8] sm:$0xff] }
  0xb8   : > { %999 = vmatprep.subr.mxu0 %v926_v22  ;;  %1250 = vmatprep.subr.mxu1 %v1104_v54  ;;  %v1438_v22 = vld [vmem:[#allocation7 + $0x658] sm:$0xff]  ;;  %v1487_v52 = vld [vmem:[#allocation7 + $0x7e0] sm:$0xff] }
  0xb9   : > { %1000 = vmatpush2.msra.mxu0 %v925_v24  ;;  %1251 = vmatpush1.msra.mxu1 %v1103_v56  ;;  %v1437_v24 = vld [vmem:[#allocation7 + $0x650] sm:$0xff]  ;;  %v1486_v54 = vld [vmem:[#allocation7 + $0x7d8] sm:$0xff] }
  0xba   : > { %1001 = vmatprep.subr.mxu0 %v924_v26  ;;  %1252 = vmatprep.subr.mxu1 %v1102_v58  ;;  %v1436_v26 = vld [vmem:[#allocation7 + $0x648] sm:$0xff]  ;;  %v1485_v56 = vld [vmem:[#allocation7 + $0x7d0] sm:$0xff] }
  0xbb   : > { %1002 = vmatpush2.msra.mxu0 %v923_v28  ;;  %1253 = vmatpush1.msra.mxu1 %v1101_v61  ;;  %v1435_v28 = vld [vmem:[#allocation7 + $0x640] sm:$0xff]  ;;  %v1484_v58 = vld [vmem:[#allocation7 + $0x7c8] sm:$0xff] }
  0xbc   : > { %1003 = vmatprep.subr.mxu0 %v922_v30  ;;  %1254 = vmatprep.subr.mxu1 %v1100_v62  ;;  %v1434_v30 = vld [vmem:[#allocation7 + $0x638] sm:$0xff]  ;;  %v1483_v61 = vld [vmem:[#allocation7 + $0x7c0] sm:$0xff] }
  0xbd   : > { %1004 = vmatpush2.msra.mxu0 %v921_v32  ;;  %1255 = vmatpush1.msra.mxu1 %v1099_v0  ;;  %v1433_v32 = vld [vmem:[#allocation7 + $0x630] sm:$0xff]  ;;  %v1482_v62 = vld [vmem:[#allocation7 + $0x7b8] sm:$0xff] }
  0xbe   : > { %1005 = vmatprep.subr.mxu0 %v920_v34  ;;  %1256 = vmatprep.subr.mxu1 %v1098_v2  ;;  %v1432_v34 = vld [vmem:[#allocation7 + $0x628] sm:$0xff]  ;;  %v1481_v0 = vld [vmem:[#allocation7 + $0x7b0] sm:$0xff] }
  0xbf   : > { %1006 = vmatpush2.msra.mxu0 %v919_v36  ;;  %1257 = vmatpush1.msra.mxu1 %v1097_v5  ;;  %v1431_v36 = vld [vmem:[#allocation7 + $0x620] sm:$0xff]  ;;  %v1480_v2 = vld [vmem:[#allocation7 + $0x7a8] sm:$0xff] }
  0xc0   : > { %1007 = vmatprep.subr.mxu0 %v918_v38  ;;  %1258 = vmatprep.subr.mxu1 %v1096_v7  ;;  %v1430_v38 = vld [vmem:[#allocation7 + $0x618] sm:$0xff]  ;;  %v1479_v5 = vld [vmem:[#allocation7 + $0x7a0] sm:$0xff] }
  0xc1   : > { %1008 = vmatpush2.msra.mxu0 %v917_v40  ;;  %1259 = vmatpush1.msra.mxu1 %v1095_v9  ;;  %v1429_v40 = vld [vmem:[#allocation7 + $0x610] sm:$0xff]  ;;  %v1478_v7 = vld [vmem:[#allocation7 + $0x798] sm:$0xff] }
  0xc2   : > { %1009 = vmatprep.subr.mxu0 %v916_v42  ;;  %1260 = vmatprep.subr.mxu1 %v1158_v11  ;;  %v1428_v42 = vld [vmem:[#allocation7 + $0x608] sm:$0xff]  ;;  %v1477_v9 = vld [vmem:[#allocation7 + $0x790] sm:$0xff] }
  0xc3   : > { %1010 = vmatpush2.msra.mxu0 %v915_v44  ;;  %1261 = vmatpush2.msra.mxu1 %v1157_v13  ;;  %v1427_v44 = vld [vmem:[#allocation7 + $0x600] sm:$0xff]  ;;  %v1476_v11 = vld [vmem:[#allocation7 + $0x788] sm:$0xff] }
  0xc4   : > { %1545 = vmatprep.subr.mxu0 %v1458_v46  ;;  %1012 = vmatmul.mubr.f32.vlgmr.msra.gmra.mxu0 %v3305_v4  ;;  %v1450_v4 = vld [vmem:[#allocation7 + $0x6b8] sm:$0xff]  ;;  %v1475_v13 = vld [vmem:[#allocation7 + $0x780] sm:$0xff] }
  0xc5   : > { %1546 = vmatpush1.msra.mxu0 %v1457_v47  ;;  %1262 = vmatprep.subr.mxu1 %v1156_v15  ;;  %v1490_v46 = vld [vmem:[#allocation7 + $0x7f8] sm:$0xff]  ;;  %v1140_v47 = vld [vmem:[#allocation7 + $0x568] sm:$0xff]  ;;  %v1473_v15 = vld [vmem:[#allocation7 + $0x770] sm:$0xff] }
  0xc6   : > { %1547 = vmatprep.subr.mxu0 %v1456_v49  ;;  %1263 = vmatpush2.msra.mxu1 %v1155_v17  ;;  %v1139_v49 = vld [vmem:[#allocation7 + $0x560] sm:$0xff] }
  0xc7   : > { %1548 = vmatpush1.msra.mxu0 %v1455_v51  ;;  %1264 = vmatprep.subr.mxu1 %v1154_v19  ;;  %v1138_v51 = vld [vmem:[#allocation7 + $0x558] sm:$0xff]  ;;  %v1471_v17 = vld [vmem:[#allocation7 + $0x760] sm:$0xff]  ;;  %v1469_v19 = vld [vmem:[#allocation7 + $0x750] sm:$0xff] }
  0xc8   : > { %1549 = vmatprep.subr.mxu0 %v1454_v53  ;;  %1265 = vmatpush2.msra.mxu1 %v1153_v21  ;;  %v1137_v53 = vld [vmem:[#allocation7 + $0x550] sm:$0xff]  ;;  %v800_v21 = vld [vmem:[%s4405_s5] sm:$0xff] }
  0xc9   : > { %1550 = vmatpush1.msra.mxu0 %v1453_v55  ;;  %1266 = vmatprep.subr.mxu1 %v1152_v23  ;;  %v1136_v55 = vld [vmem:[#allocation7 + $0x548] sm:$0xff]  ;;  %v1467_v23 = vld [vmem:[#allocation7 + $0x740] sm:$0xff] }
  0xca   : > { %1551 = vmatprep.subr.mxu0 %v1452_v57  ;;  %1267 = vmatpush2.msra.mxu1 %v1151_v25  ;;  %v1135_v57 = vld [vmem:[#allocation7 + $0x540] sm:$0xff]  ;;  %v1465_v25 = vld [vmem:[#allocation7 + $0x730] sm:$0xff] }
  0xcb   : > { %1552 = vmatpush1.msra.mxu0 %v1451_v60  ;;  %1268 = vmatprep.subr.mxu1 %v1150_v27  ;;  %v1134_v60 = vld [vmem:[#allocation7 + $0x538] sm:$0xff]  ;;  %v1463_v27 = vld [vmem:[#allocation7 + $0x720] sm:$0xff] }
  0xcc   : > { %1553 = vmatprep.subr.mxu0 %v1450_v4  ;;  %1269 = vmatpush2.msra.mxu1 %v1149_v29  ;;  %v1133_v4 = vld [vmem:[#allocation7 + $0x530] sm:$0xff] }
  0xcd   : > { %1554 = vmatpush1.msra.mxu0 %v1449_v63  ;;  %1270 = vmatprep.subr.mxu1 %v1148_v31  ;;  %v1132_v63 = vld [vmem:[#allocation7 + $0x528] sm:$0xff]  ;;  %v1461_v29 = vld [vmem:[#allocation7 + $0x710] sm:$0xff]  ;;  %v1459_v31 = vld [vmem:[#allocation7 + $0x700] sm:$0xff] }
  0xce   : > { %1555 = vmatprep.subr.mxu0 %v1448_v1  ;;  %1271 = vmatpush2.msra.mxu1 %v1147_v33  ;;  %v1131_v1 = vld [vmem:[#allocation7 + $0x520] sm:$0xff] }
  0xcf   : > { %1556 = vmatpush1.msra.mxu0 %v1447_v3  ;;  %1272 = vmatprep.subr.mxu1 %v1146_v35  ;;  %v1130_v3 = vld [vmem:[#allocation7 + $0x518] sm:$0xff]  ;;  %v801_v33 = vld [vmem:[%s4405_s5 + $0x8] sm:$0xff] }
  0xd0   : > { %1557 = vmatprep.subr.mxu0 %v1446_v6  ;;  %1273 = vmatpush2.msra.mxu1 %v1145_v37  ;;  %v1129_v6 = vld [vmem:[#allocation7 + $0x510] sm:$0xff]  ;;  %v805_v37 = vld [vmem:[%s4405_s5 + $0x28] sm:$0xff] }
  0xd1   : > { %1558 = vmatpush1.msra.mxu0 %v1445_v8  ;;  %1274 = vmatprep.subr.mxu1 %v1144_v39  ;;  %v1128_v8 = vld [vmem:[#allocation7 + $0x508] sm:$0xff]  ;;  %v803_v35 = vld [vmem:[%s4405_s5 + $0x18] sm:$0xff] }
  0xd2   : > { %1559 = vmatprep.subr.mxu0 %v1444_v10  ;;  %1275 = vmatpush2.msra.mxu1 %v1143_v41  ;;  %v1127_v10 = vld [vmem:[#allocation7 + $0x500] sm:$0xff]  ;;  %v806_v39 = vld [vmem:[%s4405_s5 + $0x30] sm:$0xff] }
  0xd3   : > { %1560 = vmatpush1.msra.mxu0 %v1443_v12  ;;  %1276 = vmatprep.subr.mxu1 %v1142_v43  ;;  %v1724_v12 = vld [vmem:[#allocation7 + $0x8f8] sm:$0xff] }
  0xd4   : > { %1561 = vmatprep.subr.mxu0 %v1442_v14  ;;  %1277 = vmatpush2.msra.mxu1 %v1141_v45  ;;  %v1474_v14 = vld [vmem:[#allocation7 + $0x778] sm:$0xff] }
  0xd5   : > { %1562 = vmatpush1.msra.mxu0 %v1441_v16  ;;  %1278 = vmatprep.subr.mxu1 %v1140_v47  ;;  %v1472_v16 = vld [vmem:[#allocation7 + $0x768] sm:$0xff]  ;;  %v807_v43 = vld [vmem:[%s4405_s5 + $0x38] sm:$0xff] }
  0xd6   : > { %1563 = vmatprep.subr.mxu0 %v1440_v18  ;;  %1279 = vmatpush2.msra.mxu1 %v1139_v49  ;;  %v1470_v18 = vld [vmem:[#allocation7 + $0x758] sm:$0xff] }
  0xd7   : > { %1564 = vmatpush1.msra.mxu0 %v1439_v20  ;;  %1280 = vmatprep.subr.mxu1 %v1138_v51  ;;  %v3306_v20 = vmov 0  }
  0xd8   : > { %1565 = vmatprep.subr.mxu0 %v1438_v22  ;;  %1281 = vmatpush2.msra.mxu1 %v1137_v53  ;;  %v1468_v22 = vld [vmem:[#allocation7 + $0x748] sm:$0xff] }
  0xd9   : > { %1566 = vmatpush1.msra.mxu0 %v1437_v24  ;;  %1282 = vmatprep.subr.mxu1 %v1136_v55  ;;  %v1466_v24 = vld [vmem:[#allocation7 + $0x738] sm:$0xff] }
  0xda   : > { %1567 = vmatprep.subr.mxu0 %v1436_v26  ;;  %1283 = vmatpush2.msra.mxu1 %v1135_v57  ;;  %v1464_v26 = vld [vmem:[#allocation7 + $0x728] sm:$0xff] }
  0xdb   : > { %1568 = vmatpush1.msra.mxu0 %v1435_v28  ;;  %1284 = vmatprep.subr.mxu1 %v1134_v60  ;;  %v1462_v28 = vld [vmem:[#allocation7 + $0x718] sm:$0xff]  ;;  %v3100_v57 = vld [vmem:[%s4405_s5 + $0x48] sm:$0xff] }
  0xdc   : > { %1569 = vmatprep.subr.mxu0 %v1434_v30  ;;  %1285 = vmatpush2.msra.mxu1 %v1133_v4  ;;  %v1460_v30 = vld [vmem:[#allocation7 + $0x708] sm:$0xff] }
  0xdd   : > { %1570 = vmatpush1.msra.mxu0 %v1433_v32  ;;  %1286 = vmatprep.subr.mxu1 %v1132_v63  ;;  %v1936_v32 = vld [vmem:[#allocation7 + $0xaf8] sm:$0xff] }
  0xde   : > { %1571 = vmatprep.subr.mxu0 %v1432_v34  ;;  %1287 = vmatpush2.msra.mxu1 %v1131_v1  ;;  %v802_v34 = vld [vmem:[%s4405_s5 + $0x10] sm:$0xff] }
  0xdf   : > { %1572 = vmatpush1.msra.mxu0 %v1431_v36  ;;  %1288 = vmatprep.subr.mxu1 %v1130_v3  ;;  %v804_v36 = vld [vmem:[%s4405_s5 + $0x20] sm:$0xff] }
  0xe0   : > { %1573 = vmatprep.subr.mxu0 %v1430_v38  ;;  %1289 = vmatpush2.msra.mxu1 %v1129_v6  ;;  %v389_v38 = vlaneseq }
  0xe1   : > { %1574 = vmatpush1.msra.mxu0 %v1429_v40  ;;  %1290 = vmatprep.subr.mxu1 %v1128_v8 }
  0xe2   : > { %1575 = vmatprep.subr.mxu0 %v1428_v42  ;;  %1291 = vmatpush2.msra.mxu1 %v1127_v10  ;;  %v3496_v40 = vshrl.u32 %v389_v38, 7  ;;  %v387_v42 = vld [vmem:[#allocation5] sm:$0x3] }
  0xe3   : > { %1576 = vmatpush1.msra.mxu0 %v1427_v44  ;;  %1757 = vmatprep.subr.mxu1 %v1724_v12 }
  0xe4   : > { %1577 = vmatprep.subr.mxu0 %v1490_v46  ;;  %3164 = vset.pattern.permute.xlu0 %v3306_v20  ;;  %4425 = vst [vmem:[#allocation13_spill] sm:$0xff] %v3496_v40  ;;  %v4408_v41 = vsub.s32 0, %v3496_v40  ;;  %v4407_v44 = vsub.s32 1, %v3496_v40 }
  0xe5   : > { %1578 = vmatpush2.msra.mxu0 %v1489_v48  ;;  %810 = vperm.xlu0 %3164, %v800_v21   ;;  %v3099_v48 = vld [vmem:[%s4405_s5 + $0x40] sm:$0xff] }
  0xe6   : > { %1579 = vmatprep.subr.mxu0 %v1488_v50  ;;  %3165 = vset.pattern.permute.xlu1 %v3306_v20  ;;  %v3505_v45 = vrot.slane %v387_v42, %v4408_v41  ;;  %v3509_v46 = vrot.slane %v387_v42, %v4407_v44 }
  0xe7   : > { %1580 = vmatpush2.msra.mxu0 %v1487_v52  ;;  %820 = vperm.xlu1 %3165, %v802_v34   ;;  %v3103_v34 = vld [vmem:[%s4405_s5 + $0x60] sm:$0xff] }
  0xe8   : > { %1581 = vmatprep.subr.mxu0 %v1486_v54 }
  0xe9   : > { %1582 = vmatpush2.msra.mxu0 %v1485_v56  ;;  %815 = vperm.xlu0 %3164, %v801_v33  }
  0xea   : > { %1583 = vmatprep.subr.mxu0 %v1484_v58 }
  0xeb   : > { %1584 = vmatpush2.msra.mxu0 %v1483_v61  ;;  %825 = vperm.xlu1 %3165, %v803_v35  }
  0xec   : > { %1585 = vmatprep.subr.mxu0 %v1482_v62 }
  0xed   : > { %1586 = vmatpush2.msra.mxu0 %v1481_v0  ;;  %830 = vperm.xlu0 %3164, %v804_v36  }
  0xee   : > { %1587 = vmatprep.subr.mxu0 %v1480_v2 }
  0xef   : > { %1588 = vmatpush2.msra.mxu0 %v1479_v5  ;;  %835 = vperm.xlu1 %3165, %v805_v37  }
  0xf0   : > { %1589 = vmatprep.subr.mxu0 %v1478_v7  ;;  %v3101_v7 = vld [vmem:[%s4405_s5 + $0x50] sm:$0xff] }
  0xf1   : > { %1590 = vmatpush2.msra.mxu0 %v1477_v9  ;;  %840 = vperm.xlu0 %3164, %v806_v39   ;;  %v1422_v39 = vld [vmem:[#allocation2 + $0x10] sm:$0x80] }
  0xf2   : > { %1591 = vmatprep.subr.mxu0 %v1476_v11 }
  0xf3   : > { %1592 = vmatpush2.msra.mxu0 %v1475_v13  ;;  %845 = vperm.xlu1 %3165, %v807_v43  }
  0xf4   : > { %1593 = vmatprep.subr.mxu0 %v1474_v14 }
  0xf5   : > { %1594 = vmatpush2.msra.mxu0 %v1473_v15  ;;  %1352 = vperm.xlu0 %3164, %v3099_v48  }
  0xf6   : > { %1595 = vmatprep.subr.mxu0 %v1472_v16 }
  0xf7   : > { %1596 = vmatpush2.msra.mxu0 %v1471_v17  ;;  %1357 = vperm.xlu1 %3165, %v3100_v57  }
  0xf8   : > { %1597 = vmatprep.subr.mxu0 %v1470_v18 }
  0xf9   : > { %1598 = vmatpush2.msra.mxu0 %v1469_v19  ;;  %1362 = vperm.xlu0 %3164, %v3101_v7   ;;  %v3102_v19 = vld [vmem:[%s4405_s5 + $0x58] sm:$0xff] }
  0xfa   : > { %1599 = vmatprep.subr.mxu0 %v1468_v22 }
  0xfb   : > { %1600 = vmatpush2.msra.mxu0 %v1467_v23  ;;  %1367 = vperm.xlu1 %3165, %v3102_v19   ;;  %v1928_v19 = vld [vmem:[#allocation7 + $0xab8] sm:$0xff] }
  0xfc   : > { %1601 = vmatprep.subr.mxu0 %v1466_v24 }
  0xfd   : > { %1602 = vmatpush2.msra.mxu0 %v1465_v25  ;;  %1372 = vperm.xlu0 %3164, %v3103_v34   ;;  %v1723_v34 = vld [vmem:[#allocation7 + $0x8f0] sm:$0xff] }
  0xfe   : > { %1603 = vmatprep.subr.mxu0 %v1464_v26 }
  0xff   : > { %1604 = vmatpush2.msra.mxu0 %v1463_v27 }
 0x100   : > { %1605 = vmatprep.subr.mxu0 %v1462_v28 }
 0x101   : > { %1606 = vmatpush2.msra.mxu0 %v1461_v29 }
 0x102   : > { %1607 = vmatprep.subr.mxu0 %v1460_v30  ;;  %v1423_v30 = vld [vmem:[#allocation2 + $0x28] sm:$0x80] }
 0x103   : > { %1608 = vmatpush2.msra.mxu0 %v1459_v31  ;;  %v1498_v38 = vrot.slane %v1423_v30, 7  ;;  %v1927_v30 = vld [vmem:[#allocation7 + $0xab0] sm:$0xff] }
 0x104   : > { %2037 = vmatprep.subr.mxu0 %v1936_v32 }
 0x144   : > { %v465_v47 = vpop.f32.mrf.mxu0 }
 0x145   : > { %v3515_v49 = vadd.f32 %v465_v47, %v3505_v45 }
 0x146   : > { %v467_v50 = vpop.f32.mrf.mxu0 }
 0x147   : > { %520 = vst [vmem:[#allocation2 + $0x68] sm:$0xff] %v3515_v49  ;;  %v3519_v51 = vadd.f32 %v467_v50, %v3509_v46  ;;  %v3522_v53 = vrot.slane %v3515_v49, 7 }
 0x148   : > { %v471_v52 = vpop.f32.mrf.mxu0 }
 0x149   : > { %521 = vst [vmem:[#allocation2 + $0x70] sm:$0xff] %v3519_v51  ;;  %v3526_v54 = vadd.f32 %v471_v52, %v3505_v45  ;;  %v3529_v55 = vrot.slane %v3519_v51, 7  ;;  %1017 = vmatprep.mubr.f32.mxu0 %v3519_v51  ;;  %v644_v4 = vsel %vm636_vm0, %v3467_v59, %v3522_v53  ;;  %v1495_v52 = vrot.slane %v1422_v39, 7 }
 0x14a   : > { %v473_v56 = vpop.f32.mrf.mxu0  ;;  %1018 = vmatmul.mubr.f32.gmra.mxu0 %v3515_v49 }
 0x14b   : > { %522 = vst [vmem:[#allocation2 + $0x18] sm:$0xff] %v3526_v54  ;;  %v3538_v58 = vadd.f32 %v473_v56, %v3509_v46  ;;  %v646_v60 = vsel %vm636_vm0, %v3467_v59, %v3529_v55  ;;  %v647_v62 = vrot.slane %v3526_v54, 7  ;;  %v1500_v57 = vsel %vm636_vm0, %v1498_v38, %v3529_v55  ;;  %v1722_v38 = vld [vmem:[#allocation7 + $0x8e8] sm:$0xff] }
 0x14c   : > { %v477_v61 = vpop.f32.mrf.mxu0  ;;  %757 = vmatprep.mubr.f32.mxu1 %v646_v60  ;;  %v3104_v60 = vld [vmem:[%s4405_s5 + $0x68] sm:$0xff]  ;;  %v1184_v39 = vrot.slane %v3526_v54, 1 }
 0x14d   : > { %523 = vst [vmem:[#allocation2 + $0x78] sm:$0xff] %v3538_v58  ;;  %v3549_v63 = vadd.f32 %v477_v61, %v3505_v45  ;;  %758 = vmatmul.mubr.f32.gmra.mxu1 %v644_v4  ;;  %v649_v0 = vrot.slane %v3538_v58, 7  ;;  %1023 = vmatprep.mubr.f32.mxu0 %v3538_v58  ;;  %v3565_v5 = vsel %vm636_vm0, %v3522_v53, %v647_v62 }
 0x14e   : > { %v479_v1 = vpop.f32.mrf.mxu0  ;;  %1024 = vmatmul.mubr.f32.gmra.mxu0 %v3526_v54  ;;  %1377 = vperm.xlu1 %3165, %v3104_v60   ;;  %v1497_v4 = vsel %vm636_vm0, %v1495_v52, %v3522_v53  ;;  %v1721_v52 = vld [vmem:[#allocation7 + $0x8e0] sm:$0xff]  ;;  %v1719_v60 = vld [vmem:[#allocation7 + $0x8d0] sm:$0xff] }
 0x14f   : > { %524 = vst [vmem:[#allocation2 + $0xb8] sm:$0xff] %v3549_v63  ;;  %v3556_v2 = vadd.f32 %v479_v1, %v3509_v46  ;;  %v3560_v59 = vsel %vm636_vm0, %v3529_v55, %v649_v0  ;;  %v651_v6 = vrot.slane %v3549_v63, 7  ;;  %v1077_v1 = vld [vmem:[#allocation2 + $0x28] sm:$0xfe]  ;;  %v1932_v55 = vld [vmem:[#allocation7 + $0xad8] sm:$0xff] }
 0x150   : > { %v483_v3 = vpop.f32.mrf.mxu0  ;;  %763 = vmatprep.mubr.f32.mxu1 %v3560_v59  ;;  %v1181_v53 = vrot.slane %v1077_v1, 1  ;;  %v1923_v1 = vld [vmem:[#allocation7 + $0xa90] sm:$0xff] }
 0x151   : > { %525 = vst [vmem:[#allocation2 + $0x30] sm:$0xff] %v3556_v2  ;;  %v3573_v8 = vadd.f32 %v483_v3, %v3505_v45  ;;  %764 = vmatmul.mubr.f32.gmra.mxu1 %v3565_v5  ;;  %v653_v9 = vrot.slane %v3556_v2, 7  ;;  %1029 = vmatprep.mubr.f32.mxu0 %v3556_v2  ;;  %v3588_v14 = vsel %vm636_vm0, %v647_v62, %v651_v6  ;;  %v1934_v62 = vld [vmem:[#allocation7 + $0xae8] sm:$0xff]  ;;  %v1933_v3 = vld [vmem:[#allocation7 + $0xae0] sm:$0xff] }
 0x152   : > { %v485_v10 = vpop.f32.mrf.mxu0  ;;  %1030 = vmatmul.mubr.f32.gmra.mxu0 %v3549_v63 }
 0x153   : > { %526 = vst [vmem:[#allocation2 + $0x50] sm:$0xff] %v3573_v8  ;;  %v3581_v11 = vadd.f32 %v485_v10, %v3509_v46  ;;  %v3584_v12 = vsel %vm636_vm0, %v649_v0, %v653_v9  ;;  %v655_v15 = vrot.slane %v3573_v8, 7 }
 0x154   : > { %v489_v13 = vpop.f32.mrf.mxu0  ;;  %769 = vmatprep.mubr.f32.mxu1 %v3584_v12 }
 0x155   : > { %527 = vst [vmem:[#allocation2 + $0x80] sm:$0xff] %v3581_v11  ;;  %v3593_v16 = vadd.f32 %v489_v13, %v3505_v45  ;;  %770 = vmatmul.mubr.f32.gmra.mxu1 %v3588_v14  ;;  %v657_v17 = vrot.slane %v3581_v11, 7  ;;  %1035 = vmatprep.mubr.f32.mxu0 %v3581_v11  ;;  %v3611_v23 = vsel %vm636_vm0, %v651_v6, %v655_v15  ;;  %v1182_v13 = vrot.slane %v3519_v51, 1 }
 0x156   : > { %v491_v18 = vpop.f32.mrf.mxu0  ;;  %1036 = vmatmul.mubr.f32.gmra.mxu0 %v3573_v8 }
 0x157   : > { %528 = vst [vmem:[#allocation2 + $0x88] sm:$0xff] %v3593_v16  ;;  %v3604_v20 = vadd.f32 %v491_v18, %v3509_v46  ;;  %v3607_v21 = vsel %vm636_vm0, %v653_v9, %v657_v17  ;;  %v659_v24 = vrot.slane %v3593_v16, 7  ;;  %v1931_v9 = vld [vmem:[#allocation7 + $0xad0] sm:$0xff] }
 0x158   : > { %v495_v22 = vpop.f32.mrf.mxu0  ;;  %775 = vmatprep.mubr.f32.mxu1 %v3607_v21 }
 0x159   : > { %529 = vst [vmem:[#allocation2 + $0x48] sm:$0xff] %v3604_v20  ;;  %v3616_v25 = vadd.f32 %v495_v22, %v3505_v45  ;;  %776 = vmatmul.mubr.f32.gmra.mxu1 %v3611_v23  ;;  %v661_v26 = vrot.slane %v3604_v20, 7  ;;  %1041 = vmatprep.mubr.f32.mxu0 %v3604_v20  ;;  %v3631_v32 = vsel %vm636_vm0, %v655_v15, %v659_v24  ;;  %v1076_v15 = vld [vmem:[#allocation2 + $0x10] sm:$0xfe] }
 0x15a   : > { %v497_v27 = vpop.f32.mrf.mxu0  ;;  %1042 = vmatmul.mubr.f32.gmra.mxu0 %v3593_v16 }
 0x15b   : > { %530 = vst [vmem:[#allocation2 + $0xb0] sm:$0xff] %v3616_v25  ;;  %v3624_v28 = vadd.f32 %v497_v27, %v3509_v46  ;;  %v3627_v29 = vsel %vm636_vm0, %v657_v17, %v661_v26  ;;  %v3634_v33 = vrot.slane %v3616_v25, 7  ;;  %v1930_v17 = vld [vmem:[#allocation7 + $0xac8] sm:$0xff]  ;;  %v3689_v27 = vrot.slane %v3538_v58, 1 }
 0x15c   : > { %v501_v31 = vpop.f32.mrf.mxu0  ;;  %781 = vmatprep.mubr.f32.mxu1 %v3627_v29 }
 0x15d   : > { %531 = vst [vmem:[#allocation2 + $0x38] sm:$0xff] %v3624_v28  ;;  %v3641_v35 = vadd.f32 %v501_v31, %v3505_v45  ;;  %782 = vmatmul.mubr.f32.gmra.mxu1 %v3631_v32  ;;  %v3645_v36 = vrot.slane %v3624_v28, 7  ;;  %1047 = vmatprep.mubr.f32.mxu0 %v3624_v28  ;;  %v3660_v48 = vsel %vm636_vm0, %v659_v24, %v3634_v33  ;;  %v1178_v24 = vrot.slane %v1076_v15, 1  ;;  %v1926_v31 = vld [vmem:[#allocation7 + $0xaa8] sm:$0xff] }
 0x15e   : > { %v503_v37 = vpop.f32.mrf.mxu0  ;;  %1048 = vmatmul.mubr.f32.gmra.mxu0 %v3616_v25  ;;  %v1198_v15 = vrot.slane %v3604_v20, 1 }
 0x15f   : > { %532 = vst [vmem:[#allocation2 + $0x60] sm:$0xff] %v3641_v35  ;;  %v3651_v42 = vadd.f32 %v503_v37, %v3509_v46  ;;  %v3655_v43 = vsel %vm636_vm0, %v661_v26, %v3645_v36  ;;  %v1179_v26 = vrot.slane %v3515_v49, 1 }
 0x160   : > { %v507_v47 = vpop.f32.mrf.mxu0  ;;  %787 = vmatprep.mubr.f32.mxu1 %v3655_v43 }
 0x161   : > { %533 = vst [vmem:[#allocation2 + $0x98] sm:$0xff] %v3651_v42  ;;  %v508_v50 = vadd.f32 %v507_v47, %v3505_v45  ;;  %788 = vmatmul.mubr.f32.gmra.mxu1 %v3660_v48  ;;  %1053 = vmatprep.mubr.f32.mxu0 %v3651_v42  ;;  %v1935_v45 = vld [vmem:[#allocation7 + $0xaf0] sm:$0xff]  ;;  %v1180_v37 = vsel %vm1177_vm1, %v1178_v24, %v1179_v26  ;;  %v1925_v47 = vld [vmem:[#allocation7 + $0xaa0] sm:$0xff]  ;;  %v1918_v24 = vld [vmem:[#allocation7 + $0xa68] sm:$0xff] }
 0x162   : > { %v509_v56 = vpop.f32.mrf.mxu0  ;;  %1054 = vmatmul.mubr.f32.gmra.mxu0 %v3641_v35 }
 0x163   : > { %534 = vst [vmem:[#allocation2 + $0xa0] sm:$0xff] %v508_v50  ;;  %v510_v61 = vadd.f32 %v509_v56, %v3509_v46  ;;  %1609 = vmatprep.mubr.f32.mxu0 %v1500_v57  ;;  %v3105_v46 = vld [vmem:[%s4405_s5 + $0x70] sm:$0xff]  ;;  %v1187_v50 = vsel %vm1177_vm1, %v1182_v13, %v3689_v27  ;;  %v1190_v56 = vrot.slane %v3556_v2, 1  ;;  %v1924_v57 = vld [vmem:[#allocation7 + $0xa98] sm:$0xff] }
 0x164   : > { %1382 = vperm.xlu0 %3164, %v3105_v46   ;;  %v1714_v46 = vld [vmem:[#allocation7 + $0x8a8] sm:$0xff] }
 0x165   : > { %535 = vst [vmem:[#allocation2 + $0x8] sm:$0xff] %v510_v61  ;;  %v1185_v61 = vsel %vm1177_vm1, %v1179_v26, %v1184_v39  ;;  %v1708_v26 = vld [vmem:[#allocation7 + $0x878] sm:$0xff] }
 0x166   : > { %v552_v0 = vld [vmem:[#allocation2 + $0x60] sm:$0x7f]  ;;  %1610 = vmatmul.mubr.f32.vlgmr.msra.gmra.mxu0 %v1497_v4  ;;  %v1191_v4 = vsel %vm1177_vm1, %v3689_v27, %v1190_v56 }
 0x167   : > { %2038 = vmatpush1.msra.mxu0 %v1935_v45  ;;  %1615 = vmatprep.mubr.f32.mxu0 %v3560_v59  ;;  %v667_v7 = vrot.slane %v552_v0, 7  ;;  %v1929_v59 = vld [vmem:[#allocation7 + $0xac0] sm:$0xff]  ;;  %v1188_v45 = vrot.slane %v3549_v63, 1  ;;  %v1194_v0 = vrot.slane %v3581_v11, 1 }
 0x168   : > { %v553_v6 = vld [vmem:[#allocation2 + $0x98] sm:$0x7f]  ;;  %2039 = vmatprep.subr.mxu0 %v1934_v62  ;;  %v1717_v62 = vld [vmem:[#allocation7 + $0x8c0] sm:$0xff] }
 0x169   : > { %v669_v10 = vrot.slane %v553_v6, 7  ;;  %2040 = vmatpush1.msra.mxu0 %v1933_v3  ;;  %v668_v22 = vsel %vm636_vm0, %v3634_v33, %v667_v7  ;;  %v1716_v3 = vld [vmem:[#allocation7 + $0x8b8] sm:$0xff]  ;;  %v1189_v63 = vsel %vm1177_vm1, %v1184_v39, %v1188_v45  ;;  %v1195_v6 = vsel %vm1177_vm1, %v1190_v56, %v1194_v0  ;;  %v1713_v7 = vld [vmem:[#allocation7 + $0x8a0] sm:$0xff] }
 0x16a   : > { %2041 = vmatprep.subr.mxu0 %v1932_v55  ;;  %1616 = vmatmul.mubr.f32.gmra.mxu0 %v3565_v5  ;;  %v1183_v5 = vsel %vm1177_vm1, %v1181_v53, %v1182_v13  ;;  %v1715_v55 = vld [vmem:[#allocation7 + $0x8b0] sm:$0xff]  ;;  %v1712_v53 = vld [vmem:[#allocation7 + $0x898] sm:$0xff]  ;;  %v1921_v13 = vld [vmem:[#allocation7 + $0xa80] sm:$0xff]  ;;  %v1200_v39 = vrot.slane %v3616_v25, 1 }
 0x16b   : > { %v670_v18 = vsel %vm636_vm0, %v3645_v36, %v669_v10  ;;  %2042 = vmatpush1.msra.mxu0 %v1931_v9  ;;  %1621 = vmatprep.mubr.f32.mxu0 %v3584_v12  ;;  %v3106_v12 = vld [vmem:[%s4405_s5 + $0x78] sm:$0xff]  ;;  %v1922_v9 = vld [vmem:[#allocation7 + $0xa88] sm:$0xff]  ;;  %v1192_v10 = vrot.slane %v3573_v8, 1  ;;  %v1199_v8 = vsel %vm1177_vm1, %v1194_v0, %v1198_v15  ;;  %v1913_v56 = vld [vmem:[#allocation7 + $0xa40] sm:$0xff]  ;;  %v3729_v0 = vpop.permute.xlu0 %810 }
 0x16c   : > { %793 = vmatprep.mubr.f32.mxu1 %v670_v18  ;;  %2043 = vmatprep.subr.mxu0 %v1930_v17  ;;  %v1711_v17 = vld [vmem:[#allocation7 + $0x890] sm:$0xff]  ;;  %v1710_v18 = vld [vmem:[#allocation7 + $0x888] sm:$0xff] }
 0x16d   : > { %794 = vmatmul.mubr.f32.gmra.mxu1 %v668_v22  ;;  %2044 = vmatpush1.msra.mxu0 %v1929_v59  ;;  %v1193_v59 = vsel %vm1177_vm1, %v1188_v45, %v1192_v10  ;;  %v1709_v22 = vld [vmem:[#allocation7 + $0x880] sm:$0xff] }
 0x16e   : > { %1292 = vmatprep.mubr.f32.mxu1 %v1183_v5  ;;  %2045 = vmatprep.subr.mxu0 %v1928_v19  ;;  %v1919_v19 = vld [vmem:[#allocation7 + $0xa70] sm:$0xff]  ;;  %v1917_v5 = vld [vmem:[#allocation7 + $0xa60] sm:$0xff] }
 0x16f   : > { %1622 = vmatmul.mubr.f32.gmra.mxu0 %v3588_v14  ;;  %1387 = vperm.xlu1 %3165, %v3106_v12   ;;  %v1720_v14 = vld [vmem:[#allocation7 + $0x8d8] sm:$0xff]  ;;  %v1093_v45 = vld [vmem:[#allocation2 + $0x8] sm:$0x1] }
 0x170   : > { %2046 = vmatpush1.msra.mxu0 %v1927_v30  ;;  %1627 = vmatprep.mubr.f32.mxu0 %v3607_v21  ;;  %v1718_v21 = vld [vmem:[#allocation7 + $0x8c8] sm:$0xff]  ;;  %v1202_v30 = vrot.slane %v3624_v28, 1  ;;  %v1916_v12 = vld [vmem:[#allocation7 + $0xa58] sm:$0xff]  ;;  %v1705_v28 = vld [vmem:[#allocation7 + $0x860] sm:$0xff] }
 0x171   : > { %1293 = vmatmul.mubr.f32.vlgmr.msra.gmra.mxu1 %v1180_v37  ;;  %2047 = vmatprep.subr.mxu0 %v1926_v31  ;;  %v1707_v31 = vld [vmem:[#allocation7 + $0x870] sm:$0xff]  ;;  %v1706_v37 = vld [vmem:[#allocation7 + $0x868] sm:$0xff] }
 0x172   : > { %1758 = vmatpush1.msra.mxu1 %v1723_v34  ;;  %1298 = vmatprep.mubr.f32.mxu1 %v1187_v50  ;;  %v1523_v34 = vrot.slane %v3651_v42, 7 }
 0x173   : > { %1759 = vmatprep.subr.mxu1 %v1722_v38  ;;  %2048 = vmatpush1.msra.mxu0 %v1925_v47  ;;  %v1915_v38 = vld [vmem:[#allocation7 + $0xa50] sm:$0xff]  ;;  %v1425_v47 = vld [vmem:[#allocation2 + $0x8] sm:$0x7f] }
 0x174   : > { %1760 = vmatpush1.msra.mxu1 %v1721_v52  ;;  %2049 = vmatprep.subr.mxu0 %v1924_v57  ;;  %v1524_v50 = vsel %vm636_vm0, %v3645_v36, %v1523_v34  ;;  %v1704_v52 = vld [vmem:[#allocation7 + $0x858] sm:$0xff]  ;;  %v1206_v57 = vrot.slane %v3651_v42, 1  ;;  %v1527_v25 = vrot.slane %v1425_v47, 7  ;;  %v1911_v42 = vld [vmem:[#allocation7 + $0xa30] sm:$0xff]  ;;  %v1965_v47 = vld [vmem:[#allocation7 + $0xbe0] sm:$0xff] }
 0x175   : > { %1761 = vmatprep.subr.mxu1 %v1720_v14  ;;  %1299 = vmatmul.mubr.f32.gmra.mxu1 %v1185_v61  ;;  %v1912_v14 = vld [vmem:[#allocation7 + $0xa38] sm:$0xff]  ;;  %v1703_v61 = vld [vmem:[#allocation7 + $0x850] sm:$0xff] }
 0x176   : > { %1762 = vmatpush1.msra.mxu1 %v1719_v60  ;;  %1304 = vmatprep.mubr.f32.mxu1 %v1191_v4  ;;  %v1521_v60 = vrot.slane %v3641_v35, 7  ;;  %v1207_v36 = vsel %vm1177_vm1, %v1202_v30, %v1206_v57  ;;  %v1424_v4 = vld [vmem:[#allocation2 + $0xa0] sm:$0x7f] }
 0x177   : > { %1763 = vmatprep.subr.mxu1 %v1718_v21  ;;  %1628 = vmatmul.mubr.f32.gmra.mxu0 %v3611_v23  ;;  %v1920_v23 = vld [vmem:[#allocation7 + $0xa78] sm:$0xff]  ;;  %v1702_v21 = vld [vmem:[#allocation7 + $0x848] sm:$0xff] }
 0x178   : > { %1764 = vmatpush1.msra.mxu1 %v1717_v62  ;;  %2050 = vmatpush1.msra.mxu0 %v1923_v1  ;;  %v753_v62 = vpop.f32.mrf.mxu1  ;;  %v1522_v1 = vsel %vm636_vm0, %v3634_v33, %v1521_v60 }
 0x179   : > { %1765 = vmatprep.subr.mxu1 %v1716_v3  ;;  %1305 = vmatmul.mubr.f32.gmra.mxu1 %v1189_v63  ;;  %v1701_v3 = vld [vmem:[#allocation7 + $0x840] sm:$0xff]  ;;  %v1204_v63 = vrot.slane %v3641_v35, 1  ;;  %v1699_v35 = vld [vmem:[#allocation7 + $0x830] sm:$0xff] }
 0x17a   : > { %1766 = vmatpush1.msra.mxu1 %v1715_v55  ;;  %1310 = vmatprep.mubr.f32.mxu1 %v1195_v6  ;;  %v1910_v55 = vld [vmem:[#allocation7 + $0xa28] sm:$0xff]  ;;  %v1528_v6 = vsel %vm636_vm0, %v1523_v34, %v1527_v25  ;;  %v1968_v34 = vld [vmem:[#allocation7 + $0xbf8] sm:$0xff]  ;;  %v1961_v25 = vld [vmem:[#allocation7 + $0xbc0] sm:$0xff] }
 0x17b   : > { %1767 = vmatprep.subr.mxu1 %v1714_v46  ;;  %1633 = vmatprep.mubr.f32.mxu0 %v3627_v29  ;;  %v1196_v29 = vrot.slane %v3593_v16, 1  ;;  %v848_v46 = vmul.f32 %v3729_v0, %v753_v62  ;;  %v1957_v62 = vld [vmem:[#allocation7 + $0xba0] sm:$0xff] }
 0x17c   : > { %1768 = vmatpush1.msra.mxu1 %v1713_v7  ;;  %2051 = vmatprep.subr.mxu0 %v1922_v9  ;;  %v1700_v7 = vld [vmem:[#allocation7 + $0x838] sm:$0xff]  ;;  %v1909_v9 = vld [vmem:[#allocation7 + $0xa20] sm:$0xff] }
 0x17d   : > { %1769 = vmatprep.subr.mxu1 %v1712_v53  ;;  %2052 = vmatpush1.msra.mxu0 %v1921_v13  ;;  %v1197_v16 = vsel %vm1177_vm1, %v1192_v10, %v1196_v29  ;;  %v1210_v10 = vrot.slane %v1093_v45, 1  ;;  %v1887_v53 = vld [vmem:[#allocation2 + $0x70] sm:$0xfe] }
 0x17e   : > { %1311 = vmatmul.mubr.f32.gmra.mxu1 %v1193_v59  ;;  %2053 = vmatprep.subr.mxu0 %v1920_v23  ;;  %v1525_v23 = vrot.slane %v1424_v4, 7  ;;  %v1205_v59 = vsel %vm1177_vm1, %v1200_v39, %v1204_v63  ;;  %v1959_v45 = vld [vmem:[#allocation7 + $0xbb0] sm:$0xff]  ;;  %v1748_v4 = vld [vmem:[#allocation7 + $0x9b8] sm:$0xff] }
 0x17f   : > { %1770 = vmatpush1.msra.mxu1 %v1711_v17  ;;  %1316 = vmatprep.mubr.f32.mxu1 %v1199_v8  ;;  %v1092_v17 = vld [vmem:[#allocation2 + $0xa0] sm:$0x1]  ;;  %v1990_v8 = vrot.slane %v1887_v53, 1 }
 0x180   : > { %1634 = vmatmul.mubr.f32.gmra.mxu0 %v3631_v32  ;;  %1771 = vmatprep.subr.mxu1 %v1710_v18  ;;  %v1203_v32 = vsel %vm1177_vm1, %v1198_v15, %v1202_v30  ;;  %v1908_v15 = vld [vmem:[#allocation7 + $0xa18] sm:$0xff]  ;;  %v1698_v18 = vld [vmem:[#allocation7 + $0x828] sm:$0xff] }
 0x181   : > { %2054 = vmatpush1.msra.mxu0 %v1919_v19  ;;  %1639 = vmatprep.mubr.f32.mxu0 %v3655_v43  ;;  %v1914_v43 = vld [vmem:[#allocation7 + $0xa48] sm:$0xff]  ;;  %v1211_v19 = vsel %vm1177_vm1, %v1206_v57, %v1210_v10  ;;  %v1696_v30 = vld [vmem:[#allocation7 + $0x818] sm:$0xff]  ;;  %v1963_v57 = vld [vmem:[#allocation7 + $0xbd0] sm:$0xff] }
 0x182   : > { %1772 = vmatpush1.msra.mxu1 %v1709_v22  ;;  %2055 = vmatprep.subr.mxu0 %v1918_v24  ;;  %v1907_v22 = vld [vmem:[#allocation7 + $0xa10] sm:$0xff]  ;;  %v1697_v24 = vld [vmem:[#allocation7 + $0x820] sm:$0xff]  ;;  %v1952_v53 = vld [vmem:[#allocation7 + $0xb78] sm:$0xff] }
 0x183   : > { %1773 = vmatprep.subr.mxu1 %v1708_v26  ;;  %2056 = vmatpush1.msra.mxu0 %v1917_v5  ;;  %v1906_v26 = vld [vmem:[#allocation7 + $0xa08] sm:$0xff]  ;;  %v1208_v5 = vrot.slane %v1092_v17, 1  ;;  %v1743_v10 = vld [vmem:[#allocation7 + $0x990] sm:$0xff]  ;;  %v1740_v17 = vld [vmem:[#allocation7 + $0x978] sm:$0xff] }
 0x184   : > { %1317 = vmatmul.mubr.f32.gmra.mxu1 %v1197_v16  ;;  %2057 = vmatprep.subr.mxu0 %v1916_v12  ;;  %v1013_v13 = vpop.f32.mrf.mxu0  ;;  %v1905_v12 = vld [vmem:[#allocation7 + $0xa00] sm:$0xff]  ;;  %v1695_v16 = vld [vmem:[#allocation7 + $0x810] sm:$0xff] }
 0x185   : > { %1774 = vmatpush1.msra.mxu1 %v1707_v31  ;;  %1322 = vmatprep.mubr.f32.mxu1 %v1203_v32  ;;  %v3736_v33 = vadd.f32 %v1013_v13, %v848_v46  ;;  %v1992_v31 = vsel %vm1177_vm1, %v1990_v8, %v3689_v27  ;;  %v1694_v32 = vld [vmem:[#allocation7 + $0x808] sm:$0xff]  ;;  %v1745_v46 = vld [vmem:[#allocation7 + $0x9a0] sm:$0xff]  ;;  %v1948_v8 = vld [vmem:[#allocation7 + $0xb58] sm:$0xff] }
 0x186   : > { %1640 = vmatmul.mubr.f32.gmra.mxu0 %v3660_v48  ;;  %1775 = vmatprep.subr.mxu1 %v1706_v37  ;;  %v1201_v48 = vsel %vm1177_vm1, %v1196_v29, %v1200_v39  ;;  %v1526_v29 = vsel %vm636_vm0, %v1521_v60, %v1525_v23  ;;  %v1209_v37 = vsel %vm1177_vm1, %v1204_v63, %v1208_v5  ;;  %v1756_v39 = vld [vmem:[#allocation7 + $0x9f8] sm:$0xff]  ;;  %v1962_v60 = vld [vmem:[#allocation7 + $0xbc8] sm:$0xff]  ;;  %v1955_v63 = vld [vmem:[#allocation7 + $0xb90] sm:$0xff] }
 0x187   : > { %2058 = vmatpush1.msra.mxu0 %v1915_v38  ;;  %1645 = vmatprep.mubr.f32.mxu0 %v1524_v50  ;;  %v1967_v38 = vld [vmem:[#allocation7 + $0xbf0] sm:$0xff]  ;;  %v1742_v13 = vld [vmem:[#allocation7 + $0x988] sm:$0xff]  ;;  %v1741_v23 = vld [vmem:[#allocation7 + $0x980] sm:$0xff] }
 0x188   : > { %1776 = vmatpush1.msra.mxu1 %v1705_v28  ;;  %2059 = vmatprep.subr.mxu0 %v1914_v43  ;;  %v1693_v28 = vld [vmem:[#allocation7 + $0x800] sm:$0xff]  ;;  %v1966_v43 = vld [vmem:[#allocation7 + $0xbe8] sm:$0xff]  ;;  %v1755_v50 = vld [vmem:[#allocation7 + $0x9f0] sm:$0xff] }
 0x189   : > { %1777 = vmatprep.subr.mxu1 %v1704_v52  ;;  %2060 = vmatpush1.msra.mxu0 %v1913_v56  ;;  %v1964_v52 = vld [vmem:[#allocation7 + $0xbd8] sm:$0xff]  ;;  %v1754_v56 = vld [vmem:[#allocation7 + $0x9e8] sm:$0xff]  ;;  %v1945_v5 = vld [vmem:[#allocation7 + $0xb40] sm:$0xff] }
 0x18a   : > { %1323 = vmatmul.mubr.f32.gmra.mxu1 %v1201_v48  ;;  %2061 = vmatprep.subr.mxu0 %v1912_v14  ;;  %v1753_v14 = vld [vmem:[#allocation7 + $0x9e0] sm:$0xff]  ;;  %v1960_v48 = vld [vmem:[#allocation7 + $0xbb8] sm:$0xff] }
 0x18b   : > { %1778 = vmatpush1.msra.mxu1 %v1703_v61  ;;  %1328 = vmatprep.mubr.f32.mxu1 %v1207_v36  ;;  %v1752_v61 = vld [vmem:[#allocation7 + $0x9d8] sm:$0xff]  ;;  %v1749_v36 = vld [vmem:[#allocation7 + $0x9c0] sm:$0xff] }
 0x18c   : > { %1646 = vmatmul.mubr.f32.gmra.mxu0 %v1522_v1  ;;  %1779 = vmatprep.subr.mxu1 %v1702_v21  ;;  %v1750_v21 = vld [vmem:[#allocation7 + $0x9c8] sm:$0xff]  ;;  %v1747_v1 = vld [vmem:[#allocation7 + $0x9b0] sm:$0xff] }
 0x18d   : > { %2062 = vmatpush1.msra.mxu0 %v1911_v42  ;;  %1651 = vmatprep.mubr.f32.mxu0 %v1528_v6  ;;  %v1958_v42 = vld [vmem:[#allocation7 + $0xba8] sm:$0xff] }
 0x18e   : > { %1780 = vmatpush1.msra.mxu1 %v1701_v3  ;;  %2063 = vmatprep.subr.mxu0 %v1910_v55  ;;  %v1956_v3 = vld [vmem:[#allocation7 + $0xb98] sm:$0xff]  ;;  %v1746_v55 = vld [vmem:[#allocation7 + $0x9a8] sm:$0xff] }
 0x18f   : > { %1781 = vmatprep.subr.mxu1 %v1700_v7  ;;  %2064 = vmatpush1.msra.mxu0 %v1909_v9  ;;  %v1954_v6 = vld [vmem:[#allocation7 + $0xb88] sm:$0xff]  ;;  %v1744_v7 = vld [vmem:[#allocation7 + $0x998] sm:$0xff]  ;;  %v1953_v9 = vld [vmem:[#allocation7 + $0xb80] sm:$0xff] }
 0x190   : > { %1329 = vmatmul.mubr.f32.gmra.mxu1 %v1205_v59  ;;  %2065 = vmatprep.subr.mxu0 %v1908_v15  ;;  %v1951_v15 = vld [vmem:[#allocation7 + $0xb70] sm:$0xff]  ;;  %v1949_v59 = vld [vmem:[#allocation7 + $0xb60] sm:$0xff] }
 0x191   : > { %1782 = vmatpush1.msra.mxu1 %v1699_v35  ;;  %1334 = vmatprep.mubr.f32.mxu1 %v1211_v19  ;;  %v1950_v35 = vld [vmem:[#allocation7 + $0xb68] sm:$0xff] }
 0x192   : > { %1652 = vmatmul.mubr.f32.gmra.mxu0 %v1526_v29  ;;  %1783 = vmatprep.subr.mxu1 %v1698_v18  ;;  %v1739_v18 = vld [vmem:[#allocation7 + $0x970] sm:$0xff]  ;;  %v1738_v19 = vld [vmem:[#allocation7 + $0x968] sm:$0xff] }
 0x193   : > { %2066 = vmatpush1.msra.mxu0 %v1907_v22  ;;  %1784 = vmatpush1.msra.mxu1 %v1697_v24  ;;  %v1947_v22 = vld [vmem:[#allocation7 + $0xb50] sm:$0xff]  ;;  %v1737_v24 = vld [vmem:[#allocation7 + $0x960] sm:$0xff]  ;;  %v1946_v29 = vld [vmem:[#allocation7 + $0xb48] sm:$0xff] }
 0x194   : > { %2067 = vmatprep.subr.mxu0 %v1906_v26  ;;  %2101 = vmatprep.mubr.f32.mxu0 %v1992_v31  ;;  %v1736_v26 = vld [vmem:[#allocation7 + $0x958] sm:$0xff]  ;;  %v1734_v31 = vld [vmem:[#allocation7 + $0x948] sm:$0xff] }
 0x195   : > { %1785 = vmatprep.subr.mxu1 %v1696_v30  ;;  %2068 = vmatpush1.msra.mxu0 %v1905_v12  ;;  %v1735_v30 = vld [vmem:[#allocation7 + $0x950] sm:$0xff]  ;;  %v1944_v12 = vld [vmem:[#allocation7 + $0xb38] sm:$0xff] }
 0x196   : > { %1335 = vmatmul.mubr.f32.gmra.mxu1 %v1209_v37  ;;  %2069 = vmatprep.subr.mxu0 %v1968_v34  ;;  %v1943_v34 = vld [vmem:[#allocation7 + $0xb30] sm:$0xff]  ;;  %v1942_v37 = vld [vmem:[#allocation7 + $0xb28] sm:$0xff] }
 0x197   : > { %1786 = vmatpush1.msra.mxu1 %v1695_v16  ;;  %1821 = vmatprep.mubr.f32.mxu1 %v3519_v51  ;;  %v1751_v51 = vld [vmem:[#allocation7 + $0x9d0] sm:$0xff]  ;;  %v1733_v16 = vld [vmem:[#allocation7 + $0x940] sm:$0xff] }
 0x198   : > { %1787 = vmatprep.subr.mxu1 %v1694_v32  ;;  %2070 = vmatpush2.msra.mxu0 %v1967_v38  ;;  %v1732_v32 = vld [vmem:[#allocation7 + $0x938] sm:$0xff]  ;;  %v1941_v38 = vld [vmem:[#allocation7 + $0xb20] sm:$0xff] }
 0x199   : > { %1788 = vmatpush1.msra.mxu1 %v1693_v28  ;;  %2071 = vmatprep.subr.mxu0 %v1966_v43  ;;  %v3745_v28 = vld [vmem:[#allocation2 + $0x18] sm:$0xff] }
 0x19a   : > { %1789 = vmatprep.subr.mxu1 %v1756_v39  ;;  %2072 = vmatpush2.msra.mxu0 %v1965_v47  ;;  %v1731_v43 = vld [vmem:[#allocation7 + $0x930] sm:$0xff]  ;;  %v1940_v39 = vld [vmem:[#allocation7 + $0xb18] sm:$0xff]  ;;  %v1730_v47 = vld [vmem:[#allocation7 + $0x928] sm:$0xff] }
 0x19b   : > { %1790 = vmatpush2.msra.mxu1 %v1755_v50  ;;  %2073 = vmatprep.subr.mxu0 %v1964_v52  ;;  %v1939_v50 = vld [vmem:[#allocation7 + $0xb10] sm:$0xff]  ;;  %v1886_v52 = vld [vmem:[#allocation2 + $0x68] sm:$0xfe] }
 0x19c   : > { %1791 = vmatprep.subr.mxu1 %v1754_v56  ;;  %2074 = vmatpush2.msra.mxu0 %v1963_v57  ;;  %v3747_v56 = vld [vmem:[#allocation2 + $0x30] sm:$0xff]  ;;  %v1729_v57 = vld [vmem:[#allocation7 + $0x920] sm:$0xff] }
 0x19d   : > { %1792 = vmatpush2.msra.mxu1 %v1753_v14  ;;  %2075 = vmatprep.subr.mxu0 %v1962_v60  ;;  %v1938_v14 = vld [vmem:[#allocation7 + $0xb08] sm:$0xff]  ;;  %v1988_v60 = vrot.slane %v3745_v28, 1 }
 0x19e   : > { %1793 = vmatprep.subr.mxu1 %v1752_v61  ;;  %2076 = vmatpush2.msra.mxu0 %v1961_v25  ;;  %v1728_v61 = vld [vmem:[#allocation7 + $0x918] sm:$0xff]  ;;  %v1937_v25 = vld [vmem:[#allocation7 + $0xb00] sm:$0xff] }
 0x19f   : > { %1794 = vmatpush2.msra.mxu1 %v1751_v51  ;;  %2077 = vmatprep.subr.mxu0 %v1960_v48  ;;  %v1727_v51 = vld [vmem:[#allocation7 + $0x910] sm:$0xff]  ;;  %v1987_v48 = vrot.slane %v1886_v52, 1  ;;  %v2208_v52 = vld [vmem:[#allocation7 + $0xca8] sm:$0xff] }
 0x1a0   : > { %1795 = vmatprep.subr.mxu1 %v1750_v21  ;;  %2078 = vmatpush2.msra.mxu0 %v1959_v45  ;;  %v3751_v21 = vrot.slane %v3747_v56, 1  ;;  %v2484_v45 = vld [vmem:[#allocation7 + $0xef8] sm:$0xff] }
 0x1a1   : > { %1796 = vmatpush2.msra.mxu1 %v1749_v36  ;;  %2079 = vmatprep.subr.mxu0 %v1958_v42  ;;  %v1726_v36 = vld [vmem:[#allocation7 + $0x908] sm:$0xff]  ;;  %v3753_v42 = vld [vmem:[#allocation2 + $0xb8] sm:$0xff] }
 0x1a2   : > { %1797 = vmatprep.subr.mxu1 %v1748_v4  ;;  %2080 = vmatpush2.msra.mxu0 %v1957_v62  ;;  %v1989_v4 = vsel %vm1177_vm1, %v1987_v48, %v1988_v60  ;;  %v2483_v62 = vld [vmem:[#allocation7 + $0xef0] sm:$0xff] }
 0x1a3   : > { %1798 = vmatpush2.msra.mxu1 %v1747_v1  ;;  %2081 = vmatprep.subr.mxu0 %v1956_v3  ;;  %v3756_v1 = vld [vmem:[#allocation2 + $0x80] sm:$0xff] }
 0x1a4   : > { %1799 = vmatprep.subr.mxu1 %v1746_v55  ;;  %2082 = vmatpush2.msra.mxu0 %v1955_v63  ;;  %v1725_v3 = vld [vmem:[#allocation7 + $0x900] sm:$0xff]  ;;  %v2482_v55 = vld [vmem:[#allocation7 + $0xee8] sm:$0xff]  ;;  %v1996_v63 = vsel %vm1177_vm1, %v3689_v27, %v3751_v21 }
 0x1a5   : > { %1800 = vmatpush2.msra.mxu1 %v1745_v46  ;;  %2083 = vmatprep.subr.mxu0 %v1954_v6  ;;  %v2218_v46 = vld [vmem:[#allocation7 + $0xcf8] sm:$0xff]  ;;  %v1993_v6 = vrot.slane %v3753_v42, 1 }
 0x1a6   : > { %1801 = vmatprep.subr.mxu1 %v1744_v7  ;;  %2084 = vmatpush2.msra.mxu0 %v1953_v9  ;;  %v2481_v7 = vld [vmem:[#allocation7 + $0xee0] sm:$0xff]  ;;  %v1999_v9 = vrot.slane %v3756_v1, 1 }
 0x1a7   : > { %1802 = vmatpush2.msra.mxu1 %v1743_v10  ;;  %2085 = vmatprep.subr.mxu0 %v1952_v53  ;;  %v2217_v10 = vld [vmem:[#allocation7 + $0xcf0] sm:$0xff]  ;;  %v2480_v53 = vld [vmem:[#allocation7 + $0xed8] sm:$0xff]  ;;  %v1994_v27 = vsel %vm1177_vm1, %v1988_v60, %v1993_v6 }
 0x1a8   : > { %1803 = vmatprep.subr.mxu1 %v1742_v13  ;;  %2086 = vmatpush2.msra.mxu0 %v1951_v15  ;;  %v3764_v13 = vld [vmem:[#allocation2 + $0x50] sm:$0xff] }
 0x1a9   : > { %1804 = vmatpush2.msra.mxu1 %v1741_v23  ;;  %2087 = vmatprep.subr.mxu0 %v1950_v35  ;;  %v2216_v15 = vld [vmem:[#allocation7 + $0xce8] sm:$0xff]  ;;  %v2479_v23 = vld [vmem:[#allocation7 + $0xed0] sm:$0xff] }
 0x1aa   : > { %1805 = vmatprep.subr.mxu1 %v1740_v17  ;;  %2088 = vmatpush2.msra.mxu0 %v1949_v59  ;;  %v3768_v35 = vld [vmem:[#allocation2 + $0x48] sm:$0xff]  ;;  %v2000_v17 = vsel %vm1177_vm1, %v3751_v21, %v1999_v9 }
 0x1ab   : > { %1806 = vmatpush2.msra.mxu1 %v1739_v18  ;;  %2089 = vmatprep.subr.mxu0 %v1948_v8  ;;  %v2215_v59 = vld [vmem:[#allocation7 + $0xce0] sm:$0xff]  ;;  %v2214_v18 = vld [vmem:[#allocation7 + $0xcd8] sm:$0xff]  ;;  %v1997_v8 = vrot.slane %v3764_v13, 1 }
 0x1ac   : > { %1807 = vmatprep.subr.mxu1 %v1738_v19  ;;  %2090 = vmatpush2.msra.mxu0 %v1947_v22  ;;  %v2003_v19 = vrot.slane %v3768_v35, 1  ;;  %v2213_v22 = vld [vmem:[#allocation7 + $0xcd0] sm:$0xff] }
 0x1ad   : > { %1808 = vmatpush2.msra.mxu1 %v1737_v24  ;;  %2091 = vmatprep.subr.mxu0 %v1946_v29  ;;  %v2476_v24 = vld [vmem:[#allocation7 + $0xeb8] sm:$0xff]  ;;  %v3775_v29 = vld [vmem:[#allocation2 + $0x88] sm:$0xff] }
 0x1ae   : > { %1809 = vmatprep.subr.mxu1 %v1736_v26  ;;  %2092 = vmatpush2.msra.mxu0 %v1945_v5  ;;  %v1998_v26 = vsel %vm1177_vm1, %v1993_v6, %v1997_v8  ;;  %v2212_v5 = vld [vmem:[#allocation7 + $0xcc8] sm:$0xff] }
 0x1af   : > { %1810 = vmatpush2.msra.mxu1 %v1735_v30  ;;  %2093 = vmatprep.subr.mxu0 %v1944_v12  ;;  %v2475_v30 = vld [vmem:[#allocation7 + $0xeb0] sm:$0xff]  ;;  %v3797_v6 = vld [vmem:[#allocation2 + $0x8] sm:$0xff] }
 0x1b0   : > { %1811 = vmatprep.subr.mxu1 %v1734_v31  ;;  %2094 = vmatpush2.msra.mxu0 %v1943_v34  ;;  %v3779_v12 = vld [vmem:[#allocation2 + $0x38] sm:$0xff]  ;;  %v2004_v31 = vsel %vm1177_vm1, %v1999_v9, %v2003_v19  ;;  %v2211_v34 = vld [vmem:[#allocation7 + $0xcc0] sm:$0xff] }
 0x1b1   : > { %1812 = vmatpush2.msra.mxu1 %v1733_v16  ;;  %2095 = vmatprep.subr.mxu0 %v1942_v37  ;;  %v2474_v16 = vld [vmem:[#allocation7 + $0xea8] sm:$0xff]  ;;  %v2001_v37 = vrot.slane %v3775_v29, 1  ;;  %v2203_v9 = vld [vmem:[#allocation7 + $0xc80] sm:$0xff] }
 0x1b2   : > { %1813 = vmatprep.subr.mxu1 %v1732_v32  ;;  %2096 = vmatpush2.msra.mxu0 %v1941_v38  ;;  %v2007_v32 = vrot.slane %v3779_v12, 1  ;;  %v2209_v38 = vld [vmem:[#allocation7 + $0xcb0] sm:$0xff] }
 0x1b3   : > { %1814 = vmatpush2.msra.mxu1 %v1731_v43  ;;  %2097 = vmatprep.subr.mxu0 %v1940_v39  ;;  %v3166_v43 = vld [vmem:[#allocation2 + $0xb8] sm:$0xff] }
 0x1b4   : > { %1815 = vmatprep.subr.mxu1 %v1730_v47  ;;  %2098 = vmatpush2.msra.mxu0 %v1939_v50  ;;  %v2472_v39 = vld [vmem:[#allocation7 + $0xe98] sm:$0xff]  ;;  %v3784_v47 = vld [vmem:[#allocation2 + $0xb0] sm:$0xff]  ;;  %v2002_v50 = vsel %vm1177_vm1, %v1997_v8, %v2001_v37  ;;  %v2008_v60 = vsel %vm1177_vm1, %v2003_v19, %v2007_v32 }
 0x1b5   : > { %1816 = vmatpush2.msra.mxu1 %v1729_v57  ;;  %2099 = vmatprep.subr.mxu0 %v1938_v14  ;;  %v2471_v57 = vld [vmem:[#allocation7 + $0xe90] sm:$0xff]  ;;  %v2005_v48 = vrot.slane %v3784_v47, 1 }
 0x1b6   : > { %1817 = vmatprep.subr.mxu1 %v1728_v61  ;;  %2100 = vmatpush2.msra.mxu0 %v1937_v25  ;;  %v3788_v14 = vld [vmem:[#allocation2 + $0x98] sm:$0xff]  ;;  %v2207_v61 = vld [vmem:[#allocation7 + $0xca0] sm:$0xff]  ;;  %v2470_v25 = vld [vmem:[#allocation7 + $0xe88] sm:$0xff] }
 0x1b7   : > { %1818 = vmatpush2.msra.mxu1 %v1727_v51  ;;  %2102 = vmatmul.mubr.f32.vlgmr.msra.gmra.mxu0 %v1989_v4  ;;  %v2206_v51 = vld [vmem:[#allocation7 + $0xc98] sm:$0xff]  ;;  %v3167_v4 = vld [vmem:[#allocation2 + $0x50] sm:$0xff] }
 0x1b8   : > { %2517 = vmatprep.subr.mxu0 %v2484_v45  ;;  %1819 = vmatprep.subr.mxu1 %v1726_v36  ;;  %v2011_v45 = vrot.slane %v3788_v14, 1  ;;  %v2205_v36 = vld [vmem:[#allocation7 + $0xc90] sm:$0xff] }
 0x1b9   : > { %2107 = vmatprep.mubr.f32.mxu0 %v1996_v63  ;;  %2518 = vmatpush1.msra.mxu0 %v2483_v62  ;;  %v2468_v62 = vld [vmem:[#allocation7 + $0xe78] sm:$0xff]  ;;  %v2204_v63 = vld [vmem:[#allocation7 + $0xc88] sm:$0xff]  ;;  %v2463_v19 = vld [vmem:[#allocation7 + $0xe50] sm:$0xff] }
 0x1ba   : > { %1820 = vmatpush2.msra.mxu1 %v1725_v3  ;;  %2519 = vmatprep.subr.mxu0 %v2482_v55  ;;  %v3793_v3 = vld [vmem:[#allocation2 + $0x60] sm:$0xff]  ;;  %v2006_v55 = vsel %vm1177_vm1, %v2001_v37, %v2005_v48  ;;  %v3170_v37 = vld [vmem:[#allocation2 + $0xb0] sm:$0xff] }
 0x1bb   : > { %1822 = vmatmul.mubr.f32.vlgmr.msra.gmra.mxu1 %v3515_v49  ;;  %2305 = vmatprep.subr.mxu1 %v2218_v46  ;;  %v2478_v49 = vld [vmem:[#allocation7 + $0xec8] sm:$0xff]  ;;  %v2467_v46 = vld [vmem:[#allocation7 + $0xe70] sm:$0xff] }
 0x1bc   : > { %2520 = vmatpush1.msra.mxu0 %v2481_v7  ;;  %1827 = vmatprep.mubr.f32.mxu1 %v3538_v58  ;;  %v2477_v58 = vld [vmem:[#allocation7 + $0xec0] sm:$0xff]  ;;  %v2012_v7 = vsel %vm1177_vm1, %v2007_v32, %v2011_v45  ;;  %v1902_v32 = vld [vmem:[#allocation2 + $0x40] sm:$0x1] }
 0x1bd   : > { %2108 = vmatmul.mubr.f32.gmra.mxu0 %v1994_v27  ;;  %2306 = vmatpush1.msra.mxu1 %v2217_v10  ;;  %v2466_v10 = vld [vmem:[#allocation7 + $0xe68] sm:$0xff]  ;;  %v2009_v27 = vrot.slane %v3793_v3, 1 }
 0x1be   : > { %2521 = vmatprep.subr.mxu0 %v2480_v53  ;;  %2113 = vmatprep.mubr.f32.mxu0 %v2000_v17  ;;  %v2202_v53 = vld [vmem:[#allocation7 + $0xc78] sm:$0xff]  ;;  %v3168_v17 = vld [vmem:[#allocation2 + $0x88] sm:$0xff] }
 0x1bf   : > { %2307 = vmatprep.subr.mxu1 %v2216_v15  ;;  %2522 = vmatpush1.msra.mxu0 %v2479_v23  ;;  %v2015_v15 = vrot.slane %v3797_v6, 1  ;;  %v2201_v23 = vld [vmem:[#allocation7 + $0xc70] sm:$0xff]  ;;  %v2010_v8 = vsel %vm1177_vm1, %v2005_v48, %v2009_v27 }
 0x1c0   : > { %2308 = vmatpush1.msra.mxu1 %v2215_v59  ;;  %2523 = vmatprep.subr.mxu0 %v2478_v49  ;;  %v2464_v59 = vld [vmem:[#allocation7 + $0xe58] sm:$0xff]  ;;  %v2193_v48 = vld [vmem:[#allocation7 + $0xc30] sm:$0xff] }
 0x1c1   : > { %1828 = vmatmul.mubr.f32.gmra.mxu1 %v3526_v54  ;;  %2309 = vmatprep.subr.mxu1 %v2214_v18  ;;  %v2210_v54 = vld [vmem:[#allocation7 + $0xcb8] sm:$0xff] }
 0x1c2   : > { %2524 = vmatpush1.msra.mxu0 %v2477_v58  ;;  %1833 = vmatprep.mubr.f32.mxu1 %v3556_v2  ;;  %v2473_v2 = vld [vmem:[#allocation7 + $0xea0] sm:$0xff]  ;;  %v3169_v18 = vld [vmem:[#allocation2 + $0x38] sm:$0xff]  ;;  %v2200_v58 = vld [vmem:[#allocation7 + $0xc68] sm:$0xff] }
 0x1c3   : > { %2114 = vmatmul.mubr.f32.gmra.mxu0 %v1998_v26  ;;  %2310 = vmatpush1.msra.mxu1 %v2213_v22  ;;  %v3802_v49 = vld [vmem:[#allocation2 + $0xa0] sm:$0xff]  ;;  %v1903_v22 = vld [vmem:[#allocation2 + $0xa8] sm:$0x1] }
 0x1c4   : > { %2525 = vmatprep.subr.mxu0 %v2476_v24  ;;  %2119 = vmatprep.mubr.f32.mxu0 %v2004_v31  ;;  %v2016_v24 = vsel %vm1177_vm1, %v2011_v45, %v2015_v15  ;;  %v2199_v26 = vld [vmem:[#allocation7 + $0xc60] sm:$0xff]  ;;  %v2013_v31 = vrot.slane %v3802_v49, 1  ;;  %v2456_v45 = vld [vmem:[#allocation7 + $0xe18] sm:$0xff] }
 0x1c5   : > { %2311 = vmatprep.subr.mxu1 %v2212_v5  ;;  %2526 = vmatpush1.msra.mxu0 %v2475_v30  ;;  %v2462_v5 = vld [vmem:[#allocation7 + $0xe48] sm:$0xff]  ;;  %v2198_v30 = vld [vmem:[#allocation7 + $0xc58] sm:$0xff] }
 0x1c6   : > { %2312 = vmatpush1.msra.mxu1 %v2211_v34  ;;  %2527 = vmatprep.subr.mxu0 %v2474_v16  ;;  %v2461_v34 = vld [vmem:[#allocation7 + $0xe40] sm:$0xff]  ;;  %v2019_v16 = vrot.slane %v1903_v22, 1  ;;  %v2249_v22 = vld [vmem:[#allocation7 + $0xdf0] sm:$0xff] }
 0x1c7   : > { %1834 = vmatmul.mubr.f32.gmra.mxu1 %v3166_v43  ;;  %2313 = vmatprep.subr.mxu1 %v2210_v54  ;;  %v2197_v54 = vld [vmem:[#allocation7 + $0xc50] sm:$0xff]  ;;  %v2014_v43 = vsel %vm1177_vm1, %v2009_v27, %v2013_v31 }
 0x1c8   : > { %2528 = vmatpush1.msra.mxu0 %v2473_v2  ;;  %1839 = vmatprep.mubr.f32.mxu1 %v3581_v11  ;;  %v2469_v11 = vld [vmem:[#allocation7 + $0xe80] sm:$0xff]  ;;  %v2460_v2 = vld [vmem:[#allocation7 + $0xe38] sm:$0xff]  ;;  %v2189_v27 = vld [vmem:[#allocation7 + $0xc10] sm:$0xff] }
 0x1c9   : > { %2120 = vmatmul.mubr.f32.gmra.mxu0 %v2002_v50  ;;  %2314 = vmatpush1.msra.mxu1 %v2209_v38  ;;  %v3171_v38 = vld [vmem:[#allocation2 + $0x98] sm:$0xff] }
 0x1ca   : > { %2529 = vmatprep.subr.mxu0 %v2472_v39  ;;  %2125 = vmatprep.mubr.f32.mxu0 %v2008_v60  ;;  %v2196_v39 = vld [vmem:[#allocation7 + $0xc48] sm:$0xff]  ;;  %v2459_v50 = vld [vmem:[#allocation7 + $0xe30] sm:$0xff] }
 0x1cb   : > { %2315 = vmatprep.subr.mxu1 %v2208_v52  ;;  %2530 = vmatpush1.msra.mxu0 %v2471_v57  ;;  %v2020_v52 = vsel %vm1177_vm1, %v2015_v15, %v2019_v16  ;;  %v2195_v57 = vld [vmem:[#allocation7 + $0xc40] sm:$0xff]  ;;  %v2458_v60 = vld [vmem:[#allocation7 + $0xe28] sm:$0xff]  ;;  %v2516_v15 = vld [vmem:[#allocation7 + $0xff8] sm:$0xff] }
 0x1cc   : > { %2316 = vmatpush1.msra.mxu1 %v2207_v61  ;;  %2531 = vmatprep.subr.mxu0 %v2470_v25  ;;  %v2194_v61 = vld [vmem:[#allocation7 + $0xc38] sm:$0xff]  ;;  %v2017_v25 = vrot.slane %v1902_v32, 1  ;;  %v2509_v16 = vld [vmem:[#allocation7 + $0xfc0] sm:$0xff]  ;;  %v2507_v32 = vld [vmem:[#allocation7 + $0xfb0] sm:$0xff] }
 0x1cd   : > { %1840 = vmatmul.mubr.f32.gmra.mxu1 %v3167_v4  ;;  %2317 = vmatprep.subr.mxu1 %v2206_v51  ;;  %v2457_v51 = vld [vmem:[#allocation7 + $0xe20] sm:$0xff]  ;;  %v2183_v4 = vld [vmem:[#allocation2 + $0x70] sm:$0x80] }
 0x1ce   : > { %2532 = vmatpush1.msra.mxu0 %v2469_v11  ;;  %1845 = vmatprep.mubr.f32.mxu1 %v3604_v20  ;;  %v2465_v20 = vld [vmem:[#allocation7 + $0xe60] sm:$0xff] }
 0x1cf   : > { %2126 = vmatmul.mubr.f32.gmra.mxu0 %v2006_v55  ;;  %2318 = vmatpush1.msra.mxu1 %v2205_v36  ;;  %v3172_v11 = vld [vmem:[#allocation2 + $0x60] sm:$0xff]  ;;  %v2192_v36 = vld [vmem:[#allocation7 + $0xc28] sm:$0xff]  ;;  %v2455_v55 = vld [vmem:[#allocation7 + $0xe10] sm:$0xff] }
 0x1d0   : > { %2533 = vmatprep.subr.mxu0 %v2468_v62  ;;  %2131 = vmatprep.mubr.f32.mxu0 %v2012_v7  ;;  %v2018_v62 = vsel %vm1177_vm1, %v2013_v31, %v2017_v25  ;;  %v2190_v7 = vld [vmem:[#allocation7 + $0xc18] sm:$0xff]  ;;  %v2510_v31 = vld [vmem:[#allocation7 + $0xfc8] sm:$0xff]  ;;  %v2239_v25 = vld [vmem:[#allocation7 + $0xda0] sm:$0xff] }
 0x1d1   : > { %2319 = vmatprep.subr.mxu1 %v2204_v63  ;;  %2534 = vmatpush1.msra.mxu0 %v2467_v46  ;;  %v2191_v63 = vld [vmem:[#allocation7 + $0xc20] sm:$0xff]  ;;  %v2454_v46 = vld [vmem:[#allocation7 + $0xe08] sm:$0xff] }
 0x1d2   : > { %2320 = vmatpush1.msra.mxu1 %v2203_v9  ;;  %2535 = vmatprep.subr.mxu0 %v2466_v10  ;;  %v2258_v9 = vrot.slane %v2183_v4, 7  ;;  %v3811_v10 = vld [vmem:[#allocation2 + $0x78] sm:$0xff]  ;;  %v2236_v4 = vld [vmem:[#allocation7 + $0xd88] sm:$0xff] }
 0x1d3   : > { %1846 = vmatmul.mubr.f32.gmra.mxu1 %v3168_v17  ;;  %2321 = vmatprep.subr.mxu1 %v2202_v53  ;;  %v2453_v53 = vld [vmem:[#allocation7 + $0xe00] sm:$0xff]  ;;  %v2515_v17 = vld [vmem:[#allocation7 + $0xff0] sm:$0xff] }
 0x1d4   : > { %2536 = vmatpush1.msra.mxu0 %v2465_v20  ;;  %1851 = vmatprep.mubr.f32.mxu1 %v3169_v18  ;;  %v2259_v20 = vrot.slane %v3811_v10, 7  ;;  %v2187_v18 = vld [vmem:[#allocation7 + $0xc00] sm:$0xff] }
 0x1d5   : > { %2132 = vmatmul.mubr.f32.gmra.mxu0 %v2010_v8  ;;  %2322 = vmatpush1.msra.mxu1 %v2201_v23  ;;  %v2188_v23 = vld [vmem:[#allocation7 + $0xc08] sm:$0xff] }
 0x1d6   : > { %2537 = vmatprep.subr.mxu0 %v2464_v59  ;;  %2137 = vmatprep.mubr.f32.mxu0 %v2016_v24  ;;  %v2260_v59 = vsel %vm636_vm0, %v2258_v9, %v2259_v20  ;;  %v2514_v8 = vld [vmem:[#allocation7 + $0xfe8] sm:$0xff]  ;;  %v2512_v24 = vld [vmem:[#allocation7 + $0xfd8] sm:$0xff]  ;;  %v2233_v9 = vld [vmem:[#allocation7 + $0xd70] sm:$0xff] }
 0x1d7   : > { %2323 = vmatprep.subr.mxu1 %v2200_v58  ;;  %2538 = vmatpush1.msra.mxu0 %v2463_v19  ;;  %v2250_v58 = vld [vmem:[#allocation7 + $0xdf8] sm:$0xff]  ;;  %v2513_v19 = vld [vmem:[#allocation7 + $0xfe0] sm:$0xff] }
 0x1d8   : > { %2324 = vmatpush1.msra.mxu1 %v2199_v26  ;;  %2539 = vmatprep.subr.mxu0 %v2462_v5  ;;  %v2248_v26 = vld [vmem:[#allocation7 + $0xde8] sm:$0xff]  ;;  %v2511_v5 = vld [vmem:[#allocation7 + $0xfd0] sm:$0xff] }
 0x1d9   : > { %1852 = vmatmul.mubr.f32.gmra.mxu1 %v3170_v37  ;;  %2325 = vmatprep.subr.mxu1 %v2198_v30  ;;  %v2247_v30 = vld [vmem:[#allocation7 + $0xde0] sm:$0xff]  ;;  %v2508_v37 = vld [vmem:[#allocation7 + $0xfb8] sm:$0xff] }
 0x1da   : > { %2540 = vmatpush1.msra.mxu0 %v2461_v34  ;;  %1857 = vmatprep.mubr.f32.mxu1 %v3171_v38  ;;  %v2246_v34 = vld [vmem:[#allocation7 + $0xdd8] sm:$0xff]  ;;  %v2243_v38 = vld [vmem:[#allocation7 + $0xdc0] sm:$0xff] }
 0x1db   : > { %2138 = vmatmul.mubr.f32.gmra.mxu0 %v2014_v43  ;;  %2326 = vmatpush1.msra.mxu1 %v2197_v54  ;;  %v2245_v54 = vld [vmem:[#allocation7 + $0xdd0] sm:$0xff]  ;;  %v2506_v43 = vld [vmem:[#allocation7 + $0xfa8] sm:$0xff] }
 0x1dc   : > { %2541 = vmatprep.subr.mxu0 %v2460_v2  ;;  %2143 = vmatprep.mubr.f32.mxu0 %v2020_v52  ;;  %v2244_v2 = vld [vmem:[#allocation7 + $0xdc8] sm:$0xff]  ;;  %v2241_v52 = vld [vmem:[#allocation7 + $0xdb0] sm:$0xff] }
 0x1dd   : > { %2327 = vmatprep.subr.mxu1 %v2196_v39  ;;  %2542 = vmatpush1.msra.mxu0 %v2459_v50  ;;  %v2242_v39 = vld [vmem:[#allocation7 + $0xdb8] sm:$0xff]  ;;  %v2505_v50 = vld [vmem:[#allocation7 + $0xfa0] sm:$0xff] }
 0x1de   : > { %2328 = vmatpush1.msra.mxu1 %v2195_v57  ;;  %2543 = vmatprep.subr.mxu0 %v2458_v60  ;;  %v2504_v57 = vld [vmem:[#allocation7 + $0xf98] sm:$0xff]  ;;  %v2240_v60 = vld [vmem:[#allocation7 + $0xda8] sm:$0xff] }
 0x1df   : > { %1858 = vmatmul.mubr.f32.gmra.mxu1 %v3172_v11  ;;  %2329 = vmatprep.subr.mxu1 %v2194_v61  ;;  %v2503_v61 = vld [vmem:[#allocation7 + $0xf90] sm:$0xff]  ;;  %v2501_v11 = vld [vmem:[#allocation7 + $0xf80] sm:$0xff] }
 0x1e0   : > { %2544 = vmatpush1.msra.mxu0 %v2457_v51  ;;  %1863 = vmatprep.mubr.f32.mxu1 %v3797_v6  ;;  %v2502_v51 = vld [vmem:[#allocation7 + $0xf88] sm:$0xff] }
 0x1e1   : > { %2144 = vmatmul.mubr.f32.gmra.mxu0 %v2018_v62  ;;  %2330 = vmatpush1.msra.mxu1 %v2193_v48  ;;  %v2238_v48 = vld [vmem:[#allocation7 + $0xd98] sm:$0xff]  ;;  %v2499_v62 = vld [vmem:[#allocation7 + $0xf70] sm:$0xff] }
 0x1e2   : > { %2545 = vmatprep.subr.mxu0 %v2456_v45  ;;  %2331 = vmatprep.subr.mxu1 %v2192_v36  ;;  %v2237_v45 = vld [vmem:[#allocation7 + $0xd90] sm:$0xff]  ;;  %v2500_v36 = vld [vmem:[#allocation7 + $0xf78] sm:$0xff] }
 0x1e3   : > { %2546 = vmatpush1.msra.mxu0 %v2455_v55  ;;  %2581 = vmatprep.mubr.f32.mxu0 %v3811_v10  ;;  %v2235_v55 = vld [vmem:[#allocation7 + $0xd80] sm:$0xff]  ;;  %v2692_v10 = vld [vmem:[#allocation7 + $0x10d8] sm:$0xff] }
 0x1e4   : > { %2332 = vmatpush1.msra.mxu1 %v2191_v63  ;;  %2547 = vmatprep.subr.mxu0 %v2454_v46  ;;  %v2498_v63 = vld [vmem:[#allocation7 + $0xf68] sm:$0xff]  ;;  %v2234_v46 = vld [vmem:[#allocation7 + $0xd78] sm:$0xff] }
 0x1e5   : > { %1864 = vmatmul.mubr.f32.gmra.mxu1 %v3802_v49  ;;  %2333 = vmatprep.subr.mxu1 %v2190_v7  ;;  %v2497_v7 = vld [vmem:[#allocation7 + $0xf60] sm:$0xff] }
 0x1e6   : > { %2548 = vmatpush1.msra.mxu0 %v2453_v53  ;;  %2334 = vmatpush1.msra.mxu1 %v2189_v27  ;;  %v2496_v53 = vld [vmem:[#allocation7 + $0xf58] sm:$0xff]  ;;  %v2232_v27 = vld [vmem:[#allocation7 + $0xd68] sm:$0xff] }
 0x1e7   : > { %2369 = vmatprep.mubr.f32.mxu1 %v2260_v59  ;;  %2549 = vmatprep.subr.mxu0 %v2516_v15  ;;  %v2495_v15 = vld [vmem:[#allocation7 + $0xf50] sm:$0xff]  ;;  %v2230_v59 = vld [vmem:[#allocation7 + $0xd58] sm:$0xff] }
 0x1e8   : > { %2335 = vmatprep.subr.mxu1 %v2188_v23  ;;  %2550 = vmatpush2.msra.mxu0 %v2515_v17  ;;  %v2231_v23 = vld [vmem:[#allocation7 + $0xd60] sm:$0xff]  ;;  %v2494_v17 = vld [vmem:[#allocation7 + $0xf48] sm:$0xff] }
 0x1e9   : > { %2336 = vmatpush1.msra.mxu1 %v2187_v18  ;;  %2551 = vmatprep.subr.mxu0 %v2514_v8  ;;  %v2493_v18 = vld [vmem:[#allocation7 + $0xf40] sm:$0xff]  ;;  %v2229_v8 = vld [vmem:[#allocation7 + $0xd50] sm:$0xff] }
 0x1ea   : > { %2337 = vmatprep.subr.mxu1 %v2250_v58  ;;  %2552 = vmatpush2.msra.mxu0 %v2513_v19  ;;  %v2492_v58 = vld [vmem:[#allocation7 + $0xf38] sm:$0xff]  ;;  %v2228_v19 = vld [vmem:[#allocation7 + $0xd48] sm:$0xff] }
 0x1eb   : > { %2338 = vmatpush2.msra.mxu1 %v2249_v22  ;;  %2553 = vmatprep.subr.mxu0 %v2512_v24  ;;  %v2491_v22 = vld [vmem:[#allocation7 + $0xf30] sm:$0xff]  ;;  %v2227_v24 = vld [vmem:[#allocation7 + $0xd40] sm:$0xff] }
 0x1ec   : > { %2339 = vmatprep.subr.mxu1 %v2248_v26  ;;  %2554 = vmatpush2.msra.mxu0 %v2511_v5  ;;  %v2490_v26 = vld [vmem:[#allocation7 + $0xf28] sm:$0xff]  ;;  %v2226_v5 = vld [vmem:[#allocation7 + $0xd38] sm:$0xff] }
 0x1ed   : > { %2340 = vmatpush2.msra.mxu1 %v2247_v30  ;;  %2555 = vmatprep.subr.mxu0 %v2510_v31  ;;  %v2489_v30 = vld [vmem:[#allocation7 + $0xf20] sm:$0xff]  ;;  %v2225_v31 = vld [vmem:[#allocation7 + $0xd30] sm:$0xff] }
 0x1ee   : > { %2341 = vmatprep.subr.mxu1 %v2246_v34  ;;  %2556 = vmatpush2.msra.mxu0 %v2509_v16  ;;  %v2488_v34 = vld [vmem:[#allocation7 + $0xf18] sm:$0xff]  ;;  %v2224_v16 = vld [vmem:[#allocation7 + $0xd28] sm:$0xff] }
 0x1ef   : > { %2342 = vmatpush2.msra.mxu1 %v2245_v54  ;;  %2557 = vmatprep.subr.mxu0 %v2508_v37  ;;  %v2487_v54 = vld [vmem:[#allocation7 + $0xf10] sm:$0xff]  ;;  %v2223_v37 = vld [vmem:[#allocation7 + $0xd20] sm:$0xff] }
 0x1f0   : > { %2343 = vmatprep.subr.mxu1 %v2244_v2  ;;  %2558 = vmatpush2.msra.mxu0 %v2507_v32  ;;  %v2486_v2 = vld [vmem:[#allocation7 + $0xf08] sm:$0xff]  ;;  %v2222_v32 = vld [vmem:[#allocation7 + $0xd18] sm:$0xff] }
 0x1f1   : > { %2344 = vmatpush2.msra.mxu1 %v2243_v38  ;;  %2559 = vmatprep.subr.mxu0 %v2506_v43  ;;  %v2485_v38 = vld [vmem:[#allocation7 + $0xf00] sm:$0xff]  ;;  %v2221_v43 = vld [vmem:[#allocation7 + $0xd10] sm:$0xff] }
 0x1f2   : > { %2345 = vmatprep.subr.mxu1 %v2242_v39  ;;  %2560 = vmatpush2.msra.mxu0 %v2505_v50  ;;  %v2182_v39 = vld [vmem:[#allocation2 + $0x68] sm:$0x80] }
 0x1f3   : > { %2346 = vmatpush2.msra.mxu1 %v2241_v52  ;;  %2561 = vmatprep.subr.mxu0 %v2504_v57  ;;  %v2220_v50 = vld [vmem:[#allocation7 + $0xd08] sm:$0xff]  ;;  %v2256_v52 = vrot.slane %v3745_v28, 7  ;;  %v2219_v57 = vld [vmem:[#allocation7 + $0xd00] sm:$0xff] }
 0x1f4   : > { %2347 = vmatprep.subr.mxu1 %v2240_v60  ;;  %2562 = vmatpush2.msra.mxu0 %v2503_v61  ;;  %v2263_v60 = vrot.slane %v3747_v56, 7  ;;  %v2255_v61 = vrot.slane %v2182_v39, 7  ;;  %v2275_v39 = vrot.slane %v3779_v12, 7 }
 0x1f5   : > { %2348 = vmatpush2.msra.mxu1 %v2239_v25  ;;  %2563 = vmatprep.subr.mxu0 %v2502_v51  ;;  %v2696_v25 = vld [vmem:[#allocation7 + $0x10f8] sm:$0xff]  ;;  %v3823_v51 = vpop.f32.mrf.mxu0 }
 0x1f6   : > { %2349 = vmatprep.subr.mxu1 %v2238_v48  ;;  %2564 = vmatpush2.msra.mxu0 %v2501_v11  ;;  %v2257_v48 = vsel %vm636_vm0, %v2255_v61, %v2256_v52  ;;  %v2695_v11 = vld [vmem:[#allocation7 + $0x10f0] sm:$0xff] }
 0x1f7   : > { %2350 = vmatpush2.msra.mxu1 %v2237_v45  ;;  %2565 = vmatprep.subr.mxu0 %v2500_v36  ;;  %v2264_v45 = vsel %vm636_vm0, %v2259_v20, %v2263_v60  ;;  %v2694_v36 = vld [vmem:[#allocation7 + $0x10e8] sm:$0xff] }
 0x1f8   : > { %2351 = vmatprep.subr.mxu1 %v2236_v4  ;;  %2566 = vmatpush2.msra.mxu0 %v2499_v62  ;;  %v3830_v62 = vpop.f32.mrf.mxu1 }
 0x1f9   : > { %2352 = vmatpush2.msra.mxu1 %v2235_v55  ;;  %2567 = vmatprep.subr.mxu0 %v2498_v63  ;;  %v2267_v55 = vrot.slane %v3756_v1, 7  ;;  %v3834_v63 = vpop.permute.xlu0 %815 }
 0x1fa   : > { %2353 = vmatprep.subr.mxu1 %v2234_v46  ;;  %2568 = vmatpush2.msra.mxu0 %v2497_v7  ;;  %v3837_v7 = vpop.permute.xlu1 %820 }
 0x1fb   : > { %2354 = vmatpush2.msra.mxu1 %v2233_v9  ;;  %2569 = vmatprep.subr.mxu0 %v2496_v53  ;;  %v2691_v53 = vld [vmem:[#allocation7 + $0x10d0] sm:$0xff] }
 0x1fc   : > { %2355 = vmatprep.subr.mxu1 %v2232_v27  ;;  %2570 = vmatpush2.msra.mxu0 %v2495_v15  ;;  %v2268_v15 = vsel %vm636_vm0, %v2263_v60, %v2267_v55 }
 0x1fd   : > { %2356 = vmatpush2.msra.mxu1 %v2231_v23  ;;  %2571 = vmatprep.subr.mxu0 %v2494_v17  ;;  %v2690_v23 = vld [vmem:[#allocation7 + $0x10c8] sm:$0xff] }
 0x1fe   : > { %2357 = vmatprep.subr.mxu1 %v2230_v59  ;;  %2572 = vmatpush2.msra.mxu0 %v2493_v18  ;;  %v2689_v59 = vld [vmem:[#allocation7 + $0x10c0] sm:$0xff]  ;;  %v2271_v18 = vrot.slane %v3768_v35, 7 }
 0x1ff   : > { %2358 = vmatpush2.msra.mxu1 %v2229_v8  ;;  %2573 = vmatprep.subr.mxu0 %v2492_v58 }
 0x200   : > { %2359 = vmatprep.subr.mxu1 %v2228_v19  ;;  %2574 = vmatpush2.msra.mxu0 %v2491_v22  ;;  %v2688_v22 = vld [vmem:[#allocation7 + $0x10b8] sm:$0xff] }
 0x201   : > { %2360 = vmatpush2.msra.mxu1 %v2227_v24  ;;  %2575 = vmatprep.subr.mxu0 %v2490_v26 }
 0x202   : > { %2361 = vmatprep.subr.mxu1 %v2226_v5  ;;  %2576 = vmatpush2.msra.mxu0 %v2489_v30 }
 0x203   : > { %2362 = vmatpush2.msra.mxu1 %v2225_v31  ;;  %2577 = vmatprep.subr.mxu0 %v2488_v34  ;;  %v2687_v31 = vld [vmem:[#allocation7 + $0x10b0] sm:$0xff] }
 0x204   : > { %2363 = vmatprep.subr.mxu1 %v2224_v16  ;;  %2578 = vmatpush2.msra.mxu0 %v2487_v54  ;;  %v3853_v16 = vpop.permute.xlu1 %825  ;;  %v2272_v54 = vsel %vm636_vm0, %v2267_v55, %v2271_v18 }
 0x205   : > { %2364 = vmatpush2.msra.mxu1 %v2223_v37  ;;  %2579 = vmatprep.subr.mxu0 %v2486_v2  ;;  %v2269_v37 = vrot.slane %v3775_v29, 7 }
 0x206   : > { %2365 = vmatprep.subr.mxu1 %v2222_v32  ;;  %2580 = vmatpush2.msra.mxu0 %v2485_v38 }
 0x207   : > { %2366 = vmatpush2.msra.mxu1 %v2221_v43  ;;  %2582 = vmatmul.mubr.f32.vlgmr.msra.gmra.mxu0 %v3745_v28  ;;  %v2261_v28 = vrot.slane %v3753_v42, 7  ;;  %v2685_v43 = vld [vmem:[#allocation7 + $0x10a0] sm:$0xff] }
 0x208   : > { %2367 = vmatprep.subr.mxu1 %v2220_v50  ;;  %2587 = vmatprep.mubr.f32.mxu0 %v3747_v56  ;;  %v2693_v56 = vld [vmem:[#allocation7 + $0x10e0] sm:$0xff] }
 0x209   : > { %2368 = vmatpush2.msra.mxu1 %v2219_v57  ;;  %v2262_v9 = vsel %vm636_vm0, %v2256_v52, %v2261_v28  ;;  %v2684_v52 = vld [vmem:[#allocation7 + $0x1098] sm:$0xff] }
 0x20a   : > { %2370 = vmatmul.mubr.f32.vlgmr.msra.gmra.mxu1 %v2257_v48  ;;  %2797 = vmatprep.subr.mxu1 %v2696_v25  ;;  %v1019_v4 = vpop.f32.mrf.mxu0  ;;  %v3866_v48 = vpop.permute.xlu0 %830 }
 0x20b   : > { %2375 = vmatprep.mubr.f32.mxu1 %v2264_v45  ;;  %2588 = vmatmul.mubr.f32.gmra.mxu0 %v3753_v42 }
 0x20c   : > { %2798 = vmatpush1.msra.mxu1 %v2695_v11  ;;  %2593 = vmatprep.mubr.f32.mxu0 %v3756_v1  ;;  %v1021_v46 = vpop.f32.mrf.mxu0  ;;  %v2265_v1 = vrot.slane %v3764_v13, 7  ;;  %v2683_v11 = vld [vmem:[#allocation7 + $0x1090] sm:$0xff] }
 0x20d   : > { %2799 = vmatprep.subr.mxu1 %v2694_v36  ;;  %v759_v20 = vpop.f32.mrf.mxu1 }
 0x20e   : > { %2800 = vmatpush1.msra.mxu1 %v2693_v56  ;;  %v850_v42 = vmul.f32 %v3834_v63, %v759_v20  ;;  %v1025_v27 = vpop.f32.mrf.mxu0  ;;  %v2273_v56 = vrot.slane %v3784_v47, 7 }
 0x20f   : > { %2376 = vmatmul.mubr.f32.gmra.mxu1 %v2262_v9  ;;  %2801 = vmatprep.subr.mxu1 %v2692_v10  ;;  %v761_v17 = vpop.f32.mrf.mxu1  ;;  %v2681_v10 = vld [vmem:[#allocation7 + $0x1080] sm:$0xff] }
 0x210   : > { %2381 = vmatprep.mubr.f32.mxu1 %v2268_v15  ;;  %2594 = vmatmul.mubr.f32.gmra.mxu0 %v3764_v13  ;;  %v3845_v8 = vadd.f32 %v1019_v4, %v850_v42  ;;  %v851_v58 = vmul.f32 %v3834_v63, %v761_v17  ;;  %v1027_v19 = vpop.f32.mrf.mxu0  ;;  %v2266_v13 = vsel %vm636_vm0, %v2261_v28, %v2265_v1  ;;  %v2682_v4 = vld [vmem:[#allocation7 + $0x1088] sm:$0xff]  ;;  %v2680_v42 = vld [vmem:[#allocation7 + $0x1078] sm:$0xff]  ;;  %v3880_v15 = vpop.permute.xlu1 %835  ;;  %v2679_v17 = vld [vmem:[#allocation7 + $0x1070] sm:$0xff] }
 0x211   : > { %2802 = vmatpush1.msra.mxu1 %v2691_v53  ;;  %2599 = vmatprep.mubr.f32.mxu0 %v3768_v35  ;;  %v765_v24 = vpop.f32.mrf.mxu1  ;;  %v2686_v35 = vld [vmem:[#allocation7 + $0x10a8] sm:$0xff] }
 0x212   : > { %2803 = vmatprep.subr.mxu1 %v2690_v23  ;;  %v3849_v26 = vadd.f32 %v1021_v46, %v851_v58  ;;  %v852_v5 = vmul.f32 %v3837_v7, %v765_v24  ;;  %v1031_v30 = vpop.f32.mrf.mxu0  ;;  %v2279_v46 = vrot.slane %v3788_v14, 7 }
 0x213   : > { %2804 = vmatpush1.msra.mxu1 %v2689_v59  ;;  %v767_v34 = vpop.f32.mrf.mxu1 }
 0x214   : > { %2382 = vmatmul.mubr.f32.gmra.mxu1 %v2266_v13  ;;  %2805 = vmatprep.subr.mxu1 %v2688_v22  ;;  %v3857_v2 = vadd.f32 %v1025_v27, %v852_v5  ;;  %v853_v32 = vmul.f32 %v3837_v7, %v767_v34  ;;  %v1033_v38 = vpop.f32.mrf.mxu0  ;;  %v2280_v58 = vsel %vm636_vm0, %v2275_v39, %v2279_v46  ;;  %v2677_v5 = vld [vmem:[#allocation7 + $0x1060] sm:$0xff]  ;;  %v2676_v34 = vld [vmem:[#allocation7 + $0x1058] sm:$0xff] }
 0x215   : > { %2387 = vmatprep.mubr.f32.mxu1 %v2272_v54  ;;  %2600 = vmatmul.mubr.f32.gmra.mxu0 %v3775_v29  ;;  %v771_v50 = vpop.f32.mrf.mxu1  ;;  %v2270_v29 = vsel %vm636_vm0, %v2265_v1, %v2269_v37  ;;  %v2274_v1 = vsel %vm636_vm0, %v2269_v37, %v2273_v56  ;;  %v2185_v37 = vld [vmem:[#allocation2 + $0xa8] sm:$0x7f] }
 0x216   : > { %2806 = vmatpush1.msra.mxu1 %v2687_v31  ;;  %2605 = vmatprep.mubr.f32.mxu0 %v3779_v12  ;;  %v3863_v57 = vadd.f32 %v1027_v19, %v853_v32  ;;  %v854_v60 = vmul.f32 %v3853_v16, %v771_v50  ;;  %v1037_v61 = vpop.f32.mrf.mxu0  ;;  %v2276_v12 = vsel %vm636_vm0, %v2271_v18, %v2275_v39  ;;  %v2277_v19 = vrot.slane %v3793_v3, 7  ;;  %v3893_v31 = vpop.permute.xlu0 %840 }
 0x217   : > { %2807 = vmatprep.subr.mxu1 %v2686_v35  ;;  %v773_v25 = vpop.f32.mrf.mxu1 }
 0x218   : > { %2808 = vmatpush1.msra.mxu1 %v2685_v43  ;;  %v3869_v45 = vadd.f32 %v1031_v30, %v854_v60  ;;  %v855_v36 = vmul.f32 %v3853_v16, %v773_v25  ;;  %v1039_v28 = vpop.f32.mrf.mxu0  ;;  %v2283_v30 = vrot.slane %v3797_v6, 7  ;;  %v2675_v43 = vld [vmem:[#allocation7 + $0x1050] sm:$0xff]  ;;  %v2281_v60 = vrot.slane %v3802_v49, 7  ;;  %v2673_v25 = vld [vmem:[#allocation7 + $0x1040] sm:$0xff] }
 0x219   : > { %2388 = vmatmul.mubr.f32.gmra.mxu1 %v2270_v29  ;;  %2809 = vmatprep.subr.mxu1 %v2684_v52  ;;  %v777_v55 = vpop.f32.mrf.mxu1  ;;  %v2674_v52 = vld [vmem:[#allocation7 + $0x1048] sm:$0xff]  ;;  %v2287_v29 = vrot.slane %v2185_v37, 7 }
 0x21a   : > { %2393 = vmatprep.mubr.f32.mxu1 %v2276_v12  ;;  %2606 = vmatmul.mubr.f32.gmra.mxu0 %v3784_v47  ;;  %v3876_v20 = vadd.f32 %v1033_v38, %v855_v36  ;;  %v856_v9 = vmul.f32 %v3866_v48, %v777_v55  ;;  %v1043_v53 = vpop.f32.mrf.mxu0  ;;  %v2672_v12 = vld [vmem:[#allocation7 + $0x1038] sm:$0xff]  ;;  %v2671_v55 = vld [vmem:[#allocation7 + $0x1030] sm:$0xff] }
 0x21b   : > { %2810 = vmatpush1.msra.mxu1 %v2683_v11  ;;  %2611 = vmatprep.mubr.f32.mxu0 %v3788_v14  ;;  %v779_v27 = vpop.f32.mrf.mxu1  ;;  %v2678_v14 = vld [vmem:[#allocation7 + $0x1068] sm:$0xff]  ;;  %v2184_v11 = vld [vmem:[#allocation2 + $0x40] sm:$0x7f] }
 0x21c   : > { %2811 = vmatprep.subr.mxu1 %v2682_v4  ;;  %v3882_v23 = vadd.f32 %v1037_v61, %v856_v9  ;;  %v857_v47 = vmul.f32 %v3866_v48, %v779_v27  ;;  %v1045_v59 = vpop.f32.mrf.mxu0  ;;  %v3909_v4 = vld [vmem:[#allocation2 + $0x28] sm:$0xff]  ;;  %v2285_v9 = vrot.slane %v2184_v11, 7 }
 0x21d   : > { %2812 = vmatpush1.msra.mxu1 %v2681_v10  ;;  %v783_v18 = vpop.f32.mrf.mxu1  ;;  %v2669_v27 = vld [vmem:[#allocation7 + $0x1020] sm:$0xff] }
 0x21e   : > { %2394 = vmatmul.mubr.f32.gmra.mxu1 %v2274_v1  ;;  %2813 = vmatprep.subr.mxu1 %v2680_v42  ;;  %v3888_v22 = vadd.f32 %v1039_v28, %v857_v47  ;;  %v858_v24 = vmul.f32 %v3880_v15, %v783_v18  ;;  %v1049_v32 = vpop.f32.mrf.mxu0  ;;  %v2288_v42 = vsel %vm636_vm0, %v2283_v30, %v2287_v29  ;;  %v2668_v47 = vld [vmem:[#allocation7 + $0x1018] sm:$0xff]  ;;  %v2667_v1 = vld [vmem:[#allocation7 + $0x1010] sm:$0xff]  ;;  %v2666_v18 = vld [vmem:[#allocation7 + $0x1008] sm:$0xff] }
 0x21f   : > { %2399 = vmatprep.mubr.f32.mxu1 %v2280_v58  ;;  %2612 = vmatmul.mubr.f32.gmra.mxu0 %v3793_v3  ;;  %v785_v13 = vpop.f32.mrf.mxu1  ;;  %v2278_v3 = vsel %vm636_vm0, %v2273_v56, %v2277_v19  ;;  %v3918_v58 = vpop.permute.xlu1 %845  ;;  %v2722_v29 = vld [vmem:[#allocation7 + $0x11c8] sm:$0xff] }
 0x220   : > { %2814 = vmatpush1.msra.mxu1 %v2679_v17  ;;  %2617 = vmatprep.mubr.f32.mxu0 %v3797_v6  ;;  %v3896_v54 = vadd.f32 %v1043_v53, %v858_v24  ;;  %v859_v35 = vmul.f32 %v3880_v15, %v785_v13  ;;  %v2284_v6 = vsel %vm636_vm0, %v2279_v46, %v2283_v30  ;;  %v1051_v56 = vpop.f32.mrf.mxu0  ;;  %v2670_v46 = vld [vmem:[#allocation7 + $0x1028] sm:$0xff]  ;;  %v2647_v53 = vld [vmem:[#allocation2 + $0x78] sm:$0xfe] }
 0x221   : > { %2815 = vmatprep.subr.mxu1 %v2678_v14  ;;  %v789_v38 = vpop.f32.mrf.mxu1  ;;  %v2750_v17 = vrot.slane %v2647_v53, 1  ;;  %v2728_v24 = vld [vmem:[#allocation7 + $0x11f8] sm:$0xff]  ;;  %v2727_v13 = vld [vmem:[#allocation7 + $0x11f0] sm:$0xff]  ;;  %v2718_v53 = vld [vmem:[#allocation7 + $0x11a8] sm:$0xff] }
 0x222   : > { %2816 = vmatpush1.msra.mxu1 %v2677_v5  ;;  %v3900_v39 = vadd.f32 %v1045_v59, %v859_v35  ;;  %v860_v50 = vmul.f32 %v3893_v31, %v789_v38  ;;  %v2286_v59 = vsel %vm636_vm0, %v2281_v60, %v2285_v9  ;;  %v1055_v5 = vpop.f32.mrf.mxu0  ;;  %v2726_v35 = vld [vmem:[#allocation7 + $0x11e8] sm:$0xff]  ;;  %v2725_v38 = vld [vmem:[#allocation7 + $0x11e0] sm:$0xff] }
 0x223   : > { %2400 = vmatmul.mubr.f32.gmra.mxu1 %v2278_v3  ;;  %2817 = vmatprep.subr.mxu1 %v2676_v34  ;;  %v791_v61 = vpop.f32.mrf.mxu1  ;;  %v2752_v14 = vsel %vm1177_vm1, %v2750_v17, %v3751_v21  ;;  %v2716_v17 = vld [vmem:[#allocation7 + $0x1198] sm:$0xff] }
 0x224   : > { %2405 = vmatprep.mubr.f32.mxu1 %v2284_v6  ;;  %2618 = vmatmul.mubr.f32.gmra.mxu0 %v3802_v49  ;;  %v3906_v36 = vadd.f32 %v1049_v32, %v860_v50  ;;  %v861_v28 = vmul.f32 %v3893_v31, %v791_v61  ;;  %v2282_v49 = vsel %vm636_vm0, %v2277_v19, %v2281_v60  ;;  %v2665_v19 = vld [vmem:[#allocation7 + $0x1000] sm:$0xff]  ;;  %v3923_v32 = vpop.permute.xlu0 %1352  ;;  %v2724_v50 = vld [vmem:[#allocation7 + $0x11d8] sm:$0xff]  ;;  %v1057_v6 = vpop.f32.mrf.mxu0  ;;  %v2723_v60 = vld [vmem:[#allocation7 + $0x11d0] sm:$0xff] }
 0x225   : > { %2818 = vmatpush1.msra.mxu1 %v2675_v43  ;;  %2623 = vmatprep.mubr.f32.mxu0 %v3909_v4 }
 0x226   : > { %2819 = vmatprep.subr.mxu1 %v2674_v52  ;;  %v3912_v10 = vadd.f32 %v1051_v56, %v861_v28  ;;  %v3933_v28 = vpop.permute.xlu1 %1357 }
 0x227   : > { %2820 = vmatpush1.msra.mxu1 %v2673_v25 }
 0x228   : > { %2406 = vmatmul.mubr.f32.gmra.mxu1 %v2282_v49  ;;  %2821 = vmatprep.subr.mxu1 %v2672_v12  ;;  %v2721_v12 = vld [vmem:[#allocation7 + $0x11c0] sm:$0xff] }
 0x229   : > { %2411 = vmatprep.mubr.f32.mxu1 %v2288_v42  ;;  %2822 = vmatpush1.msra.mxu1 %v2671_v55  ;;  %v2720_v55 = vld [vmem:[#allocation7 + $0x11b8] sm:$0xff] }
 0x22a   : > { %2823 = vmatprep.subr.mxu1 %v2670_v46  ;;  %2624 = vmatmul.mubr.f32.gmra.mxu0 %v3909_v4  ;;  %v2719_v46 = vld [vmem:[#allocation7 + $0x11b0] sm:$0xff] }
 0x22b   : > { %2824 = vmatpush1.msra.mxu1 %v2669_v27  ;;  %v3939_v27 = vpop.permute.xlu0 %1362 }
 0x22c   : > { %2412 = vmatmul.mubr.f32.gmra.mxu1 %v2286_v59  ;;  %2825 = vmatprep.subr.mxu1 %v2668_v47  ;;  %4426 = vst [vmem:[#allocation14_spill] sm:$0xff] %v3939_v27  ;;  %v2717_v47 = vld [vmem:[#allocation7 + $0x11a0] sm:$0xff] }
 0x22d   : > { %2826 = vmatpush1.msra.mxu1 %v2667_v1  ;;  %2861 = vmatprep.mubr.f32.mxu1 %v2752_v14  ;;  %v795_v30 = vpop.f32.mrf.mxu1 }
 0x22e   : > { %2827 = vmatprep.subr.mxu1 %v2666_v18  ;;  %v862_v34 = vmul.f32 %v3918_v58, %v795_v30  ;;  %v2715_v18 = vld [vmem:[#allocation7 + $0x1190] sm:$0xff]  ;;  %v2713_v30 = vld [vmem:[#allocation7 + $0x1180] sm:$0xff] }
 0x22f   : > { %2828 = vmatpush1.msra.mxu1 %v2665_v19  ;;  %v797_v37 = vpop.f32.mrf.mxu1 }
 0x230   : > { %2829 = vmatprep.subr.mxu1 %v2728_v24  ;;  %v3925_v3 = vadd.f32 %v1055_v5, %v862_v34  ;;  %v863_v43 = vmul.f32 %v3918_v58, %v797_v37  ;;  %v2714_v24 = vld [vmem:[#allocation7 + $0x1188] sm:$0xff]  ;;  %v3953_v34 = vpop.permute.xlu1 %1367  ;;  %v2711_v37 = vld [vmem:[#allocation7 + $0x1170] sm:$0xff] }
 0x231   : > { %2830 = vmatpush2.msra.mxu1 %v2727_v13  ;;  %v1294_v52 = vpop.f32.mrf.mxu1  ;;  %4427 = vst [vmem:[#allocation15_spill] sm:$0xff] %v3953_v34 }
 0x232   : > { %2831 = vmatprep.subr.mxu1 %v2726_v35  ;;  %v3928_v61 = vadd.f32 %v1057_v6, %v863_v43  ;;  %v1390_v25 = vmul.f32 %v3923_v32, %v1294_v52  ;;  %v2712_v35 = vld [vmem:[#allocation7 + $0x1178] sm:$0xff]  ;;  %v2710_v43 = vld [vmem:[#allocation7 + $0x1168] sm:$0xff]  ;;  %v2709_v6 = vld [vmem:[#allocation7 + $0x1160] sm:$0xff] }
 0x233   : > { %2832 = vmatpush2.msra.mxu1 %v2725_v38  ;;  %v3931_v11 = vpop.f32.mrf.mxu1  ;;  %v2708_v52 = vld [vmem:[#allocation7 + $0x1158] sm:$0xff] }
 0x234   : > { %2833 = vmatprep.subr.mxu1 %v2724_v50  ;;  %v3936_v56 = vadd.f32 %v1390_v25, %v3736_v33 }
 0x235   : > { %2834 = vmatpush2.msra.mxu1 %v2723_v60  ;;  %v1300_v49 = vpop.f32.mrf.mxu1 }
 0x236   : > { %2835 = vmatprep.subr.mxu1 %v2722_v29  ;;  %v1392_v9 = vmul.f32 %v3933_v28, %v1300_v49  ;;  %v2707_v29 = vld [vmem:[#allocation7 + $0x1150] sm:$0xff]  ;;  %v2705_v49 = vld [vmem:[#allocation7 + $0x1140] sm:$0xff] }
 0x237   : > { %2836 = vmatpush2.msra.mxu1 %v2721_v12  ;;  %v1302_v42 = vpop.f32.mrf.mxu1  ;;  %v3963_v12 = vpop.permute.xlu0 %1372 }
 0x238   : > { %2837 = vmatprep.subr.mxu1 %v2720_v55  ;;  %v3942_v1 = vadd.f32 %v1392_v9, %v3845_v8  ;;  %v1393_v33 = vmul.f32 %v3933_v28, %v1302_v42  ;;  %4428 = vst [vmem:[#allocation16_spill] sm:$0xff] %v3963_v12  ;;  %v2704_v9 = vld [vmem:[#allocation7 + $0x1138] sm:$0xff] }
 0x239   : > { %2838 = vmatpush2.msra.mxu1 %v2719_v46  ;;  %v1306_v59 = vpop.f32.mrf.mxu1 }
 0x23a   : > { %2839 = vmatprep.subr.mxu1 %v2718_v53  ;;  %v3946_v14 = vadd.f32 %v1393_v33, %v3849_v26  ;;  %v1394_v19 = vmul.f32 %v3939_v27, %v1306_v59  ;;  %v2648_v59 = vld [vmem:[#allocation2 + $0xb8] sm:$0xff] }
 0x23b   : > { %2840 = vmatpush2.msra.mxu1 %v2717_v47  ;;  %v1308_v5 = vpop.f32.mrf.mxu1  ;;  %v2702_v47 = vld [vmem:[#allocation7 + $0x1128] sm:$0xff] }
 0x23c   : > { %2841 = vmatprep.subr.mxu1 %v2716_v17  ;;  %v3950_v8 = vadd.f32 %v1394_v19, %v3857_v2  ;;  %v1395_v13 = vmul.f32 %v3939_v27, %v1308_v5  ;;  %v2700_v19 = vld [vmem:[#allocation7 + $0x1118] sm:$0xff] }
 0x23d   : > { %2842 = vmatpush2.msra.mxu1 %v2715_v18  ;;  %v3973_v18 = vpop.permute.xlu1 %1377 }
 0x23e   : > { %2843 = vmatprep.subr.mxu1 %v2714_v24  ;;  %v3956_v26 = vadd.f32 %v1395_v13, %v3863_v57  ;;  %v1312_v38 = vpop.f32.mrf.mxu1  ;;  %v2706_v57 = vld [vmem:[#allocation7 + $0x1148] sm:$0xff]  ;;  %4429 = vst [vmem:[#allocation17_spill] sm:$0xff] %v3973_v18  ;;  %v2651_v24 = vld [vmem:[#allocation2 + $0x80] sm:$0xff]  ;;  %v2646_v13 = vld [vmem:[#allocation2 + $0x18] sm:$0xfe] }
 0x23f   : > { %2844 = vmatpush2.msra.mxu1 %v2713_v30  ;;  %v1396_v50 = vmul.f32 %v3953_v34, %v1312_v38  ;;  %v2699_v30 = vld [vmem:[#allocation7 + $0x1110] sm:$0xff] }
 0x240   : > { %2845 = vmatprep.subr.mxu1 %v2712_v35  ;;  %v1314_v2 = vpop.f32.mrf.mxu1 }
 0x241   : > { %2846 = vmatpush2.msra.mxu1 %v2711_v37  ;;  %v3960_v60 = vadd.f32 %v1396_v50, %v3869_v45  ;;  %v1397_v25 = vmul.f32 %v3953_v34, %v1314_v2  ;;  %v2703_v45 = vld [vmem:[#allocation7 + $0x1130] sm:$0xff]  ;;  %v2748_v37 = vrot.slane %v2648_v59, 1  ;;  %v2755_v50 = vrot.slane %v2651_v24, 1 }
 0x242   : > { %2847 = vmatprep.subr.mxu1 %v2710_v43  ;;  %v2697_v43 = vld [vmem:[#allocation7 + $0x1100] sm:$0xff] }
 0x243   : > { %2848 = vmatpush2.msra.mxu1 %v2709_v6  ;;  %v3966_v55 = vadd.f32 %v1397_v25, %v3876_v20  ;;  %v2701_v20 = vld [vmem:[#allocation7 + $0x1120] sm:$0xff]  ;;  %v2650_v6 = vld [vmem:[#allocation2 + $0x50] sm:$0xff] }
 0x244   : > { %2849 = vmatprep.subr.mxu1 %v2708_v52  ;;  %v1318_v46 = vpop.f32.mrf.mxu1  ;;  %v2747_v52 = vrot.slane %v2646_v13, 1  ;;  %v2653_v25 = vld [vmem:[#allocation2 + $0x48] sm:$0xff]  ;;  %v2654_v13 = vld [vmem:[#allocation2 + $0xb0] sm:$0xff] }
 0x245   : > { %2850 = vmatpush2.msra.mxu1 %v2707_v29  ;;  %v1398_v53 = vmul.f32 %v3963_v12, %v1318_v46  ;;  %v2753_v46 = vrot.slane %v2650_v6, 1  ;;  %v2761_v6 = vrot.slane %v2654_v13, 1 }
 0x246   : > { %2851 = vmatprep.subr.mxu1 %v2706_v57  ;;  %v1320_v42 = vpop.f32.mrf.mxu1  ;;  %v3983_v57 = vpop.permute.xlu0 %1382 }
 0x247   : > { %2852 = vmatpush2.msra.mxu1 %v2705_v49  ;;  %v3970_v33 = vadd.f32 %v1398_v53, %v3882_v23  ;;  %v1399_v17 = vmul.f32 %v3963_v12, %v1320_v42  ;;  %v2698_v23 = vld [vmem:[#allocation7 + $0x1108] sm:$0xff]  ;;  %4430 = vst [vmem:[#allocation18_spill] sm:$0xff] %v3983_v57  ;;  %v2749_v49 = vsel %vm1177_vm1, %v2747_v52, %v2748_v37 }
 0x248   : > { %2853 = vmatprep.subr.mxu1 %v2704_v9  ;;  %v2756_v53 = vsel %vm1177_vm1, %v3751_v21, %v2755_v50  ;;  %v2652_v42 = vld [vmem:[#allocation2 + $0x88] sm:$0xff]  ;;  %v2754_v59 = vsel %vm1177_vm1, %v2748_v37, %v2753_v46 }
 0x249   : > { %2854 = vmatpush2.msra.mxu1 %v2703_v45  ;;  %v3976_v5 = vadd.f32 %v1399_v17, %v3888_v22  ;;  %v2759_v45 = vrot.slane %v2653_v25, 1 }
 0x24a   : > { %2855 = vmatprep.subr.mxu1 %v2702_v47  ;;  %v1324_v35 = vpop.f32.mrf.mxu1  ;;  %v2655_v47 = vld [vmem:[#allocation2 + $0x38] sm:$0xff] }
 0x24b   : > { %2856 = vmatpush2.msra.mxu1 %v2701_v20  ;;  %v1400_v38 = vmul.f32 %v3973_v18, %v1324_v35  ;;  %v2763_v21 = vrot.slane %v2655_v47, 1  ;;  %v3998_v35 = vpop.permute.xlu1 %1387  ;;  %v2658_v47 = vld [vmem:[#allocation2 + $0xa0] sm:$0xff] }
 0x24c   : > { %2857 = vmatprep.subr.mxu1 %v2700_v19  ;;  %v1326_v2 = vpop.f32.mrf.mxu1  ;;  %v2757_v19 = vrot.slane %v2652_v42, 1  ;;  %4431 = vst [vmem:[#allocation19_spill] sm:$0xff] %v3998_v35 }
 0x24d   : > { %2858 = vmatpush2.msra.mxu1 %v2699_v30  ;;  %v3980_v22 = vadd.f32 %v1400_v38, %v3896_v54  ;;  %v1401_v29 = vmul.f32 %v3973_v18, %v1326_v2  ;;  %v2760_v30 = vsel %vm1177_vm1, %v2755_v50, %v2759_v45  ;;  %v2764_v2 = vsel %vm1177_vm1, %v2759_v45, %v2763_v21  ;;  %v2656_v50 = vld [vmem:[#allocation2 + $0x60] sm:$0xff] }
 0x24e   : > { %2859 = vmatprep.subr.mxu1 %v2698_v23  ;;  %v2657_v23 = vld [vmem:[#allocation2 + $0x98] sm:$0xff]  ;;  %v2758_v37 = vsel %vm1177_vm1, %v2753_v46, %v2757_v19  ;;  %v2765_v42 = vrot.slane %v2656_v50, 1 }
 0x24f   : > { %2860 = vmatpush2.msra.mxu1 %v2697_v43  ;;  %v3987_v9 = vadd.f32 %v1401_v29, %v3900_v39  ;;  %v2767_v52 = vrot.slane %v2657_v23, 1  ;;  %v2659_v29 = vld [vmem:[#allocation2 + $0x8] sm:$0xff] }
 0x250   : > { %2862 = vmatmul.mubr.f32.vlgmr.msra.gmra.mxu1 %v2749_v49  ;;  %v1330_v54 = vpop.f32.mrf.mxu1  ;;  %v2771_v45 = vrot.slane %v2659_v29, 1 }
 0x251   : > { %2867 = vmatprep.mubr.f32.mxu1 %v2756_v53  ;;  %v1402_v17 = vmul.f32 %v3983_v57, %v1330_v54  ;;  %v2762_v53 = vsel %vm1177_vm1, %v2757_v19, %v2761_v6  ;;  %v2768_v54 = vsel %vm1177_vm1, %v2763_v21, %v2767_v52 }
 0x252   : > { %v1332_v20 = vpop.f32.mrf.mxu1 }
 0x253   : > { %v3994_v24 = vadd.f32 %v1402_v17, %v3906_v36  ;;  %v1403_v39 = vmul.f32 %v3983_v57, %v1332_v20  ;;  %v2766_v17 = vsel %vm1177_vm1, %v2761_v6, %v2765_v42  ;;  %v2769_v20 = vrot.slane %v2658_v47, 1 }
 0x254   : > { %2868 = vmatmul.mubr.f32.gmra.mxu1 %v2754_v59  ;;  %v2663_v59 = vld [vmem:[#allocation2 + $0x58] sm:$0x1] }
 0x255   : > { %2873 = vmatprep.mubr.f32.mxu1 %v2760_v30  ;;  %v4001_v38 = vadd.f32 %v1403_v39, %v3912_v10  ;;  %v2775_v39 = vrot.slane %v3909_v4, 1  ;;  %v2779_v19 = vrot.slane %v2663_v59, 1  ;;  %v2662_v30 = vld [vmem:[#allocation2 + $0x20] sm:$0x1]  ;;  %v4023_v4 = vpop.f32.mrf.mxu0 }
 0x256   : > { %v1336_v43 = vpop.f32.mrf.mxu1  ;;  %v2777_v13 = vrot.slane %v2662_v30, 1 }
 0x257   : > { %v1404_v36 = vmul.f32 %v3998_v35, %v1336_v43  ;;  %v2776_v21 = vsel %vm1177_vm1, %v2771_v45, %v2775_v39  ;;  %v2780_v23 = vsel %vm1177_vm1, %v2775_v39, %v2779_v19  ;;  %v2774_v43 = vsel %vm1177_vm1, %v2769_v20, %v2775_v39  ;;  %v4025_v6 = vpop.f32.mrf.mxu0 }
 0x258   : > { %2874 = vmatmul.mubr.f32.gmra.mxu1 %v2758_v37  ;;  %v1338_v25 = vpop.f32.mrf.mxu1  ;;  %v2778_v37 = vsel %vm1177_vm1, %v2775_v39, %v2777_v13 }
 0x259   : > { %2879 = vmatprep.mubr.f32.mxu1 %v2764_v2  ;;  %v4007_v49 = vadd.f32 %v1404_v36, %v3925_v3  ;;  %v1405_v10 = vmul.f32 %v3998_v35, %v1338_v25  ;;  %v2772_v3 = vsel %vm1177_vm1, %v2767_v52, %v2771_v45  ;;  %v4027_v36 = vpop.f32.mrf.mxu0 }
 0x25b   : > { %v4012_v46 = vadd.f32 %v1405_v10, %v3928_v61  ;;  %v2770_v61 = vsel %vm1177_vm1, %v2765_v42, %v2769_v20  ;;  %v4029_v2 = vpop.f32.mrf.mxu0 }
 0x25c   : > { %2880 = vmatmul.mubr.f32.gmra.mxu1 %v2762_v53 }
 0x25d   : > { %2885 = vmatprep.mubr.f32.mxu1 %v2768_v54  ;;  %v4031_v52 = vpop.f32.mrf.mxu0 }
 0x25f   : > { %v4033_v50 = vpop.f32.mrf.mxu0 }
 0x260   : > { %2886 = vmatmul.mubr.f32.gmra.mxu1 %v2766_v17 }
 0x261   : > { %2891 = vmatprep.mubr.f32.mxu1 %v2772_v3  ;;  %v4035_v25 = vpop.f32.mrf.mxu0 }
 0x263   : > { %v4037_v29 = vpop.f32.mrf.mxu0 }
 0x264   : > { %2892 = vmatmul.mubr.f32.gmra.mxu1 %v2770_v61 }
 0x265   : > { %2897 = vmatprep.mubr.f32.mxu1 %v2776_v21  ;;  %v4041_v53 = vpop.f32.mrf.mxu0 }
 0x267   : > { %v4045_v54 = vpop.f32.mrf.mxu0 }
 0x268   : > { %2898 = vmatmul.mubr.f32.gmra.mxu1 %v2774_v43 }
 0x269   : > { %2903 = vmatprep.mubr.f32.mxu1 %v2780_v23  ;;  %v4049_v47 = vpop.f32.mrf.mxu0 }
 0x26b   : > { %v4053_v20 = vpop.f32.mrf.mxu0 }
 0x26c   : > { %2904 = vmatmul.mubr.f32.gmra.mxu1 %v2778_v37 }
 0x26d   : > { %v4057_v3 = vpop.f32.mrf.mxu0 }
 0x26f   : > { %v4061_v19 = vpop.f32.mrf.mxu0 }
 0x271   : > { %v4065_v61 = vpop.f32.mrf.mxu0 }
 0x273   : > { %v4069_v13 = vpop.f32.mrf.mxu0 }
 0x277   : > { %v4071_v23 = vpop.f32.mrf.mxu0 }
 0x279   : > { %v4075_v37 = vpop.f32.mrf.mxu0 }
 0x27b   : > { %v4039_v10 = vpop.f32.mrf.mxu1 }
 0x27d   : > { %v4043_v42 = vpop.f32.mrf.mxu1  ;;  %v4079_v41 = vpop.f32.mrf.mxu0 }
 0x27f   : > { %v4083_v57 = vpop.f32.mrf.mxu0 }
 0x280   : > { %4438 = vst [vmem:[#allocation26_spill] sm:$0xff] %v4083_v57 }
 0x281   : > { %v4047_v45 = vpop.f32.mrf.mxu1 }
 0x283   : > { %v4051_v17 = vpop.f32.mrf.mxu1  ;;  %v4087_v40 = vpop.f32.mrf.mxu0 }
 0x284   : > { %4440 = vst [vmem:[#allocation28_spill] sm:$0xff] %v4087_v40 }
 0x287   : > { %v4055_v59 = vpop.f32.mrf.mxu1 }
 0x289   : > { %v4059_v39 = vpop.f32.mrf.mxu1 }
 0x28a   : > { %4432 = vst [vmem:[#allocation20_spill] sm:$0xff] %v4059_v39 }
 0x28d   : > { %v4063_v30 = vpop.f32.mrf.mxu1 }
 0x28e   : > { %4433 = vst [vmem:[#allocation21_spill] sm:$0xff] %v4063_v30 }
 0x28f   : > { %v4067_v21 = vpop.f32.mrf.mxu1 }
 0x290   : > { %4434 = vst [vmem:[#allocation22_spill] sm:$0xff] %v4067_v21  ;;  %v4091_v21 = vpop.f32.mrf.mxu0 }
 0x291   : > { %4442 = vst [vmem:[#allocation30_spill] sm:$0xff] %v4091_v21 }
 0x293   : > { %v4073_v43 = vpop.f32.mrf.mxu1 }
 0x294   : > { %4435 = vst [vmem:[#allocation23_spill] sm:$0xff] %v4073_v43  ;;  %v4095_v43 = vpop.f32.mrf.mxu0 }
 0x295   : > { %v4077_v44 = vpop.f32.mrf.mxu1  ;;  %4444 = vst [vmem:[#allocation32_spill] sm:$0xff] %v4095_v43 }
 0x296   : > { %4436 = vst [vmem:[#allocation24_spill] sm:$0xff] %v4077_v44  ;;  %v4099_v44 = vpop.f32.mrf.mxu0 }
 0x297   : > { %4446 = vst [vmem:[#allocation34_spill] sm:$0xff] %v4099_v44 }
 0x298   : > { %v4105_v57 = vpop.f32.mrf.mxu0 }
 0x299   : > { %v4081_v35 = vpop.f32.mrf.mxu1  ;;  %4448 = vst [vmem:[#allocation36_spill] sm:$0xff] %v4105_v57 }
 0x29a   : > { %4437 = vst [vmem:[#allocation25_spill] sm:$0xff] %v4081_v35  ;;  %v4109_v40 = vpop.f32.mrf.mxu0 }
 0x29b   : > { %v4085_v18 = vpop.f32.mrf.mxu1  ;;  %4450 = vst [vmem:[#allocation38_spill] sm:$0xff] %v4109_v40 }
 0x29c   : > { %4439 = vst [vmem:[#allocation27_spill] sm:$0xff] %v4085_v18  ;;  %v4113_v21 = vpop.f32.mrf.mxu0 }
 0x29d   : > { %4452 = vst [vmem:[#allocation40_spill] sm:$0xff] %v4113_v21 }
 0x29e   : > { %v4117_v43 = vpop.f32.mrf.mxu0 }
 0x29f   : > { %v4089_v12 = vpop.f32.mrf.mxu1  ;;  %4454 = vst [vmem:[#allocation42_spill] sm:$0xff] %v4117_v43 }
 0x2a0   : > { %4441 = vst [vmem:[#allocation29_spill] sm:$0xff] %v4089_v12  ;;  %v4121_v44 = vpop.f32.mrf.mxu0 }
 0x2a1   : > { %v4093_v34 = vpop.f32.mrf.mxu1  ;;  %4456 = vst [vmem:[#allocation44_spill] sm:$0xff] %v4121_v44  ;;  %v849_v44 = vmul.f32 %v3729_v0, %v3830_v62  ;;  %v1659_v62 = vmul.f32 %v4025_v6, %v3729_v0  ;;  %v1665_v6 = vmul.f32 %v4037_v29, %v3853_v16  ;;  %v1671_v29 = vmul.f32 %v4061_v19, %v3893_v31 }
 0x2a2   : > { %4443 = vst [vmem:[#allocation31_spill] sm:$0xff] %v4093_v34  ;;  %v4125_v39 = vpop.f32.mrf.mxu0 }
 0x2a3   : > { %4458 = vst [vmem:[#allocation46_spill] sm:$0xff] %v4125_v39 }
 0x2a5   : > { %v4097_v30 = vpop.f32.mrf.mxu1 }
 0x2a6   : > { %4445 = vst [vmem:[#allocation33_spill] sm:$0xff] %v4097_v30 }
 0x2a7   : > { %v4101_v27 = vpop.f32.mrf.mxu1 }
 0x2a8   : > { %4447 = vst [vmem:[#allocation35_spill] sm:$0xff] %v4101_v27 }
 0x2ca   : > { %v4103_v35 = vpop.f32.mrf.mxu1 }
 0x2cc   : > { %v4107_v18 = vpop.f32.mrf.mxu1 }
 0x2cd   : > { %4449 = vst [vmem:[#allocation37_spill] sm:$0xff] %v4107_v18  ;;  %v4129_v18 = vpop.f32.mrf.mxu0 }
 0x2ce   : > { %4460 = vst [vmem:[#allocation48_spill] sm:$0xff] %v4129_v18  ;;  %v1391_v18 = vmul.f32 %v3923_v32, %v3931_v11  ;;  %v1664_v11 = vmul.f32 %v4035_v25, %v3853_v16  ;;  %v1667_v25 = vmul.f32 %v4045_v54, %v3866_v48 }
 0x2cf   : > { %v4111_v12 = vpop.f32.mrf.mxu1 }
 0x2d0   : > { %4451 = vst [vmem:[#allocation39_spill] sm:$0xff] %v4111_v12  ;;  %v4133_v12 = vpop.f32.mrf.mxu0 }
 0x2d1   : > { %v4115_v34 = vpop.f32.mrf.mxu1  ;;  %4462 = vst [vmem:[#allocation50_spill] sm:$0xff] %v4133_v12  ;;  %v1061_v12 = vadd.f32 %v3823_v51, %v849_v44  ;;  %v1662_v44 = vmul.f32 %v4031_v52, %v3837_v7  ;;  %v1663_v51 = vmul.f32 %v4033_v50, %v3837_v7  ;;  %v1666_v50 = vmul.f32 %v4041_v53, %v3866_v48 }
 0x2d2   : > { %4453 = vst [vmem:[#allocation41_spill] sm:$0xff] %v4115_v34  ;;  %v4135_v21 = vpop.f32.mrf.mxu0 }
 0x2d4   : > { %v4119_v30 = vpop.f32.mrf.mxu1  ;;  %v4139_v43 = vpop.f32.mrf.mxu0 }
 0x2d5   : > { %4455 = vst [vmem:[#allocation43_spill] sm:$0xff] %v4119_v30 }
 0x2d6   : > { %v4123_v27 = vpop.f32.mrf.mxu1  ;;  %v4145_v39 = vpop.f32.mrf.mxu0 }
 0x2d7   : > { %4457 = vst [vmem:[#allocation45_spill] sm:$0xff] %v4123_v27  ;;  %4465 = vst [vmem:[#allocation53_spill] sm:$0xff] %v4145_v39  ;;  %v1660_v39 = vmul.f32 %v4027_v36, %v3834_v63 }
 0x2d9   : > { %v4127_v57 = vpop.f32.mrf.mxu1 }
 0x2da   : > { %4459 = vst [vmem:[#allocation47_spill] sm:$0xff] %v4127_v57 }
 0x2db   : > { %v4131_v40 = vpop.f32.mrf.mxu1 }
 0x2dc   : > { %4461 = vst [vmem:[#allocation49_spill] sm:$0xff] %v4131_v40  ;;  %v4152_v40 = vpop.f32.mrf.mxu0 }
 0x2de   : > { %v4137_v34 = vpop.f32.mrf.mxu1 }
 0x2df   : > { %4463 = vst [vmem:[#allocation51_spill] sm:$0xff] %v4137_v34  ;;  %v1407_v34 = vadd.f32 %v1391_v18, %v1061_v12  ;;  %v4171_v18 = vpop.f32.mrf.mxu0 }
 0x2e0   : > { %v4141_v30 = vpop.f32.mrf.mxu1 }
 0x2e1   : > { %4464 = vst [vmem:[#allocation52_spill] sm:$0xff] %v4141_v30  ;;  %v1658_v30 = vmul.f32 %v4023_v4, %v3729_v0  ;;  %v1675_v36 = vadd.f32 %v1659_v62, %v1407_v34  ;;  %v1669_v34 = vmul.f32 %v4053_v20, %v3880_v15  ;;  %v4199_v53 = vpop.f32.mrf.mxu0  ;;  %v4468_v62 = vld [vmem:[#allocation20_spill] sm:$0xff] }
 0x2e3   : > { %v4147_v57 = vpop.f32.mrf.mxu1  ;;  %v1674_v12 = vadd.f32 %v1658_v30, %v3936_v56  ;;  %v1678_v56 = vadd.f32 %v1662_v44, %v3950_v8  ;;  %v1679_v30 = vadd.f32 %v1663_v51, %v3956_v26  ;;  %v1682_v8 = vadd.f32 %v1666_v50, %v3970_v33  ;;  %v4469_v44 = vld [vmem:[#allocation37_spill] sm:$0xff] }
 0x2e4   : > { %4466 = vst [vmem:[#allocation54_spill] sm:$0xff] %v4147_v57  ;;  %v1661_v57 = vmul.f32 %v4029_v2, %v3834_v63  ;;  %v1676_v2 = vadd.f32 %v1660_v39, %v3942_v1  ;;  %v1680_v1 = vadd.f32 %v1664_v11, %v3960_v60  ;;  %v4197_v26 = vadd.f32 %v1667_v25, %v3976_v5  ;;  %v4471_v11 = vld [vmem:[#allocation14_spill] sm:$0xff] }
 0x2e5   : > { %v4154_v27 = vpop.f32.mrf.mxu1  ;;  %v1672_v60 = vmul.f32 %v4065_v61, %v3918_v58  ;;  %v4210_v20 = vadd.f32 %v1669_v34, %v3987_v9  ;;  %v1673_v33 = vmul.f32 %v4069_v13, %v3918_v58  ;;  %v1871_v5 = vadd.f32 %v4043_v42, %v1675_v36  ;;  %v4236_v13 = vpop.f32.mrf.mxu0  ;;  %v4477_v34 = vld [vmem:[#allocation32_spill] sm:$0xff] }
 0x2e6   : > { %v1677_v52 = vadd.f32 %v1661_v57, %v3946_v14  ;;  %v1681_v14 = vadd.f32 %v1665_v6, %v3966_v55  ;;  %v1670_v57 = vmul.f32 %v4057_v3, %v3893_v31  ;;  %v1870_v55 = vadd.f32 %v4039_v10, %v1674_v12 }
 0x2e7   : > { %v4219_v39 = vadd.f32 %v1671_v29, %v4001_v38  ;;  %v2150_v10 = vmul.f32 %v4071_v23, %v3923_v32  ;;  %v4225_v19 = vadd.f32 %v1672_v60, %v4007_v49  ;;  %v2418_v9 = vmul.f32 %v4103_v35, %v3729_v0  ;;  %v4478_v29 = vld [vmem:[#allocation22_spill] sm:$0xff] }
 0x2e8   : > { %v4173_v4 = vpop.f32.mrf.mxu1  ;;  %v4216_v3 = vadd.f32 %v1670_v57, %v3994_v24  ;;  %v2151_v42 = vmul.f32 %v4075_v37, %v3923_v32  ;;  %v1873_v24 = vadd.f32 %v4051_v17, %v1677_v52  ;;  %v1874_v61 = vadd.f32 %v4055_v59, %v1678_v56  ;;  %v4470_v17 = vld [vmem:[#allocation26_spill] sm:$0xff] }
 0x2e9   : > { %4467 = vst [vmem:[#allocation55_spill] sm:$0xff] %v4173_v4  ;;  %v1668_v4 = vmul.f32 %v4049_v47, %v3880_v15  ;;  %v4234_v38 = vadd.f32 %v1673_v33, %v4012_v46  ;;  %v2152_v49 = vmul.f32 %v4079_v41, %v3933_v28  ;;  %v1875_v35 = vadd.f32 %v4468_v62, %v1679_v30  ;;  %v4472_v46 = vld [vmem:[#allocation28_spill] sm:$0xff]  ;;  %v4475_v41 = vld [vmem:[#allocation39_spill] sm:$0xff] }
 0x2ea   : > { %v4201_v54 = vpop.f32.mrf.mxu1  ;;  %v2419_v37 = vmul.f32 %v4469_v44, %v3729_v0  ;;  %v2167_v51 = vadd.f32 %v2151_v42, %v1871_v5  ;;  %v2153_v59 = vmul.f32 %v4470_v17, %v3933_v28  ;;  %v2154_v12 = vmul.f32 %v4472_v46, %v4471_v11  ;;  %v4476_v0 = vld [vmem:[#allocation15_spill] sm:$0xff]  ;;  %v4480_v42 = vld [vmem:[#allocation41_spill] sm:$0xff] }
 0x2eb   : > { %v4207_v47 = vadd.f32 %v1668_v4, %v3980_v22  ;;  %v1872_v22 = vadd.f32 %v4047_v45, %v1676_v2  ;;  %v2166_v45 = vadd.f32 %v2150_v10, %v1870_v55  ;;  %v4473_v4 = vld [vmem:[#allocation21_spill] sm:$0xff]  ;;  %v4474_v2 = vld [vmem:[#allocation30_spill] sm:$0xff]  ;;  %v2420_v25 = vmul.f32 %v4475_v41, %v3834_v63  ;;  %v4257_v55 = vpop.f32.mrf.mxu0  ;;  %v4483_v44 = vld [vmem:[#allocation23_spill] sm:$0xff] }
 0x2ec   : > { %v4238_v23 = vpop.f32.mrf.mxu1  ;;  %v1876_v6 = vadd.f32 %v4473_v4, %v1680_v1  ;;  %v2155_v52 = vmul.f32 %v4474_v2, %v4471_v11  ;;  %v2169_v56 = vadd.f32 %v2153_v59, %v1873_v24  ;;  %v2170_v30 = vadd.f32 %v2154_v12, %v1874_v61  ;;  %v2942_v1 = vld [vmem:[#allocation8] sm:$0x3]  ;;  %v4479_v10 = vld [vmem:[#allocation34_spill] sm:$0xff] }
 0x2ed   : > { %v2168_v36 = vadd.f32 %v2152_v49, %v1872_v22  ;;  %v2434_v50 = vadd.f32 %v2418_v9, %v2166_v45  ;;  %v2156_v57 = vmul.f32 %v4477_v34, %v4476_v0  ;;  %v1877_v60 = vadd.f32 %v4478_v29, %v1681_v14  ;;  %v4481_v61 = vld [vmem:[#allocation16_spill] sm:$0xff]  ;;  %v4484_v14 = vld [vmem:[#allocation43_spill] sm:$0xff]  ;;  %v4280_v34 = vpop.f32.mrf.mxu0 }
 0x2ee   : > { %v4259_v33 = vpop.f32.mrf.mxu1  ;;  %v2171_v5 = vadd.f32 %v2155_v52, %v1875_v35  ;;  %v2157_v22 = vmul.f32 %v4479_v10, %v4476_v0  ;;  %v2435_v9 = vadd.f32 %v2419_v37, %v2167_v51  ;;  %v2421_v45 = vmul.f32 %v4480_v42, %v3834_v63  ;;  %v4482_v49 = vld [vmem:[#allocation36_spill] sm:$0xff]  ;;  %v4485_v37 = vld [vmem:[#allocation13_spill] sm:$0xff] }
 0x2ef   : > { %v2172_v24 = vadd.f32 %v2156_v57, %v1876_v6  ;;  %v2158_v62 = vmul.f32 %v4482_v49, %v4481_v61  ;;  %v1878_v17 = vadd.f32 %v4483_v44, %v1682_v8  ;;  %v2422_v59 = vmul.f32 %v4484_v14, %v3837_v7  ;;  %v4487_v6 = vld [vmem:[#allocation38_spill] sm:$0xff]  ;;  %v4488_v8 = vld [vmem:[#allocation45_spill] sm:$0xff] }
 0x2f0   : > { %v2436_v12 = vadd.f32 %v2420_v25, %v2168_v36  ;;  %v2630_v35 = vadd.f32 %v4135_v21, %v2434_v50  ;;  %v4486_v51 = vsub.s32 0, %v4485_v37  ;;  %v2173_v63 = vadd.f32 %v2157_v22, %v1877_v60  ;;  %v4490_v60 = vld [vmem:[#allocation24_spill] sm:$0xff]  ;;  %v4493_v14 = vld [vmem:[#allocation17_spill] sm:$0xff] }
 0x2f1   : > { %v2159_v52 = vmul.f32 %v4487_v6, %v4481_v61  ;;  %v2423_v41 = vmul.f32 %v4488_v8, %v3837_v7  ;;  %v4489_v36 = vsub.s32 1, %v4485_v37  ;;  %v2437_v21 = vadd.f32 %v2421_v45, %v2169_v56 }
 0x2f2   : > { %v4274_v2 = vrot.slane %v2942_v1, %v4486_v51  ;;  %v2631_v29 = vadd.f32 %v4139_v43, %v2435_v9  ;;  %v2174_v7 = vadd.f32 %v2158_v62, %v1878_v17  ;;  %v1879_v22 = vadd.f32 %v4490_v60, %v4197_v26  ;;  %v4495_v62 = vld [vmem:[#allocation25_spill] sm:$0xff] }
 0x2f3   : > { %v4284_v25 = vrot.slane %v2942_v1, %v4489_v36  ;;  %v2438_v42 = vadd.f32 %v2422_v59, %v2170_v30  ;;  %v4491_v1 = vld [vmem:[#allocation47_spill] sm:$0xff]  ;;  %v1880_v17 = vadd.f32 %v4495_v62, %v4207_v47  ;;  %v2439_v26 = vadd.f32 %v2423_v41, %v2171_v5  ;;  %v4496_v30 = vld [vmem:[#allocation49_spill] sm:$0xff]  ;;  %v4497_v36 = vld [vmem:[#allocation42_spill] sm:$0xff] }
 0x2f4   : > { %v2424_v56 = vmul.f32 %v4491_v1, %v3853_v16  ;;  %v2425_v59 = vmul.f32 %v4496_v30, %v3853_v16  ;;  %v2633_v6 = vadd.f32 %v4152_v40, %v2437_v21  ;;  %v2161_v47 = vmul.f32 %v4497_v36, %v4493_v14 }
 0x2f5   : > { %v2634_v41 = vadd.f32 %v4171_v18, %v2438_v42  ;;  %v4500_v42 = vld [vmem:[#allocation52_spill] sm:$0xff] }
 0x2f6   : > { %v2440_v5 = vadd.f32 %v2424_v56, %v2172_v24  ;;  %v2635_v24 = vadd.f32 %v4199_v53, %v2439_v26  ;;  %v2427_v56 = vmul.f32 %v4500_v42, %v3866_v48 }
 0x310   : > { %v2863_v46 = vpop.f32.mrf.mxu1 }
 0x311   : > { %v2910_v4 = vmul.f32 %v2863_v46, %v3923_v32  ;;  %v4494_v46 = vld [vmem:[#allocation40_spill] sm:$0xff] }
 0x312   : > { %v2865_v57 = vpop.f32.mrf.mxu1 }
 0x313   : > { %v2926_v50 = vadd.f32 %v2910_v4, %v2630_v35  ;;  %v2911_v10 = vmul.f32 %v2865_v57, %v3923_v32  ;;  %v4492_v32 = vld [vmem:[#allocation53_spill] sm:$0xff]  ;;  %v2160_v35 = vmul.f32 %v4494_v46, %v4493_v14  ;;  %v4308_v4 = vpop.f32.mrf.mxu0  ;;  %v2175_v57 = vadd.f32 %v2159_v52, %v1879_v22 }
 0x314   : > { %v2869_v45 = vpop.f32.mrf.mxu1  ;;  %v2632_v49 = vadd.f32 %v4492_v32, %v2436_v12  ;;  %v2441_v22 = vadd.f32 %v2425_v59, %v2173_v63  ;;  %v4501_v32 = vld [vmem:[#allocation18_spill] sm:$0xff] }
 0x315   : > { %v2954_v43 = vadd.f32 %v4274_v2, %v2926_v50  ;;  %v2927_v9 = vadd.f32 %v2911_v10, %v2631_v29  ;;  %v2912_v44 = vmul.f32 %v2869_v45, %v3933_v28  ;;  %v4498_v50 = vld [vmem:[#allocation51_spill] sm:$0xff]  ;;  %v2176_v21 = vadd.f32 %v2160_v35, %v1880_v17  ;;  %v2613_v1 = vpop.f32.mrf.mxu0  ;;  %v4504_v63 = vld [vmem:[#allocation54_spill] sm:$0xff] }
 0x316   : > { %v2871_v37 = vpop.f32.mrf.mxu1  ;;  %v2426_v29 = vmul.f32 %v4498_v50, %v3866_v48  ;;  %v2428_v53 = vmul.f32 %v4504_v63, %v3880_v15  ;;  %v2636_v35 = vadd.f32 %v4236_v13, %v2440_v5  ;;  %v4505_v59 = vld [vmem:[#allocation46_spill] sm:$0xff]  ;;  %v4507_v50 = vld [vmem:[#allocation55_spill] sm:$0xff] }
 0x317   : > { %2970 = vst [vmem:[%s4293_s18] sm:$0xff] %v2954_v43  ;;  %v2955_v51 = vadd.f32 %v4284_v25, %v2927_v9  ;;  %v2928_v12 = vadd.f32 %v2912_v44, %v2632_v49  ;;  %v2913_v8 = vmul.f32 %v2871_v37, %v3933_v28  ;;  %v4499_v28 = vld [vmem:[#allocation27_spill] sm:$0xff]  ;;  %v4502_v49 = vld [vmem:[#allocation44_spill] sm:$0xff]  ;;  %v2163_v37 = vmul.f32 %v4505_v59, %v4501_v32 }
 0x318   : > { %v2875_v16 = vpop.f32.mrf.mxu1  ;;  %v1881_v52 = vadd.f32 %v4499_v28, %v4210_v20  ;;  %v2162_v44 = vmul.f32 %v4502_v49, %v4501_v32  ;;  %v4503_v20 = vld [vmem:[#allocation29_spill] sm:$0xff]  ;;  %v2442_v48 = vadd.f32 %v2426_v29, %v2174_v7  ;;  %v2430_v29 = vmul.f32 %v4507_v50, %v3893_v31 }
 0x319   : > { %2971 = vst [vmem:[%s4293_s18 + $0x8] sm:$0xff] %v2955_v51  ;;  %v2956_v10 = vadd.f32 %v4274_v2, %v2928_v12  ;;  %v2929_v60 = vadd.f32 %v2913_v8, %v2633_v6  ;;  %v2914_v40 = vmul.f32 %v2875_v16, %v4471_v11  ;;  %v1882_v46 = vadd.f32 %v4503_v20, %v4216_v3  ;;  %v2615_v3 = vpop.f32.mrf.mxu0  ;;  %v4510_v28 = vld [vmem:[#allocation33_spill] sm:$0xff] }
 0x31a   : > { %v2877_v18 = vpop.f32.mrf.mxu1  ;;  %v2177_v30 = vadd.f32 %v2161_v47, %v1881_v52  ;;  %v2429_v51 = vmul.f32 %v4154_v27, %v3880_v15  ;;  %v2637_v12 = vadd.f32 %v4257_v55, %v2441_v22  ;;  %v2443_v6 = vadd.f32 %v2427_v56, %v2175_v57  ;;  %v4506_v47 = vld [vmem:[#allocation31_spill] sm:$0xff] }
 0x31b   : > { %2972 = vst [vmem:[%s4293_s18 + $0x10] sm:$0xff] %v2956_v10  ;;  %v2957_v45 = vadd.f32 %v4284_v25, %v2929_v60  ;;  %v2930_v43 = vadd.f32 %v2914_v40, %v2634_v41  ;;  %v2915_v9 = vmul.f32 %v2877_v18, %v4471_v11  ;;  %v2178_v5 = vadd.f32 %v2162_v44, %v1882_v46  ;;  %v4508_v60 = vld [vmem:[#allocation19_spill] sm:$0xff] }
 0x31c   : > { %v2881_v62 = vpop.f32.mrf.mxu1  ;;  %v1883_v41 = vadd.f32 %v4506_v47, %v4219_v39  ;;  %v2444_v16 = vadd.f32 %v2428_v53, %v2176_v21  ;;  %v2638_v57 = vadd.f32 %v4280_v34, %v2442_v48  ;;  %v1884_v52 = vadd.f32 %v4510_v28, %v4225_v19  ;;  %v2619_v39 = vpop.f32.mrf.mxu0 }
 0x31d   : > { %2973 = vst [vmem:[%s4293_s18 + $0x18] sm:$0xff] %v2957_v45  ;;  %v2958_v17 = vadd.f32 %v4274_v2, %v2930_v43  ;;  %v2931_v26 = vadd.f32 %v2915_v9, %v2635_v24  ;;  %v2916_v11 = vmul.f32 %v2881_v62, %v4476_v0  ;;  %v2445_v21 = vadd.f32 %v2429_v51, %v2177_v30  ;;  %v4511_v43 = vld [vmem:[#allocation35_spill] sm:$0xff] }
 0x31e   : > { %v2883_v13 = vpop.f32.mrf.mxu1  ;;  %v2431_v22 = vmul.f32 %v4201_v54, %v3893_v31  ;;  %v2639_v34 = vadd.f32 %v4308_v4, %v2443_v6  ;;  %v2179_v45 = vadd.f32 %v2163_v37, %v1883_v41  ;;  %v1885_v9 = vadd.f32 %v4511_v43, %v4234_v38  ;;  %v4512_v4 = vld [vmem:[#allocation50_spill] sm:$0xff]  ;;  %v2621_v53 = vpop.f32.mrf.mxu0 }
 0x31f   : > { %2974 = vst [vmem:[%s4293_s18 + $0x20] sm:$0xff] %v2958_v17  ;;  %v2959_v7 = vadd.f32 %v4284_v25, %v2931_v26  ;;  %v2932_v8 = vadd.f32 %v2916_v11, %v2636_v35  ;;  %v2917_v36 = vmul.f32 %v2883_v13, %v4476_v0  ;;  %v4509_v0 = vld [vmem:[#allocation48_spill] sm:$0xff]  ;;  %v2446_v19 = vadd.f32 %v2430_v29, %v2178_v5 }
 0x320   : > { %v2887_v15 = vpop.f32.mrf.mxu1  ;;  %v2164_v40 = vmul.f32 %v4509_v0, %v4508_v60  ;;  %v2640_v49 = vadd.f32 %v2613_v1, %v2444_v16  ;;  %v2432_v31 = vmul.f32 %v4238_v23, %v3918_v58  ;;  %v2447_v38 = vadd.f32 %v2431_v22, %v2179_v45  ;;  %v2625_v11 = vpop.f32.mrf.mxu0 }
 0x321   : > { %2975 = vst [vmem:[%s4293_s18 + $0x28] sm:$0xff] %v2959_v7  ;;  %v2960_v27 = vadd.f32 %v4274_v2, %v2932_v8  ;;  %v2933_v55 = vadd.f32 %v2917_v36, %v2637_v12  ;;  %v2918_v10 = vmul.f32 %v2887_v15, %v4481_v61  ;;  %v2641_v35 = vadd.f32 %v2615_v3, %v2445_v21 }
 0x322   : > { %v2889_v24 = vpop.f32.mrf.mxu1  ;;  %v2180_v63 = vadd.f32 %v2164_v40, %v1884_v52  ;;  %v2433_v1 = vmul.f32 %v4259_v33, %v3918_v58  ;;  %v2642_v30 = vadd.f32 %v2619_v39, %v2446_v19  ;;  %v2643_v58 = vadd.f32 %v2621_v53, %v2447_v38  ;;  %v2627_v8 = vpop.f32.mrf.mxu0 }
 0x323   : > { %2976 = vst [vmem:[%s4293_s18 + $0x30] sm:$0xff] %v2960_v27  ;;  %v2961_v18 = vadd.f32 %v4284_v25, %v2933_v55  ;;  %v2934_v42 = vadd.f32 %v2918_v10, %v2638_v57  ;;  %v2919_v56 = vmul.f32 %v2889_v24, %v4481_v61  ;;  %v2165_v61 = vmul.f32 %v4512_v4, %v4508_v60 }
 0x324   : > { %v2893_v44 = vpop.f32.mrf.mxu1  ;;  %v2448_v37 = vadd.f32 %v2432_v31, %v2180_v63 }
 0x325   : > { %2977 = vst [vmem:[%s4293_s18 + $0x38] sm:$0xff] %v2961_v18  ;;  %v2962_v54 = vadd.f32 %v4274_v2, %v2934_v42  ;;  %v2935_v20 = vadd.f32 %v2919_v56, %v2639_v34  ;;  %v2920_v46 = vmul.f32 %v2893_v44, %v4493_v14  ;;  %v2181_v26 = vadd.f32 %v2165_v61, %v1885_v9 }
 0x326   : > { %v2895_v62 = vpop.f32.mrf.mxu1  ;;  %v2644_v5 = vadd.f32 %v2625_v11, %v2448_v37 }
 0x327   : > { %2978 = vst [vmem:[%s4293_s18 + $0x40] sm:$0xff] %v2962_v54  ;;  %v2963_v23 = vadd.f32 %v4284_v25, %v2935_v20  ;;  %v2936_v48 = vadd.f32 %v2920_v46, %v2640_v49  ;;  %v2921_v17 = vmul.f32 %v2895_v62, %v4493_v14  ;;  %v2449_v13 = vadd.f32 %v2433_v1, %v2181_v26 }
 0x328   : > { %v2899_v59 = vpop.f32.mrf.mxu1 }
 0x329   : > { %2979 = vst [vmem:[%s4293_s18 + $0x48] sm:$0xff] %v2963_v23  ;;  %v2964_v3 = vadd.f32 %v4274_v2, %v2936_v48  ;;  %v2937_v51 = vadd.f32 %v2921_v17, %v2641_v35  ;;  %v2922_v12 = vmul.f32 %v2899_v59, %v4501_v32  ;;  %v2645_v29 = vadd.f32 %v2627_v8, %v2449_v13 }
 0x32a   : > { %v2901_v33 = vpop.f32.mrf.mxu1 }
 0x32b   : > { %2980 = vst [vmem:[%s4293_s18 + $0x50] sm:$0xff] %v2964_v3  ;;  %v2965_v6 = vadd.f32 %v4284_v25, %v2937_v51  ;;  %v2938_v14 = vadd.f32 %v2922_v12, %v2642_v30  ;;  %v2923_v7 = vmul.f32 %v2901_v33, %v4501_v32 }
 0x32c   : > { %v2905_v36 = vpop.f32.mrf.mxu1 }
 0x32d   : > { %2981 = vst [vmem:[%s4293_s18 + $0x58] sm:$0xff] %v2965_v6  ;;  %v2966_v47 = vadd.f32 %v4274_v2, %v2938_v14  ;;  %v2939_v41 = vadd.f32 %v2923_v7, %v2643_v58  ;;  %v2924_v16 = vmul.f32 %v2905_v36, %v4508_v60 }
 0x32e   : > { %v2907_v50 = vpop.f32.mrf.mxu1 }
 0x32f   : > { %2982 = vst [vmem:[%s4293_s18 + $0x60] sm:$0xff] %v2966_v47  ;;  %v2967_v15 = vadd.f32 %v4284_v25, %v2939_v41  ;;  %v2940_v27 = vadd.f32 %v2924_v16, %v2644_v5  ;;  %v2925_v55 = vmul.f32 %v2907_v50, %v4508_v60 }
 0x331   : > { %2983 = vst [vmem:[%s4293_s18 + $0x68] sm:$0xff] %v2967_v15  ;;  %v2968_v32 = vadd.f32 %v4274_v2, %v2940_v27  ;;  %v2941_v57 = vadd.f32 %v2925_v55, %v2645_v29 }
 0x333   : > { %2984 = vst [vmem:[%s4293_s18 + $0x70] sm:$0xff] %v2968_v32  ;;  %v2969_v10 = vadd.f32 %v4284_v25, %v2941_v57 }
 0x335   : > { %2985 = vst [vmem:[%s4293_s18 + $0x78] sm:$0xff] %v2969_v10 }
 0x336 PF: > { %s19_s21 = sadd.s32 1, %s3297_s21  }
 0x337   : > { %p16_p3 = scmp.ge.s32.totalorder %s19_s21, 4  }
 0x339   :  { %18 = sbr.rel (!%p16_p3) target bundleno = 3 (0x3), region = 100 }
 0x33e   :  { %3007 = vsyncpa [#allocation4], 1 }
 0x33f   :  { %3009 = vsyncpa [#allocation4 + $0x1], 1 }
 0x340   :  { %3010 = vsyncpa [#allocation6], 1 }
 0x341   :  { %3011 = vsyncpa [#allocation9], 1 }

</bundles_post_ra>
